<compile_context>
chip_gen: v6e
topology: v6e:2x2x1
jax: 0.10.0
libtpu: 0.0.40
codegen_flags: <defaults>
</compile_context>

<pallas_src>
import jax
import jax.numpy as jnp
from jax import lax
from jax.experimental import pallas as pl
from jax.experimental.pallas import tpu as pltpu


def _bottleneck_kernel(x_ref, w1_ref, b1_ref, w2_ref, b2_ref, w3_ref, b3_ref,
                       o_ref, pad_ref, slab_ref):
    # x_ref:  (1, H, W, Cin)          compute dtype (bf16 or f32)
    # w1_ref: (Cin, C)                BN scale folded in, compute dtype
    # w2_ref: (9*C, C)                BN scale folded in, compute dtype
    # w3_ref: (C, Cout)               BN scale folded in, compute dtype
    # b*_ref: (1, C) / (1, Cout)      f32
    # pad_ref:  (H+2, W+2, C)  f32 scratch (zero-padded stage-1 activations)
    # slab_ref: (H*W, 9*C)     compute-dtype scratch (im2col slab)
    _, H, W, Cin = x_ref.shape
    C = w1_ref.shape[1]
    Cout = w3_ref.shape[1]
    cdt = slab_ref.dtype
    pdt = pad_ref.dtype

    # ---- stage 1: 1x1 conv (scale folded into w1) + bias + ReLU --------------
    x = x_ref[0].reshape(H * W, Cin)
    h1 = jnp.dot(x, w1_ref[...], preferred_element_type=jnp.float32)
    h1 = jnp.maximum(h1 + b1_ref[...], 0.0)

    # ---- stage 2: 3x3 conv (pad=1) via im2col + one K=9C matmul --------------
    # Zero only the 1-px border; the interior is fully overwritten below.  The
    # border is re-zeroed every step so correctness does not depend on scratch
    # persistence / which core executes which grid index.
    pad_ref[0:1, :, :] = jnp.zeros((1, W + 2, C), pdt)
    pad_ref[H + 1:H + 2, :, :] = jnp.zeros((1, W + 2, C), pdt)
    pad_ref[:, 0:1, :] = jnp.zeros((H + 2, 1, C), pdt)
    pad_ref[:, W + 1:W + 2, :] = jnp.zeros((H + 2, 1, C), pdt)
    pad_ref[1:H + 1, 1:W + 1, :] = h1.reshape(H, W, C).astype(pdt)

    # Build the (H*W, 9*C) im2col slab: tap k=(ky,kx) occupies columns [k*C,(k+1)*C).
    for k in range(9):
        ky, kx = k // 3, k % 3
        patch = pad_ref[ky:ky + H, kx:kx + W, :].reshape(H * W, C)
        slab_ref[:, k * C:(k + 1) * C] = patch.astype(cdt)

    h2 = jnp.dot(slab_ref[...], w2_ref[...], preferred_element_type=jnp.float32)
    h2 = jnp.maximum(h2 + b2_ref[...], 0.0)

    # ---- stage 3: 1x1 conv + bias (no activation: pre_activation=False) ------
    h3 = jnp.dot(h2.astype(w3_ref.dtype), w3_ref[...],
                 preferred_element_type=jnp.float32)
    h3 = h3 + b3_ref[...]

    o_ref[0] = h3.reshape(H, W, Cout).astype(o_ref.dtype)


def _ceil_to(v, m):
    return -(-v // m) * m


def _vmem_block_bytes(shape, dtype):
    """Crude VMEM footprint estimate of one block ((8/16,128) tile padding)."""
    s = list(shape)
    itemsize = jnp.dtype(dtype).itemsize
    if len(s) >= 1:
        s[-1] = _ceil_to(s[-1], 128)
    if len(s) >= 2:
        s[-2] = _ceil_to(s[-2], 16 if itemsize == 2 else 8)
    n = 1
    for d in s:
        n *= d
    return n * itemsize


def bottleneck_forward(x_nchw, w1, s1, b1, w2_hwio, s2, b2, w3, s3, b3,
                       stride=1, compute_dtype=jnp.bfloat16):
    """x_nchw: (N, Cin, H, W) f32. Returns (N, 4*base, H/stride, W/stride) f32."""
    Cin, C = w1.shape
    Cout = w3.shape[1]

    # Fold BN scales into the conv weights (one-time, wrapper side).
    w1f = (w1 * s1.reshape(1, C)).astype(compute_dtype)                     # (Cin, C)
    w2f = (w2_hwio * s2.reshape(1, 1, 1, C)).reshape(9 * C, C).astype(compute_dtype)
    w3f = (w3 * s3.reshape(1, Cout)).astype(compute_dtype)                  # (C, Cout)
    b1_ = b1.reshape(1, C).astype(jnp.float32)
    b2_ = b2.reshape(1, C).astype(jnp.float32)
    b3_ = b3.reshape(1, Cout).astype(jnp.float32)

    x = jnp.transpose(x_nchw, (0, 2, 3, 1)).astype(jnp.float32)             # NHWC
    if stride > 1:
        # stage-1 conv is 1x1, so a strided conv == spatial subsample first.
        # TODO(synk): fold this subsample into the kernel's x load (strided pl.ds)
        # to save one HBM round trip of the activation tensor.
        x = x[:, ::stride, ::stride, :]
    x = x.astype(compute_dtype)
    N, H, W, _ = x.shape

    # Raise the scoped-VMEM limit only if the estimated footprint needs it.
    est = (2 * _vmem_block_bytes((1, H, W, Cin), compute_dtype)             # x (dbl buf)
           + 2 * _vmem_block_bytes((1, H, W, Cout), jnp.float32)            # out (dbl buf)
           + _vmem_block_bytes((H + 2, W + 2, C), jnp.float32)              # pad scratch
           + _vmem_block_bytes((H * W, 9 * C), compute_dtype)               # im2col slab
           + 2 * (_vmem_block_bytes((Cin, C), compute_dtype)
                  + _vmem_block_bytes((9 * C, C), compute_dtype)
                  + _vmem_block_bytes((C, Cout), compute_dtype)
                  + _vmem_block_bytes((1, C), jnp.float32) * 2
                  + _vmem_block_bytes((1, Cout), jnp.float32)))
    cp_kwargs = dict(dimension_semantics=("parallel",))
    if est > 16 * 1024 * 1024:
        cp_kwargs["vmem_limit_bytes"] = min(int(est * 1.25), 64 * 1024 * 1024)

    out_nhwc = pl.pallas_call(
        _bottleneck_kernel,
        out_shape=jax.ShapeDtypeStruct((N, H, W, Cout), jnp.float32),
        grid_spec=pltpu.PrefetchScalarGridSpec(
            num_scalar_prefetch=0,
            grid=(N,),
            in_specs=[
                pl.BlockSpec((1, H, W, Cin), lambda n: (n, 0, 0, 0)),
                pl.BlockSpec((Cin, C), lambda n: (0, 0)),
                pl.BlockSpec((1, C), lambda n: (0, 0)),
                pl.BlockSpec((9 * C, C), lambda n: (0, 0)),
                pl.BlockSpec((1, C), lambda n: (0, 0)),
                pl.BlockSpec((C, Cout), lambda n: (0, 0)),
                pl.BlockSpec((1, Cout), lambda n: (0, 0)),
            ],
            out_specs=pl.BlockSpec((1, H, W, Cout), lambda n: (n, 0, 0, 0)),
            scratch_shapes=[
                pltpu.VMEM((H + 2, W + 2, C), jnp.float32),
                pltpu.VMEM((H * W, 9 * C), compute_dtype),
            ],
        ),
        compiler_params=pltpu.CompilerParams(**cp_kwargs),
    )(x, w1f, b1_, w2f, b2_, w3f, b3_)

    return jnp.transpose(out_nhwc, (0, 3, 1, 2))   # back to NCHW


# --------------------------- references (pure JAX) ---------------------------

def _reference_unfused(x_nchw, w1, s1, b1, w2_hwio, s2, b2, w3, s3, b3, stride=1):
    """Module-semantics reference: conv -> (*s + b) [-> ReLU], all f32."""
    dn = ("NHWC", "HWIO", "NHWC")
    hp = lax.Precision.HIGHEST
    x = jnp.transpose(x_nchw, (0, 2, 3, 1))
    if stride > 1:
        x = x[:, ::stride, ::stride, :]
    h = lax.conv_general_dilated(x, w1[None, None], (1, 1), "VALID",
                                 dimension_numbers=dn, precision=hp)
    h = jnp.maximum(h * s1 + b1, 0.0)
    h = lax.conv_general_dilated(h, w2_hwio, (1, 1), ((1, 1), (1, 1)),
                                 dimension_numbers=dn, precision=hp)
    h = jnp.maximum(h * s2 + b2, 0.0)
    h = lax.conv_general_dilated(h, w3[None, None], (1, 1), "VALID",
                                 dimension_numbers=dn, precision=hp)
    h = h * s3 + b3
    return jnp.transpose(h, (0, 3, 1, 2))


def _reference_folded(x_nchw, w1f, b1, w2f_hwio, b2, w3f, b3, stride, compute_dtype):
    """Quantization-matched reference: same BN-folded weights and the same
    compute-dtype casting points as the Pallas kernel (f32 accumulation)."""
    dn = ("NHWC", "HWIO", "NHWC")
    hp = lax.Precision.HIGHEST
    x = jnp.transpose(x_nchw, (0, 2, 3, 1))
    if stride > 1:
        x = x[:, ::stride, ::stride, :]
    x = x.astype(compute_dtype)
    h = lax.conv_general_dilated(x, w1f[None, None].astype(compute_dtype), (1, 1),
                                 "VALID", dimension_numbers=dn, precision=hp,
                                 preferred_element_type=jnp.float32)
    h = jnp.maximum(h + b1, 0.0).astype(compute_dtype)
    h = lax.conv_general_dilated(h, w2f_hwio.astype(compute_dtype), (1, 1),
                                 ((1, 1), (1, 1)), dimension_numbers=dn, precision=hp,
                                 preferred_element_type=jnp.float32)
    h = jnp.maximum(h + b2, 0.0).astype(compute_dtype)
    h = lax.conv_general_dilated(h, w3f[None, None].astype(compute_dtype), (1, 1),
                                 "VALID", dimension_numbers=dn, precision=hp,
                                 preferred_element_type=jnp.float32)
    h = h.astype(jnp.float32) + b3
    return jnp.transpose(h, (0, 3, 1, 2))


def _bn_fold(kg, kb, km, kv, c, eps=1e-5):
    gamma = 1.0 + 0.1 * jax.random.normal(kg, (c,), jnp.float32)
    beta = 0.1 * jax.random.normal(kb, (c,), jnp.float32)
    mean = 0.1 * jax.random.normal(km, (c,), jnp.float32)
    var = jnp.abs(jax.random.normal(kv, (c,), jnp.float32)) + 0.5
    scale = gamma / jnp.sqrt(var + eps)
    bias = beta - mean * scale
    return scale, bias


if __name__ == "__main__":
    # BottleNeck(input_channel=4, block_base_channel=4, stride=1, pre_activation=False)
    N, Cin, H, W = 2, 4, 16, 16
    base = 4
    stride = 1

    key = jax.random.PRNGKey(0)
    ks = jax.random.split(key, 16)
    x = jax.random.normal(ks[0], (N, Cin, H, W), jnp.float32)

    w1 = 0.1 * jax.random.normal(ks[1], (Cin, base), jnp.float32)            # 1x1, (in, out)
    w2 = 0.1 * jax.random.normal(ks[2], (3, 3, base, base), jnp.float32)     # 3x3, HWIO
    w3 = 0.1 * jax.random.normal(ks[3], (base, 4 * base), jnp.float32)       # 1x1, (in, out)

    s1, b1 = _bn_fold(ks[4], ks[5], ks[6], ks[7], base)
    s2, b2 = _bn_fold(ks[8], ks[9], ks[10], ks[11], base)
    s3, b3 = _bn_fold(ks[12], ks[13], ks[14], ks[15], 4 * base)

    # --- f32 compute path: exact check against module-semantics reference ----
    out_f32 = bottleneck_forward(x, w1, s1, b1, w2, s2, b2, w3, s3, b3,
                                 stride=stride, compute_dtype=jnp.float32)
    out_f32 = jax.block_until_ready(out_f32)
    ref_f32 = _reference_unfused(x, w1, s1, b1, w2, s2, b2, w3, s3, b3, stride=stride)
    assert out_f32.shape == (N, 4 * base, H // stride, W // stride), out_f32.shape
    assert jnp.allclose(out_f32, ref_f32, atol=1e-3, rtol=1e-3), \
        float(jnp.max(jnp.abs(out_f32 - ref_f32)))

    # --- bf16 compute path (default): quantization-matched reference ---------
    out_bf = bottleneck_forward(x, w1, s1, b1, w2, s2, b2, w3, s3, b3,
                                stride=stride, compute_dtype=jnp.bfloat16)
    out_bf = jax.block_until_ready(out_bf)
    w1f = w1 * s1.reshape(1, -1)
    w2f = w2 * s2.reshape(1, 1, 1, -1)
    w3f = w3 * s3.reshape(1, -1)
    ref_bf = _reference_folded(x, w1f, b1, w2f, b2, w3f, b3, stride, jnp.bfloat16)
    assert out_bf.shape == (N, 4 * base, H // stride, W // stride), out_bf.shape
    assert jnp.allclose(out_bf, ref_bf, atol=2e-3, rtol=2e-3), \
        float(jnp.max(jnp.abs(out_bf - ref_bf)))

    print("KERNEL_OK")
</pallas_src>

<mosaic_0001>
module attributes {stable_mosaic.version = 11 : i64} {
  func.func @_bottleneck_kernel(%arg0: i32, %arg1: memref<1x16x16x4xf32, #tpu.memory_space<vmem>>, %arg2: memref<4x4xf32, #tpu.memory_space<vmem>>, %arg3: memref<1x4xf32, #tpu.memory_space<vmem>>, %arg4: memref<36x4xf32, #tpu.memory_space<vmem>>, %arg5: memref<1x4xf32, #tpu.memory_space<vmem>>, %arg6: memref<4x16xf32, #tpu.memory_space<vmem>>, %arg7: memref<1x16xf32, #tpu.memory_space<vmem>>, %arg8: memref<1x16x16x16xf32, #tpu.memory_space<vmem>>, %arg9: memref<18x18x4xf32, #tpu.memory_space<vmem>>, %arg10: memref<256x36xf32, #tpu.memory_space<vmem>>) attributes {dimension_semantics = [#tpu.dimension_semantics<parallel>], iteration_bounds = array<i64: 2>, scalar_prefetch = 0 : i64, scratch_operands = 2 : i64, tpu.core_type = #tpu.core_type<tc>, window_params = [{transform_indices = @transform_0, window_bounds = array<i64: 1, 16, 16, 4>}, {pipeline_mode = #tpu.pipeline_mode<synchronous>, transform_indices = @transform_1, window_bounds = array<i64: 4, 4>}, {pipeline_mode = #tpu.pipeline_mode<synchronous>, transform_indices = @transform_2, window_bounds = array<i64: 1, 4>}, {pipeline_mode = #tpu.pipeline_mode<synchronous>, transform_indices = @transform_3, window_bounds = array<i64: 36, 4>}, {pipeline_mode = #tpu.pipeline_mode<synchronous>, transform_indices = @transform_4, window_bounds = array<i64: 1, 4>}, {pipeline_mode = #tpu.pipeline_mode<synchronous>, transform_indices = @transform_5, window_bounds = array<i64: 4, 16>}, {pipeline_mode = #tpu.pipeline_mode<synchronous>, transform_indices = @transform_6, window_bounds = array<i64: 1, 16>}, {transform_indices = @transform_7, window_bounds = array<i64: 1, 16, 16, 16>}]} {
    %c0 = arith.constant 0 : index
    %c0_0 = arith.constant 0 : index
    %c0_1 = arith.constant 0 : index
    %c0_2 = arith.constant 0 : index
    %0 = vector.load %arg1[%c0, %c0_0, %c0_1, %c0_2] : memref<1x16x16x4xf32, #tpu.memory_space<vmem>>, vector<1x16x16x4xf32>
    %1 = vector.shape_cast %0 : vector<1x16x16x4xf32> to vector<16x16x4xf32>
    %2 = vector.shape_cast %1 : vector<16x16x4xf32> to vector<256x4xf32>
    %c0_3 = arith.constant 0 : index
    %c0_4 = arith.constant 0 : index
    %3 = vector.load %arg2[%c0_3, %c0_4] : memref<4x4xf32, #tpu.memory_space<vmem>>, vector<4x4xf32>
    %cst = arith.constant dense<0.000000e+00> : vector<256x4xf32>
    %4 = tpu.matmul %2, %3, %cst {dimension_numbers = #tpu.dot_dimension_numbers<[1], [0], [0], [1], [0, 0, 1, 1], [], []>} : vector<256x4xf32>, vector<4x4xf32>, vector<256x4xf32> -> vector<256x4xf32>
    %c0_5 = arith.constant 0 : index
    %c0_6 = arith.constant 0 : index
    %5 = vector.load %arg3[%c0_5, %c0_6] : memref<1x4xf32, #tpu.memory_space<vmem>>, vector<1x4xf32>
    %6 = vector.broadcast %5 : vector<1x4xf32> to vector<256x4xf32>
    %7 = arith.addf %4, %6 : vector<256x4xf32>
    %cst_7 = arith.constant 0.000000e+00 : f32
    %8 = vector.broadcast %cst_7 : f32 to vector<256x4xf32>
    %9 = arith.maximumf %7, %8 : vector<256x4xf32>
    %cst_8 = arith.constant 0.000000e+00 : f32
    %10 = vector.broadcast %cst_8 : f32 to vector<1x18x4xf32>
    %c0_9 = arith.constant 0 : index
    %c0_10 = arith.constant 0 : index
    %c0_11 = arith.constant 0 : index
    %11 = vector.load %arg9[%c0_9, %c0_10, %c0_11] : memref<18x18x4xf32, #tpu.memory_space<vmem>>, vector<1x18x4xf32>
    tpu.vector_store %arg9[%c0_9, %c0_10, %c0_11], %10 {strides = array<i32>} : memref<18x18x4xf32, #tpu.memory_space<vmem>>, vector<1x18x4xf32>,
    %cst_12 = arith.constant 0.000000e+00 : f32
    %12 = vector.broadcast %cst_12 : f32 to vector<1x18x4xf32>
    %c17 = arith.constant 17 : index
    %c0_13 = arith.constant 0 : index
    %c0_14 = arith.constant 0 : index
    %13 = vector.load %arg9[%c17, %c0_13, %c0_14] : memref<18x18x4xf32, #tpu.memory_space<vmem>>, vector<1x18x4xf32>
    tpu.vector_store %arg9[%c17, %c0_13, %c0_14], %12 {strides = array<i32>} : memref<18x18x4xf32, #tpu.memory_space<vmem>>, vector<1x18x4xf32>,
    %cst_15 = arith.constant 0.000000e+00 : f32
    %14 = vector.broadcast %cst_15 : f32 to vector<18x1x4xf32>
    %c0_16 = arith.constant 0 : index
    %c0_17 = arith.constant 0 : index
    %c0_18 = arith.constant 0 : index
    %15 = vector.load %arg9[%c0_16, %c0_17, %c0_18] : memref<18x18x4xf32, #tpu.memory_space<vmem>>, vector<18x1x4xf32>
    tpu.vector_store %arg9[%c0_16, %c0_17, %c0_18], %14 {strides = array<i32>} : memref<18x18x4xf32, #tpu.memory_space<vmem>>, vector<18x1x4xf32>,
    %cst_19 = arith.constant 0.000000e+00 : f32
    %16 = vector.broadcast %cst_19 : f32 to vector<18x1x4xf32>
    %c0_20 = arith.constant 0 : index
    %c17_21 = arith.constant 17 : index
    %c0_22 = arith.constant 0 : index
    %17 = vector.load %arg9[%c0_20, %c17_21, %c0_22] : memref<18x18x4xf32, #tpu.memory_space<vmem>>, vector<18x1x4xf32>
    tpu.vector_store %arg9[%c0_20, %c17_21, %c0_22], %16 {strides = array<i32>} : memref<18x18x4xf32, #tpu.memory_space<vmem>>, vector<18x1x4xf32>,
    %18 = vector.shape_cast %9 : vector<256x4xf32> to vector<16x16x4xf32>
    %c1 = arith.constant 1 : index
    %c1_23 = arith.constant 1 : index
    %c0_24 = arith.constant 0 : index
    %19 = vector.load %arg9[%c1, %c1_23, %c0_24] : memref<18x18x4xf32, #tpu.memory_space<vmem>>, vector<16x16x4xf32>
    tpu.vector_store %arg9[%c1, %c1_23, %c0_24], %18 {strides = array<i32>} : memref<18x18x4xf32, #tpu.memory_space<vmem>>, vector<16x16x4xf32>,
    %c0_25 = arith.constant 0 : index
    %c0_26 = arith.constant 0 : index
    %c0_27 = arith.constant 0 : index
    %20 = vector.load %arg9[%c0_25, %c0_26, %c0_27] : memref<18x18x4xf32, #tpu.memory_space<vmem>>, vector<16x16x4xf32>
    %21 = vector.shape_cast %20 : vector<16x16x4xf32> to vector<256x4xf32>
    %c0_28 = arith.constant 0 : index
    %c0_29 = arith.constant 0 : index
    %22 = vector.load %arg10[%c0_28, %c0_29] : memref<256x36xf32, #tpu.memory_space<vmem>>, vector<256x4xf32>
    tpu.vector_store %arg10[%c0_28, %c0_29], %21 {strides = array<i32>} : memref<256x36xf32, #tpu.memory_space<vmem>>, vector<256x4xf32>,
    %c0_30 = arith.constant 0 : index
    %c1_31 = arith.constant 1 : index
    %c0_32 = arith.constant 0 : index
    %23 = vector.load %arg9[%c0_30, %c1_31, %c0_32] : memref<18x18x4xf32, #tpu.memory_space<vmem>>, vector<16x16x4xf32>
    %24 = vector.shape_cast %23 : vector<16x16x4xf32> to vector<256x4xf32>
    %c0_33 = arith.constant 0 : index
    %c4 = arith.constant 4 : index
    %25 = vector.load %arg10[%c0_33, %c4] : memref<256x36xf32, #tpu.memory_space<vmem>>, vector<256x4xf32>
    tpu.vector_store %arg10[%c0_33, %c4], %24 {strides = array<i32>} : memref<256x36xf32, #tpu.memory_space<vmem>>, vector<256x4xf32>,
    %c0_34 = arith.constant 0 : index
    %c2 = arith.constant 2 : index
    %c0_35 = arith.constant 0 : index
    %26 = vector.load %arg9[%c0_34, %c2, %c0_35] : memref<18x18x4xf32, #tpu.memory_space<vmem>>, vector<16x16x4xf32>
    %27 = vector.shape_cast %26 : vector<16x16x4xf32> to vector<256x4xf32>
    %c0_36 = arith.constant 0 : index
    %c8 = arith.constant 8 : index
    %28 = vector.load %arg10[%c0_36, %c8] : memref<256x36xf32, #tpu.memory_space<vmem>>, vector<256x4xf32>
    tpu.vector_store %arg10[%c0_36, %c8], %27 {strides = array<i32>} : memref<256x36xf32, #tpu.memory_space<vmem>>, vector<256x4xf32>,
    %c1_37 = arith.constant 1 : index
    %c0_38 = arith.constant 0 : index
    %c0_39 = arith.constant 0 : index
    %29 = vector.load %arg9[%c1_37, %c0_38, %c0_39] : memref<18x18x4xf32, #tpu.memory_space<vmem>>, vector<16x16x4xf32>
    %30 = vector.shape_cast %29 : vector<16x16x4xf32> to vector<256x4xf32>
    %c0_40 = arith.constant 0 : index
    %c12 = arith.constant 12 : index
    %31 = vector.load %arg10[%c0_40, %c12] : memref<256x36xf32, #tpu.memory_space<vmem>>, vector<256x4xf32>
    tpu.vector_store %arg10[%c0_40, %c12], %30 {strides = array<i32>} : memref<256x36xf32, #tpu.memory_space<vmem>>, vector<256x4xf32>,
    %c1_41 = arith.constant 1 : index
    %c1_42 = arith.constant 1 : index
    %c0_43 = arith.constant 0 : index
    %32 = vector.load %arg9[%c1_41, %c1_42, %c0_43] : memref<18x18x4xf32, #tpu.memory_space<vmem>>, vector<16x16x4xf32>
    %33 = vector.shape_cast %32 : vector<16x16x4xf32> to vector<256x4xf32>
    %c0_44 = arith.constant 0 : index
    %c16 = arith.constant 16 : index
    %34 = vector.load %arg10[%c0_44, %c16] : memref<256x36xf32, #tpu.memory_space<vmem>>, vector<256x4xf32>
    tpu.vector_store %arg10[%c0_44, %c16], %33 {strides = array<i32>} : memref<256x36xf32, #tpu.memory_space<vmem>>, vector<256x4xf32>,
    %c1_45 = arith.constant 1 : index
    %c2_46 = arith.constant 2 : index
    %c0_47 = arith.constant 0 : index
    %35 = vector.load %arg9[%c1_45, %c2_46, %c0_47] : memref<18x18x4xf32, #tpu.memory_space<vmem>>, vector<16x16x4xf32>
    %36 = vector.shape_cast %35 : vector<16x16x4xf32> to vector<256x4xf32>
    %c0_48 = arith.constant 0 : index
    %c20 = arith.constant 20 : index
    %37 = vector.load %arg10[%c0_48, %c20] : memref<256x36xf32, #tpu.memory_space<vmem>>, vector<256x4xf32>
    tpu.vector_store %arg10[%c0_48, %c20], %36 {strides = array<i32>} : memref<256x36xf32, #tpu.memory_space<vmem>>, vector<256x4xf32>,
    %c2_49 = arith.constant 2 : index
    %c0_50 = arith.constant 0 : index
    %c0_51 = arith.constant 0 : index
    %38 = vector.load %arg9[%c2_49, %c0_50, %c0_51] : memref<18x18x4xf32, #tpu.memory_space<vmem>>, vector<16x16x4xf32>
    %39 = vector.shape_cast %38 : vector<16x16x4xf32> to vector<256x4xf32>
    %c0_52 = arith.constant 0 : index
    %c24 = arith.constant 24 : index
    %40 = vector.load %arg10[%c0_52, %c24] : memref<256x36xf32, #tpu.memory_space<vmem>>, vector<256x4xf32>
    tpu.vector_store %arg10[%c0_52, %c24], %39 {strides = array<i32>} : memref<256x36xf32, #tpu.memory_space<vmem>>, vector<256x4xf32>,
    %c2_53 = arith.constant 2 : index
    %c1_54 = arith.constant 1 : index
    %c0_55 = arith.constant 0 : index
    %41 = vector.load %arg9[%c2_53, %c1_54, %c0_55] : memref<18x18x4xf32, #tpu.memory_space<vmem>>, vector<16x16x4xf32>
    %42 = vector.shape_cast %41 : vector<16x16x4xf32> to vector<256x4xf32>
    %c0_56 = arith.constant 0 : index
    %c28 = arith.constant 28 : index
    %43 = vector.load %arg10[%c0_56, %c28] : memref<256x36xf32, #tpu.memory_space<vmem>>, vector<256x4xf32>
    tpu.vector_store %arg10[%c0_56, %c28], %42 {strides = array<i32>} : memref<256x36xf32, #tpu.memory_space<vmem>>, vector<256x4xf32>,
    %c2_57 = arith.constant 2 : index
    %c2_58 = arith.constant 2 : index
    %c0_59 = arith.constant 0 : index
    %44 = vector.load %arg9[%c2_57, %c2_58, %c0_59] : memref<18x18x4xf32, #tpu.memory_space<vmem>>, vector<16x16x4xf32>
    %45 = vector.shape_cast %44 : vector<16x16x4xf32> to vector<256x4xf32>
    %c0_60 = arith.constant 0 : index
    %c32 = arith.constant 32 : index
    %46 = vector.load %arg10[%c0_60, %c32] : memref<256x36xf32, #tpu.memory_space<vmem>>, vector<256x4xf32>
    tpu.vector_store %arg10[%c0_60, %c32], %45 {strides = array<i32>} : memref<256x36xf32, #tpu.memory_space<vmem>>, vector<256x4xf32>,
    %c0_61 = arith.constant 0 : index
    %c0_62 = arith.constant 0 : index
    %47 = vector.load %arg10[%c0_61, %c0_62] : memref<256x36xf32, #tpu.memory_space<vmem>>, vector<256x36xf32>
    %c0_63 = arith.constant 0 : index
    %c0_64 = arith.constant 0 : index
    %48 = vector.load %arg4[%c0_63, %c0_64] : memref<36x4xf32, #tpu.memory_space<vmem>>, vector<36x4xf32>
    %cst_65 = arith.constant dense<0.000000e+00> : vector<256x4xf32>
    %49 = tpu.matmul %47, %48, %cst_65 {dimension_numbers = #tpu.dot_dimension_numbers<[1], [0], [0], [1], [0, 0, 1, 1], [], []>} : vector<256x36xf32>, vector<36x4xf32>, vector<256x4xf32> -> vector<256x4xf32>
    %c0_66 = arith.constant 0 : index
    %c0_67 = arith.constant 0 : index
    %50 = vector.load %arg5[%c0_66, %c0_67] : memref<1x4xf32, #tpu.memory_space<vmem>>, vector<1x4xf32>
    %51 = vector.broadcast %50 : vector<1x4xf32> to vector<256x4xf32>
    %52 = arith.addf %49, %51 : vector<256x4xf32>
    %cst_68 = arith.constant 0.000000e+00 : f32
    %53 = vector.broadcast %cst_68 : f32 to vector<256x4xf32>
    %54 = arith.maximumf %52, %53 : vector<256x4xf32>
    %c0_69 = arith.constant 0 : index
    %c0_70 = arith.constant 0 : index
    %55 = vector.load %arg6[%c0_69, %c0_70] : memref<4x16xf32, #tpu.memory_space<vmem>>, vector<4x16xf32>
    %cst_71 = arith.constant dense<0.000000e+00> : vector<256x16xf32>
    %56 = tpu.matmul %54, %55, %cst_71 {dimension_numbers = #tpu.dot_dimension_numbers<[1], [0], [0], [1], [0, 0, 1, 1], [], []>} : vector<256x4xf32>, vector<4x16xf32>, vector<256x16xf32> -> vector<256x16xf32>
    %c0_72 = arith.constant 0 : index
    %c0_73 = arith.constant 0 : index
    %57 = vector.load %arg7[%c0_72, %c0_73] : memref<1x16xf32, #tpu.memory_space<vmem>>, vector<1x16xf32>
    %58 = vector.broadcast %57 : vector<1x16xf32> to vector<256x16xf32>
    %59 = arith.addf %56, %58 : vector<256x16xf32>
    %60 = vector.shape_cast %59 : vector<256x16xf32> to vector<16x16x16xf32>
    %c0_74 = arith.constant 0 : index
    %c0_75 = arith.constant 0 : index
    %c0_76 = arith.constant 0 : index
    %c0_77 = arith.constant 0 : index
    %61 = vector.load %arg8[%c0_74, %c0_75, %c0_76, %c0_77] : memref<1x16x16x16xf32, #tpu.memory_space<vmem>>, vector<1x16x16x16xf32>
    %62 = vector.shape_cast %61 : vector<1x16x16x16xf32> to vector<16x16x16xf32>
    %63 = vector.shape_cast %60 : vector<16x16x16xf32> to vector<1x16x16x16xf32>
    tpu.vector_store %arg8[%c0_74, %c0_75, %c0_76, %c0_77], %63 {strides = array<i32>} : memref<1x16x16x16xf32, #tpu.memory_space<vmem>>, vector<1x16x16x16xf32>,
    return
  }
  func.func @transform_0(%arg0: i32) -> (i32, i32, i32, i32) {
    %c0_i32 = arith.constant 0 : i32
    %c0_i32_0 = arith.constant 0 : i32
    %c0_i32_1 = arith.constant 0 : i32
    %c0_i32_2 = arith.constant 0 : i32
    return %arg0, %c0_i32, %c0_i32_0, %c0_i32_1 : i32, i32, i32, i32
  }
  func.func @transform_1(%arg0: i32) -> (i32, i32) {
    %c0_i32 = arith.constant 0 : i32
    %c0_i32_0 = arith.constant 0 : i32
    %c0_i32_1 = arith.constant 0 : i32
    return %c0_i32, %c0_i32_0 : i32, i32
  }
  func.func @transform_2(%arg0: i32) -> (i32, i32) {
    %c0_i32 = arith.constant 0 : i32
    %c0_i32_0 = arith.constant 0 : i32
    %c0_i32_1 = arith.constant 0 : i32
    return %c0_i32, %c0_i32_0 : i32, i32
  }
  func.func @transform_3(%arg0: i32) -> (i32, i32) {
    %c0_i32 = arith.constant 0 : i32
    %c0_i32_0 = arith.constant 0 : i32
    %c0_i32_1 = arith.constant 0 : i32
    return %c0_i32, %c0_i32_0 : i32, i32
  }
  func.func @transform_4(%arg0: i32) -> (i32, i32) {
    %c0_i32 = arith.constant 0 : i32
    %c0_i32_0 = arith.constant 0 : i32
    %c0_i32_1 = arith.constant 0 : i32
    return %c0_i32, %c0_i32_0 : i32, i32
  }
  func.func @transform_5(%arg0: i32) -> (i32, i32) {
    %c0_i32 = arith.constant 0 : i32
    %c0_i32_0 = arith.constant 0 : i32
    %c0_i32_1 = arith.constant 0 : i32
    return %c0_i32, %c0_i32_0 : i32, i32
  }
  func.func @transform_6(%arg0: i32) -> (i32, i32) {
    %c0_i32 = arith.constant 0 : i32
    %c0_i32_0 = arith.constant 0 : i32
    %c0_i32_1 = arith.constant 0 : i32
    return %c0_i32, %c0_i32_0 : i32, i32
  }
  func.func @transform_7(%arg0: i32) -> (i32, i32, i32, i32) {
    %c0_i32 = arith.constant 0 : i32
    %c0_i32_0 = arith.constant 0 : i32
    %c0_i32_1 = arith.constant 0 : i32
    %c0_i32_2 = arith.constant 0 : i32
    return %arg0, %c0_i32, %c0_i32_0, %c0_i32_1 : i32, i32, i32, i32
  }
}

</mosaic_0001>

<bundles_post_ra>
// kernel: tpu_custom_call.1
= control target key start
LH: loop header
LB: loop body
LE: loop exit
PB: predicated region body
PF: predicated region fallthrough
CT: control target
= control target key end

     0   :  { %12 = vsyncpa [#allocation5], 0  ;;  %s4955_s0 = inlined_call_operand.vmem [shape: f32[2,16,16,4], index: 0, kind: input, shape index: {}]   ;;  %s4956_s1 = inlined_call_operand.vmem [shape: f32[4,4], index: 1, kind: input, shape index: {}]   ;;  %s4957_s2 = inlined_call_operand.vmem [shape: f32[1,4], index: 2, kind: input, shape index: {}]   ;;  %s4958_s3 = inlined_call_operand.vmem [shape: f32[36,4], index: 3, kind: input, shape index: {}]   ;;  %s4959_s4 = inlined_call_operand.vmem [shape: f32[1,4], index: 4, kind: input, shape index: {}]   ;;  %s4960_s5 = inlined_call_operand.vmem [shape: f32[4,16], index: 5, kind: input, shape index: {}]   ;;  %s4961_s6 = inlined_call_operand.vmem [shape: f32[1,16], index: 6, kind: input, shape index: {}]   ;;  %s4962_s7 = inlined_call_operand.hbm [shape: f32[2,16,16,16], index: 7, kind: output, shape index: {}]  }
   0x1   :  { %14 = vsyncpa [#allocation5 + $0x1], 0  ;;  %s3746_s24 = smov 0   ;;  %s3748_s25 = smov 0  }
   0x2   :  { %s3750_s26 = smov 0   ;;  %s3752_s27 = smov 0  }
   0x3 LB: > { %s3767_s28 = sadd.s32 4294967295, %s3693_s27   ;;  %s3204_s29 = sadd.s32 4294967294, %s3693_s27   ;;  %s3693_s27 = sphi %s3752_s27, %s4968_s27   ;;  %s3689_s26 = sphi %s3750_s26, %s4967_s26   ;;  %s3685_s25 = sphi %s3748_s25, %s4966_s25   ;;  %s3681_s24 = sphi %s3746_s24, %s4965_s24  }
   0x4   : > { %s3771_s30 = sadd.s32 1, %s3693_s27   ;;  %s179_s8 = sadd.s32 1, %s3689_s26 }
   0x5   : > { %s176_s9 = ssub.s32 %s3693_s27, %s3771_s30  ;;  %p189_p0 = scmp.ne.s32.totalorder %s3689_s26, %s3685_s25 }
   0x6   : > { %p177_p1 = scmp.eq.s32.totalorder %s176_s9, 0  ;;  %p190_p2 = scmp.eq.s32.totalorder %s3767_s28, 1 }
   0x7   : > { %p195_p3 = scmp.ne.s32.totalorder %s3685_s25, %s3681_s24  ;;  %p196_p4 = scmp.eq.s32.totalorder %s3204_s29, 1 }
   0x8   : > { %s3782_s10 = scalar_select %p177_p1, %s3689_s26, %s179_s8  }
   0x9   : > { %p3784_p5 = por %p190_p2, %p189_p0  ;;  %p3788_p6 = por %p196_p4, %p195_p3 }
   0xa   : > { %p3207_p7 = scmp.ge.s32.totalorder %s3693_s27, 1  ;;  %p240_p8 = scmp.lt.s32.totalorder %s3693_s27, 3 }
   0xc   : > { %p241_p9 = pnand %p3207_p7, %p240_p8 }
   0xd   : > { %p272_p10 = scmp.lt.s32.totalorder (!%p241_p9), %s3767_s28, 1  ;;  %s3696_s20 = smov (!%p241_p9), 4  }
   0xe   : > { %244 = sbr.rel (%p241_p9) target bundleno = 1266 (0x4f2), region = 48  ;;  %s3697_s21 = smov (!%p241_p9), 8  }
   0xf   : > { %s3698_s29 = smov (!%p241_p9), 16   ;;  %s3699_s8 = smov (!%p241_p9), 12  }
  0x10   : > { %s3700_s9 = smov (!%p241_p9), 20   ;;  %s3701_s13 = smov (!%p241_p9), 32  }
  0x11   : > { %s3702_s14 = smov (!%p241_p9), 28   ;;  %s3319_s22 = sshll.u32 (!%p241_p9), %s3767_s28, 12 }
  0x12   : > { %s4903_s17 = scalar_lea.hbm (!%p241_p9), %s4962_s7, %s3319_s22 }
  0x13   : > { %v309_v0 = vld [vmem:[%s4956_s1] sm:$0xf]  ;;  %vm414_vm0 = vcmask 1043456   ;;  %s273_s15 = scalar_select %p272_p10, %s3767_s28, 1  ;;  %vm317_vm1 = vcmask 31744   ;;  %v3695_v15 = vmov 0.0  }
  0x14   : > { %3423 = vmatprep.subr.msk.mxu0 %vm414_vm0, %v309_v0  ;;  %3581 = vmatprep.subr.msk.mxu1 %vm414_vm0, %v309_v0  ;;  %675 = vst.msk [vmem:[#allocation2] sm:$0xff] %vm317_vm1, %v3695_v15  ;;  %676 = vst.msk [vmem:[#allocation2 + $0x8] sm:$0xff] %vm317_vm1, %v3695_v15  ;;  %vm677_vm2 = vcmask 25600   ;;  %vm683_vm3 = vcmask 24576   ;;  %vm977_vm4 = vcmask 64544   ;;  %vm1170_vm5 = vcmask 97344  }
  0x15   : > { %3424 = vmatpush3.msk.msra.mxu0 %vm414_vm0, %v309_v0  ;;  %3582 = vmatpush3.msk.msra.mxu1 %vm414_vm0, %v309_v0  ;;  %s3318_s16 = sshll.u32 %s273_s15, 8  ;;  %680 = vst.msk [vmem:[#allocation2 + $0x198] sm:$0xff] %vm317_vm1, %v3695_v15  ;;  %681 = vst.msk [vmem:[#allocation2 + $0x1a0] sm:$0xff] %vm317_vm1, %v3695_v15  ;;  %v3904_v34 = vld [vmem:[%s4957_s2] ss:$0 sm:$0xff]  ;;  %s3703_s15 = smov 24  }
  0x16   : > { %s3806_s19 = scalar_lea.vmem %s4955_s0, %s3318_s16  ;;  %678 = vst.msk [vmem:[#allocation2 + $0x10] sm:$0x3] %vm677_vm2, %v3695_v15  ;;  %682 = vst.msk [vmem:[#allocation2 + $0x1a8] sm:$0x3] %vm677_vm2, %v3695_v15  ;;  %vm1363_vm6 = vcmask 130144   ;;  %vm1556_vm7 = vcmask 162944  }
  0x17   : > { %v277_v1 = vld [vmem:[%s3806_s19] sm:$0xff]  ;;  %v278_v2 = vld [vmem:[%s3806_s19 + $0x8] sm:$0xff]  ;;  %v279_v3 = vld [vmem:[%s3806_s19 + $0x10] sm:$0xff]  ;;  %684 = vst.msk [vmem:[#allocation2] sm:$0x1] %vm683_vm3, %v3695_v15  ;;  %vm1749_vm8 = vcmask 195744  }
  0x18   : > { %3425 = vmatprep.mubr.msk.f32.mxu0 %vm317_vm1, %v277_v1  ;;  %v280_v4 = vld [vmem:[%s3806_s19 + $0x18] sm:$0xff]  ;;  %v281_v5 = vld [vmem:[%s3806_s19 + $0x20] sm:$0xff]  ;;  %v282_v6 = vld [vmem:[%s3806_s19 + $0x28] sm:$0xff]  ;;  %685 = vst.msk [vmem:[#allocation2 + $0x18] sm:$0x1] %vm683_vm3, %v3695_v15  ;;  %vm1943_vm9 = vcmask 228544  }
  0x19   : > { %3426 = vmatmul.mubr.msk.f32.vlgmr.msra.gmra.mxu0 %vm317_vm1, %v278_v2  ;;  %v283_v7 = vld [vmem:[%s3806_s19 + $0x30] sm:$0xff]  ;;  %v284_v8 = vld [vmem:[%s3806_s19 + $0x38] sm:$0xff]  ;;  %v285_v9 = vld [vmem:[%s3806_s19 + $0x40] sm:$0xff]  ;;  %686 = vst.msk [vmem:[#allocation2 + $0x30] sm:$0x1] %vm683_vm3, %v3695_v15  ;;  %vm2136_vm10 = vcmask 261344  }
  0x1a   : > { %3428 = vmatprep.mubr.msk.f32.mxu0 %vm317_vm1, %v279_v3  ;;  %v286_v10 = vld [vmem:[%s3806_s19 + $0x48] sm:$0xff]  ;;  %v287_v11 = vld [vmem:[%s3806_s19 + $0x50] sm:$0xff]  ;;  %v288_v12 = vld [vmem:[%s3806_s19 + $0x58] sm:$0xff]  ;;  %687 = vst.msk [vmem:[#allocation2 + $0x48] sm:$0x1] %vm683_vm3, %v3695_v15  ;;  %vm2329_vm11 = vcmask 294144  }
  0x1b   : > { %v289_v13 = vld [vmem:[%s3806_s19 + $0x60] sm:$0xff]  ;;  %v290_v14 = vld [vmem:[%s3806_s19 + $0x68] sm:$0xff]  ;;  %688 = vst.msk [vmem:[#allocation2 + $0x60] sm:$0x1] %vm683_vm3, %v3695_v15  ;;  %689 = vst.msk [vmem:[#allocation2 + $0x78] sm:$0x1] %vm683_vm3, %v3695_v15 }
  0x1c   : > { %690 = vst.msk [vmem:[#allocation2 + $0x90] sm:$0x1] %vm683_vm3, %v3695_v15  ;;  %691 = vst.msk [vmem:[#allocation2 + $0xa8] sm:$0x1] %vm683_vm3, %v3695_v15  ;;  %v817_v16 = vld [vmem:[#allocation2 + $0x1] sm:$0xff]  ;;  %v291_v20 = vld [vmem:[%s3806_s19 + $0x70] sm:$0xff] }
  0x1d   : > { %3429 = vmatmul.mubr.msk.f32.gmra.mxu0 %vm317_vm1, %v280_v4  ;;  %692 = vst.msk [vmem:[#allocation2 + $0xc0] sm:$0x1] %vm683_vm3, %v3695_v15  ;;  %693 = vst.msk [vmem:[#allocation2 + $0xd8] sm:$0x1] %vm683_vm3, %v3695_v15  ;;  %881 = vrot.lane.b32.xlu0 %v817_v16, %s3696_s20  ;;  %v1010_v17 = vld [vmem:[#allocation2 + $0x2] sm:$0xff]  ;;  %v292_v21 = vld [vmem:[%s3806_s19 + $0x78] sm:$0xff] }
  0x1e   : > { %3431 = vmatprep.mubr.msk.f32.mxu0 %vm317_vm1, %v281_v5  ;;  %694 = vst.msk [vmem:[#allocation2 + $0xf0] sm:$0x1] %vm683_vm3, %v3695_v15  ;;  %695 = vst.msk [vmem:[#allocation2 + $0x108] sm:$0x1] %vm683_vm3, %v3695_v15  ;;  %1074 = vrot.lane.b32.xlu1 %v1010_v17, %s3697_s21  ;;  %v818_v18 = vld [vmem:[#allocation2 + $0x9] sm:$0xff]  ;;  %v293_v22 = vld [vmem:[%s3806_s19 + $0x80] sm:$0xff] }
  0x1f   : > { %696 = vst.msk [vmem:[#allocation2 + $0x120] sm:$0x1] %vm683_vm3, %v3695_v15  ;;  %697 = vst.msk [vmem:[#allocation2 + $0x138] sm:$0x1] %vm683_vm3, %v3695_v15  ;;  %3449 = vmatprep.mubr.msk.f32.mxu1 %vm317_vm1, %v293_v22  ;;  %v294_v23 = vld [vmem:[%s3806_s19 + $0x88] sm:$0xff]  ;;  %v295_v24 = vld [vmem:[%s3806_s19 + $0x90] sm:$0xff] }
  0x20   : > { %698 = vst.msk [vmem:[#allocation2 + $0x150] sm:$0x1] %vm683_vm3, %v3695_v15  ;;  %699 = vst.msk [vmem:[#allocation2 + $0x168] sm:$0x1] %vm683_vm3, %v3695_v15  ;;  %3450 = vmatmul.mubr.msk.f32.vlgmr.msra.gmra.mxu1 %vm317_vm1, %v294_v23  ;;  %v296_v25 = vld [vmem:[%s3806_s19 + $0x98] sm:$0xff]  ;;  %v297_v26 = vld [vmem:[%s3806_s19 + $0xa0] sm:$0xff] }
  0x21   : > { %3432 = vmatmul.mubr.msk.f32.gmra.mxu0 %vm317_vm1, %v282_v6  ;;  %700 = vst.msk [vmem:[#allocation2 + $0x180] sm:$0x1] %vm683_vm3, %v3695_v15  ;;  %703 = vst.msk [vmem:[#allocation2 + $0x29] sm:$0x1] %vm683_vm3, %v3695_v15  ;;  %883 = vrot.lane.b32.xlu0 %v818_v18, %s3696_s20  ;;  %v298_v27 = vld [vmem:[%s3806_s19 + $0xa8] sm:$0xff]  ;;  %v753_v28 = vld [vmem:[#allocation2] sm:$0xff] }
  0x22   : > { %3434 = vmatprep.mubr.msk.f32.mxu0 %vm317_vm1, %v283_v7  ;;  %704 = vst.msk [vmem:[#allocation2 + $0x41] sm:$0x1] %vm683_vm3, %v3695_v15  ;;  %705 = vst.msk [vmem:[#allocation2 + $0x59] sm:$0x1] %vm683_vm3, %v3695_v15  ;;  %3452 = vmatprep.mubr.msk.f32.mxu1 %vm317_vm1, %v295_v24  ;;  %v754_v31 = vld [vmem:[#allocation2 + $0x8] sm:$0xff]  ;;  %v299_v54 = vld [vmem:[%s3806_s19 + $0xb0] sm:$0xff] }
  0x23   : > { %706 = vst.msk [vmem:[#allocation2 + $0x71] sm:$0x1] %vm683_vm3, %v3695_v15  ;;  %707 = vst.msk [vmem:[#allocation2 + $0x89] sm:$0x1] %vm683_vm3, %v3695_v15  ;;  %v300_v62 = vld [vmem:[%s3806_s19 + $0xb8] sm:$0xff]  ;;  %vm2406_vm12 = vcmask 293888  }
  0x24   : > { %708 = vst.msk [vmem:[#allocation2 + $0xa1] sm:$0x1] %vm683_vm3, %v3695_v15  ;;  %709 = vst.msk [vmem:[#allocation2 + $0xb9] sm:$0x1] %vm683_vm3, %v3695_v15  ;;  %3453 = vmatmul.mubr.msk.f32.gmra.mxu1 %vm317_vm1, %v296_v25  ;;  %v301_v25 = vld [vmem:[%s3806_s19 + $0xc0] sm:$0xff]  ;;  %vm3095_vm13 = vcmask 130048  }
  0x25   : > { %3435 = vmatmul.mubr.msk.f32.gmra.mxu0 %vm317_vm1, %v284_v8  ;;  %710 = vst.msk [vmem:[#allocation2 + $0xd1] sm:$0x1] %vm683_vm3, %v3695_v15  ;;  %711 = vst.msk [vmem:[#allocation2 + $0xe9] sm:$0x1] %vm683_vm3, %v3695_v15  ;;  %3455 = vmatprep.mubr.msk.f32.mxu1 %vm317_vm1, %v297_v26  ;;  %v302_v26 = vld [vmem:[%s3806_s19 + $0xc8] sm:$0xff] }
  0x26   : > { %3437 = vmatprep.mubr.msk.f32.mxu0 %vm317_vm1, %v285_v9  ;;  %712 = vst.msk [vmem:[#allocation2 + $0x101] sm:$0x1] %vm683_vm3, %v3695_v15  ;;  %713 = vst.msk [vmem:[#allocation2 + $0x119] sm:$0x1] %vm683_vm3, %v3695_v15 }
  0x27   : > { %714 = vst.msk [vmem:[#allocation2 + $0x131] sm:$0x1] %vm683_vm3, %v3695_v15  ;;  %715 = vst.msk [vmem:[#allocation2 + $0x149] sm:$0x1] %vm683_vm3, %v3695_v15 }
  0x28   : > { %716 = vst.msk [vmem:[#allocation2 + $0x161] sm:$0x1] %vm683_vm3, %v3695_v15  ;;  %717 = vst.msk [vmem:[#allocation2 + $0x179] sm:$0x1] %vm683_vm3, %v3695_v15  ;;  %3456 = vmatmul.mubr.msk.f32.gmra.mxu1 %vm317_vm1, %v298_v27 }
  0x29   : > { %3438 = vmatmul.mubr.msk.f32.gmra.mxu0 %vm317_vm1, %v286_v10  ;;  %718 = vst.msk [vmem:[#allocation2 + $0x191] sm:$0x1] %vm683_vm3, %v3695_v15  ;;  %701 = vst.msk [vmem:[#allocation2 + $0x198] sm:$0x1] %vm683_vm3, %v3695_v15  ;;  %3458 = vmatprep.mubr.msk.f32.mxu1 %vm317_vm1, %v299_v54 }
  0x2a   : > { %3440 = vmatprep.mubr.msk.f32.mxu0 %vm317_vm1, %v287_v11  ;;  %702 = vst.msk [vmem:[#allocation2 + $0x11] sm:$0x1] %vm683_vm3, %v3695_v15  ;;  %719 = vst.msk [vmem:[#allocation2 + $0x1a9] sm:$0x1] %vm683_vm3, %v3695_v15 }
  0x2b   : > { %785 = vst.msk [vmem:[#allocation3] sm:$0xff] %vm317_vm1, %v753_v28  ;;  %786 = vst.msk [vmem:[#allocation3 + $0x8] sm:$0xff] %vm317_vm1, %v754_v31  ;;  %v2398_v31 = vld [vmem:[%s4958_s3 + $0x20] sm:$0xf] }
  0x2c   : > { %3459 = vmatmul.mubr.msk.f32.gmra.mxu1 %vm317_vm1, %v300_v62  ;;  %3473 = vmatprep.subr.msk.mxu1 %vm414_vm0, %v2398_v31 }
  0x2d   : > { %3441 = vmatmul.mubr.msk.f32.gmra.mxu0 %vm317_vm1, %v288_v12  ;;  %3461 = vmatprep.mubr.msk.f32.mxu1 %vm317_vm1, %v301_v25 }
  0x2e   : > { %3443 = vmatprep.mubr.msk.f32.mxu0 %vm317_vm1, %v289_v13  ;;  %3474 = vmatpush3.msk.msra.mxu1 %vm414_vm0, %v2398_v31 }
  0x30   : > { %3462 = vmatmul.mubr.msk.f32.gmra.mxu1 %vm317_vm1, %v302_v26 }
  0x31   : > { %3444 = vmatmul.mubr.msk.f32.gmra.mxu0 %vm317_vm1, %v290_v14  ;;  %v1011_v19 = vld [vmem:[#allocation2 + $0xa] sm:$0xff] }
  0x32   : > { %1076 = vrot.lane.b32.xlu1 %v1011_v19, %s3697_s21  ;;  %3446 = vmatprep.mubr.msk.f32.mxu0 %vm317_vm1, %v291_v20 }
  0x35   : > { %3447 = vmatmul.mubr.msk.f32.gmra.mxu0 %vm317_vm1, %v292_v21 }
  0x8f   : > { %v882_v29 = vpop.permute.xlu0 %881 }
  0x90   : > { %978 = vst.msk [vmem:[#allocation3] sm:$0xff] %vm977_vm4, %v882_v29  ;;  %v1075_v30 = vpop.permute.xlu1 %1074  ;;  %v303_v29 = vld [vmem:[%s3806_s19 + $0xd0] sm:$0xff] }
  0x91   : > { %1171 = vst.msk [vmem:[#allocation3] sm:$0xff] %vm1170_vm5, %v1075_v30  ;;  %v304_v30 = vld [vmem:[%s3806_s19 + $0xd8] sm:$0xff]  ;;  %3464 = vmatprep.mubr.msk.f32.mxu1 %vm317_vm1, %v303_v29 }
  0x92   : > { %3465 = vmatmul.mubr.msk.f32.gmra.mxu1 %vm317_vm1, %v304_v30 }
  0x93   : > { %v884_v32 = vpop.permute.xlu0 %883 }
  0x94   : > { %979 = vst.msk [vmem:[#allocation3 + $0x8] sm:$0xff] %vm977_vm4, %v884_v32  ;;  %v305_v32 = vld [vmem:[%s3806_s19 + $0xe0] sm:$0xff] }
  0x95   : > { %3467 = vmatprep.mubr.msk.f32.mxu1 %vm317_vm1, %v305_v32 }
  0xa4   : > { %v1077_v33 = vpop.permute.xlu1 %1076 }
  0xa5   : > { %1172 = vst.msk [vmem:[#allocation3 + $0x8] sm:$0xff] %vm1170_vm5, %v1077_v33  ;;  %v306_v33 = vld [vmem:[%s3806_s19 + $0xe8] sm:$0xff] }
  0xa6   : > { %3468 = vmatmul.mubr.msk.f32.gmra.mxu1 %vm317_vm1, %v306_v33 }
  0xd9   : > { %v3427_v35 = vpop.f32.mrf.mxu0 }
  0xda   : > { %v490_v36 = vadd.f32 %v3427_v35, %v3904_v34  ;;  %v2397_v35 = vld [vmem:[%s4958_s3 + $0x18] sm:$0xff] }
  0xdb   : > { %v484_v37 = vpop.f32.mrf.mxu0  ;;  %3475 = vmatprep.subr.mxu1 %v2397_v35 }
  0xdc   : > { %v644_v38 = vmax.f32 %v490_v36, 0.0  ;;  %v485_v39 = vadd.f32 %v3904_v34, %v484_v37  ;;  %v2396_v36 = vld [vmem:[%s4958_s3 + $0x10] sm:$0xff]  ;;  %3476 = vmatpush3.msra.mxu1 %v2397_v35 }
  0xdd   : > { %v3430_v40 = vpop.f32.mrf.mxu0  ;;  %3477 = vmatprep.subr.mxu1 %v2396_v36 }
  0xde   : > { %722 = vst.msk [vmem:[#allocation2 + $0x21] sm:$0xff] %vm317_vm1, %v644_v38  ;;  %v643_v41 = vmax.f32 %v485_v39, 0.0  ;;  %v500_v42 = vadd.f32 %v3430_v40, %v3904_v34  ;;  %v307_v38 = vld [vmem:[%s3806_s19 + $0xf0] sm:$0xff]  ;;  %v308_v39 = vld [vmem:[%s3806_s19 + $0xf8] sm:$0xff]  ;;  %v2395_v40 = vld [vmem:[%s4958_s3 + $0x8] sm:$0xff]  ;;  %3478 = vmatpush3.msra.mxu1 %v2396_v36 }
  0xdf   : > { %v494_v43 = vpop.f32.mrf.mxu0  ;;  %3470 = vmatprep.mubr.msk.f32.mxu1 %vm317_vm1, %v307_v38  ;;  %3479 = vmatprep.subr.mxu1 %v2395_v40 }
  0xe0   : > { %721 = vst.msk [vmem:[#allocation2 + $0x19] sm:$0xff] %vm317_vm1, %v643_v41  ;;  %v646_v44 = vmax.f32 %v500_v42, 0.0  ;;  %v495_v45 = vadd.f32 %v3904_v34, %v494_v43  ;;  %v2394_v42 = vld [vmem:[%s4958_s3] sm:$0xff]  ;;  %3471 = vmatmul.mubr.msk.f32.gmra.mxu1 %vm317_vm1, %v308_v39 }
  0xe1   : > { %v3433_v46 = vpop.f32.mrf.mxu0  ;;  %3480 = vmatpush3.msra.mxu1 %v2395_v40 }
  0xe2   : > { %724 = vst.msk [vmem:[#allocation2 + $0x39] sm:$0xff] %vm317_vm1, %v646_v44  ;;  %v645_v47 = vmax.f32 %v495_v45, 0.0  ;;  %v510_v48 = vadd.f32 %v3433_v46, %v3904_v34  ;;  %3481 = vmatprep.subr.mxu1 %v2394_v42 }
  0xe3   : > { %v504_v49 = vpop.f32.mrf.mxu0  ;;  %3482 = vmatpush3.msra.mxu1 %v2394_v42 }
  0xe4   : > { %723 = vst.msk [vmem:[#allocation2 + $0x31] sm:$0xff] %vm317_vm1, %v645_v47  ;;  %v648_v50 = vmax.f32 %v510_v48, 0.0  ;;  %v505_v51 = vadd.f32 %v3904_v34, %v504_v49 }
  0xe5   : > { %v1397_v52 = vld [vmem:[#allocation2 + $0x21] sm:$0xff]  ;;  %v3436_v53 = vpop.f32.mrf.mxu0 }
  0xe6   : > { %1462 = vrot.lane.b32.xlu0 %v1397_v52, %s3698_s29  ;;  %726 = vst.msk [vmem:[#allocation2 + $0x51] sm:$0xff] %vm317_vm1, %v648_v50  ;;  %v647_v55 = vmax.f32 %v505_v51, 0.0  ;;  %v520_v56 = vadd.f32 %v3436_v53, %v3904_v34  ;;  %v1590_v8 = vld [vmem:[#allocation2 + $0x22] sm:$0xff] }
  0xe7   : > { %v1204_v57 = vld [vmem:[#allocation2 + $0x20] sm:$0xff]  ;;  %v514_v58 = vpop.f32.mrf.mxu0  ;;  %v1203_v59 = vld [vmem:[#allocation2 + $0x18] sm:$0xff] }
  0xe8   : > { %1269 = vrot.lane.b32.xlu1 %v1204_v57, %s3699_s8  ;;  %725 = vst.msk [vmem:[#allocation2 + $0x49] sm:$0xff] %vm317_vm1, %v647_v55  ;;  %v650_v60 = vmax.f32 %v520_v56, 0.0  ;;  %v515_v61 = vadd.f32 %v3904_v34, %v514_v58  ;;  %788 = vst.msk [vmem:[#allocation3 + $0x18] sm:$0xff] %vm317_vm1, %v1204_v57  ;;  %v819_v2 = vld [vmem:[#allocation2 + $0x19] sm:$0xff] }
  0xe9   : > { %v3439_v63 = vpop.f32.mrf.mxu0  ;;  %787 = vst.msk [vmem:[#allocation3 + $0x10] sm:$0xff] %vm317_vm1, %v1203_v59  ;;  %v1589_v12 = vld [vmem:[#allocation2 + $0x1a] sm:$0xff] }
  0xea   : > { %887 = vrot.lane.b32.xlu0 %v1397_v52, %s3696_s20  ;;  %728 = vst.msk [vmem:[#allocation2 + $0x69] sm:$0xff] %vm317_vm1, %v650_v60  ;;  %v649_v0 = vmax.f32 %v515_v61, 0.0  ;;  %v530_v1 = vadd.f32 %v3439_v63, %v3904_v34  ;;  %v1399_v21 = vld [vmem:[#allocation2 + $0x39] sm:$0xff] }
  0xeb   : > { %v3932_v3 = vld [vmem:[#allocation2 + $0x30] sm:$0xff]  ;;  %v3934_v4 = vld [vmem:[#allocation2 + $0x38] sm:$0xff]  ;;  %v524_v5 = vpop.f32.mrf.mxu0 }
  0xec   : > { %885 = vrot.lane.b32.xlu1 %v819_v2, %s3696_s20  ;;  %727 = vst.msk [vmem:[#allocation2 + $0x61] sm:$0xff] %vm317_vm1, %v649_v0  ;;  %v652_v6 = vmax.f32 %v530_v1, 0.0  ;;  %v525_v7 = vadd.f32 %v3904_v34, %v524_v5  ;;  %790 = vst.msk [vmem:[#allocation3 + $0x28] sm:$0xff] %vm317_vm1, %v3934_v4  ;;  %v2170_v24 = vld [vmem:[#allocation2 + $0x3a] sm:$0xff]  ;;  %v1976_v37 = vld [vmem:[#allocation2 + $0x31] sm:$0xff] }
  0xed   : > { %789 = vst.msk [vmem:[#allocation3 + $0x20] sm:$0xff] %vm317_vm1, %v3932_v3  ;;  %v3442_v9 = vpop.f32.mrf.mxu0  ;;  %v2169_v47 = vld [vmem:[#allocation2 + $0x32] sm:$0xff] }
  0xee   : > { %1655 = vrot.lane.b32.xlu0 %v1590_v8, %s3700_s9  ;;  %730 = vst.msk [vmem:[#allocation2 + $0x81] sm:$0xff] %vm317_vm1, %v652_v6  ;;  %v651_v10 = vmax.f32 %v525_v7, 0.0  ;;  %v540_v11 = vadd.f32 %v3442_v9, %v3904_v34  ;;  %v1401_v49 = vld [vmem:[#allocation2 + $0x51] sm:$0xff] }
  0xef   : > { %v3946_v13 = vld [vmem:[#allocation2 + $0x48] sm:$0xff]  ;;  %v3948_v14 = vld [vmem:[#allocation2 + $0x50] sm:$0xff]  ;;  %v534_v15 = vpop.f32.mrf.mxu0 }
  0xf0   : > { %1653 = vrot.lane.b32.xlu1 %v1589_v12, %s3700_s9  ;;  %729 = vst.msk [vmem:[#allocation2 + $0x79] sm:$0xff] %vm317_vm1, %v651_v10  ;;  %v654_v16 = vmax.f32 %v540_v11, 0.0  ;;  %v535_v17 = vadd.f32 %v3904_v34, %v534_v15  ;;  %792 = vst.msk [vmem:[#allocation3 + $0x38] sm:$0xff] %vm317_vm1, %v3948_v14  ;;  %v2172_v52 = vld [vmem:[#allocation2 + $0x52] sm:$0xff]  ;;  %v1978_v53 = vld [vmem:[#allocation2 + $0x49] sm:$0xff] }
  0xf1   : > { %791 = vst.msk [vmem:[#allocation3 + $0x30] sm:$0xff] %vm317_vm1, %v3946_v13  ;;  %v3445_v41 = vpop.f32.mrf.mxu0  ;;  %v1403_v61 = vld [vmem:[#allocation2 + $0x69] sm:$0xff] }
  0xf2   : > { %1080 = vrot.lane.b32.xlu0 %v1590_v8, %s3697_s21  ;;  %732 = vst.msk [vmem:[#allocation2 + $0x99] sm:$0xff] %vm317_vm1, %v654_v16  ;;  %v653_v18 = vmax.f32 %v535_v17, 0.0  ;;  %v550_v43 = vadd.f32 %v3445_v41, %v3904_v34  ;;  %v2174_v0 = vld [vmem:[#allocation2 + $0x6a] sm:$0xff] }
  0xf3   : > { %v3959_v19 = vld [vmem:[#allocation2 + $0x60] sm:$0xff]  ;;  %v3961_v20 = vld [vmem:[#allocation2 + $0x68] sm:$0xff]  ;;  %v544_v44 = vpop.f32.mrf.mxu0 }
  0xf4   : > { %1078 = vrot.lane.b32.xlu1 %v1589_v12, %s3697_s21  ;;  %731 = vst.msk [vmem:[#allocation2 + $0x91] sm:$0xff] %vm317_vm1, %v653_v18  ;;  %794 = vst.msk [vmem:[#allocation3 + $0x48] sm:$0xff] %vm317_vm1, %v3961_v20  ;;  %v656_v45 = vmax.f32 %v550_v43, 0.0  ;;  %v545_v46 = vadd.f32 %v3904_v34, %v544_v44  ;;  %v1980_v1 = vld [vmem:[#allocation2 + $0x61] sm:$0xff] }
  0xf5   : > { %793 = vst.msk [vmem:[#allocation3 + $0x40] sm:$0xff] %vm317_vm1, %v3959_v19  ;;  %v3448_v54 = vpop.f32.mrf.mxu0  ;;  %v2173_v8 = vld [vmem:[#allocation2 + $0x62] sm:$0xff] }
  0xf6   : > { %1267 = vrot.lane.b32.xlu0 %v1203_v59, %s3699_s8  ;;  %734 = vst.msk [vmem:[#allocation2 + $0xb1] sm:$0xff] %vm317_vm1, %v656_v45  ;;  %v655_v48 = vmax.f32 %v545_v46, 0.0  ;;  %v560_v55 = vadd.f32 %v3448_v54, %v3904_v34  ;;  %v2171_v59 = vld [vmem:[#allocation2 + $0x4a] sm:$0xff]  ;;  %v1405_v9 = vld [vmem:[#allocation2 + $0x81] sm:$0xff] }
  0xf7   : > { %v3970_v22 = vld [vmem:[#allocation2 + $0x78] sm:$0xff]  ;;  %v3972_v23 = vld [vmem:[#allocation2 + $0x80] sm:$0xff]  ;;  %v554_v56 = vpop.f32.mrf.mxu0 }
  0xf8   : > { %1466 = vrot.lane.b32.xlu1 %v1399_v21, %s3698_s29  ;;  %796 = vst.msk [vmem:[#allocation3 + $0x58] sm:$0xff] %vm317_vm1, %v3972_v23  ;;  %795 = vst.msk [vmem:[#allocation3 + $0x50] sm:$0xff] %vm317_vm1, %v3970_v22  ;;  %v658_v57 = vmax.f32 %v560_v55, 0.0  ;;  %v555_v58 = vadd.f32 %v3904_v34, %v554_v56  ;;  %v2175_v36 = vld [vmem:[#allocation2 + $0x7a] sm:$0xff] }
  0xf9   : > { %733 = vst.msk [vmem:[#allocation2 + $0xa9] sm:$0xff] %vm317_vm1, %v655_v48  ;;  %v1407_v40 = vld [vmem:[#allocation2 + $0x99] sm:$0xff] }
  0xfa   : > { %1460 = vrot.lane.b32.xlu0 %v819_v2, %s3698_s29  ;;  %736 = vst.msk [vmem:[#allocation2 + $0xc9] sm:$0xff] %vm317_vm1, %v658_v57  ;;  %v657_v60 = vmax.f32 %v555_v58, 0.0  ;;  %v3451_v2 = vpop.f32.mrf.mxu1  ;;  %v2178_v45 = vld [vmem:[#allocation2 + $0x9a] sm:$0xff] }
  0xfb   : > { %v3982_v27 = vld [vmem:[#allocation2 + $0x90] sm:$0xff]  ;;  %v3986_v28 = vld [vmem:[#allocation2 + $0x98] sm:$0xff] }
  0xfc   : > { %2235 = vrot.lane.b32.xlu1 %v2170_v24, %s3701_s13  ;;  %797 = vst.msk [vmem:[#allocation3 + $0x60] sm:$0xff] %vm317_vm1, %v3982_v27  ;;  %798 = vst.msk [vmem:[#allocation3 + $0x68] sm:$0xff] %vm317_vm1, %v3986_v28  ;;  %v564_v5 = vpop.f32.mrf.mxu1  ;;  %v1984_v54 = vld [vmem:[#allocation2 + $0x91] sm:$0xff] }
  0xfd   : > { %735 = vst.msk [vmem:[#allocation2 + $0xc1] sm:$0xff] %vm317_vm1, %v657_v60  ;;  %v565_v6 = vadd.f32 %v3904_v34, %v564_v5 }
  0xfe   : > { %2042 = vrot.lane.b32.xlu0 %v1399_v21, %s3702_s14 }
  0xff   : > { %v659_v7 = vmax.f32 %v565_v6, 0.0 }
 0x100   : > { %1847 = vrot.lane.b32.xlu1 %v3932_v3, %s3703_s15  ;;  %v4044_v50 = vld [vmem:[#allocation2 + $0xa8] sm:$0xff]  ;;  %v4046_v51 = vld [vmem:[#allocation2 + $0xb0] sm:$0xff] }
 0x101   : > { %799 = vst.msk [vmem:[#allocation3 + $0x70] sm:$0xff] %vm317_vm1, %v4044_v50  ;;  %800 = vst.msk [vmem:[#allocation3 + $0x78] sm:$0xff] %vm317_vm1, %v4046_v51 }
 0x102   : > { %891 = vrot.lane.b32.xlu0 %v1399_v21, %s3696_s20  ;;  %737 = vst.msk [vmem:[#allocation2 + $0xd9] sm:$0xff] %vm317_vm1, %v659_v7  ;;  %v1982_v21 = vld [vmem:[#allocation2 + $0x79] sm:$0xff] }
 0x104   : > { %1271 = vrot.lane.b32.xlu1 %v3932_v3, %s3699_s8  ;;  %v4076_v62 = vld [vmem:[#allocation2 + $0xc0] sm:$0xff]  ;;  %v4078_v63 = vld [vmem:[#allocation2 + $0xc8] sm:$0xff]  ;;  %v570_v3 = vadd.f32 %v3451_v2, %v3904_v34 }
 0x105   : > { %801 = vst.msk [vmem:[#allocation3 + $0x80] sm:$0xff] %vm317_vm1, %v4076_v62  ;;  %802 = vst.msk [vmem:[#allocation3 + $0x88] sm:$0xff] %vm317_vm1, %v4078_v63 }
 0x106   : > { %1659 = vrot.lane.b32.xlu0 %v2170_v24, %s3700_s9 }
 0x108   : > { %2040 = vrot.lane.b32.xlu1 %v1976_v37, %s3702_s14 }
 0x109   : > { %v4107_v10 = vld [vmem:[#allocation2 + $0xd8] sm:$0xff] }
 0x10a   : > { %1084 = vrot.lane.b32.xlu0 %v2170_v24, %s3697_s21  ;;  %803 = vst.msk [vmem:[#allocation3 + $0x90] sm:$0xff] %vm317_vm1, %v4107_v10  ;;  %v3454_v24 = vpop.f32.mrf.mxu1 }
 0x10b   : > { %v580_v26 = vadd.f32 %v3454_v24, %v3904_v34  ;;  %v1986_v24 = vld [vmem:[#allocation2 + $0xa9] sm:$0xff] }
 0x10c   : > { %1464 = vrot.lane.b32.xlu1 %v1976_v37, %s3698_s29  ;;  %v574_v30 = vpop.f32.mrf.mxu1 }
 0x10d   : > { %v575_v31 = vadd.f32 %v3904_v34, %v574_v30 }
 0x10e   : > { %1849 = vrot.lane.b32.xlu0 %v3934_v4, %s3703_s15  ;;  %v3457_v55 = vpop.f32.mrf.mxu1 }
 0x10f   : > { %v661_v33 = vmax.f32 %v575_v31, 0.0  ;;  %v590_v57 = vadd.f32 %v3457_v55, %v3904_v34 }
 0x110   : > { %2233 = vrot.lane.b32.xlu1 %v2169_v47, %s3701_s13 }
 0x111   : > { %739 = vst.msk [vmem:[#allocation2 + $0xf1] sm:$0xff] %vm317_vm1, %v661_v33  ;;  %v664_v60 = vmax.f32 %v590_v57, 0.0 }
 0x112   : > { %1273 = vrot.lane.b32.xlu0 %v3934_v4, %s3699_s8  ;;  %v660_v4 = vmax.f32 %v570_v3, 0.0 }
 0x113   : > { %742 = vst.msk [vmem:[#allocation2 + $0x111] sm:$0xff] %vm317_vm1, %v664_v60 }
 0x114   : > { %1082 = vrot.lane.b32.xlu1 %v2169_v47, %s3697_s21  ;;  %738 = vst.msk [vmem:[#allocation2 + $0xe1] sm:$0xff] %vm317_vm1, %v660_v4  ;;  %v2177_v4 = vld [vmem:[#allocation2 + $0x92] sm:$0xff] }
 0x116   : > { %889 = vrot.lane.b32.xlu0 %v1976_v37, %s3696_s20 }
 0x118   : > { %1470 = vrot.lane.b32.xlu1 %v1401_v49, %s3698_s29  ;;  %v4151_v42 = vld [vmem:[#allocation2 + $0xf0] sm:$0xff] }
 0x119   : > { %805 = vst.msk [vmem:[#allocation3 + $0xa0] sm:$0xff] %vm317_vm1, %v4151_v42 }
 0x11a   : > { %1657 = vrot.lane.b32.xlu0 %v2169_v47, %s3700_s9 }
 0x11b   : > { %v4109_v11 = vld [vmem:[#allocation2 + $0xe0] sm:$0xff] }
 0x11c   : > { %2239 = vrot.lane.b32.xlu1 %v2172_v52, %s3701_s13  ;;  %804 = vst.msk [vmem:[#allocation3 + $0x98] sm:$0xff] %vm317_vm1, %v4109_v11 }
 0x11e   : > { %2046 = vrot.lane.b32.xlu0 %v1401_v49, %s3702_s14 }
 0x120   : > { %1851 = vrot.lane.b32.xlu1 %v3946_v13, %s3703_s15 }
 0x122   : > { %895 = vrot.lane.b32.xlu0 %v1401_v49, %s3696_s20 }
 0x124   : > { %1275 = vrot.lane.b32.xlu1 %v3946_v13, %s3699_s8 }
 0x126   : > { %1663 = vrot.lane.b32.xlu0 %v2172_v52, %s3700_s9 }
 0x128   : > { %2044 = vrot.lane.b32.xlu1 %v1978_v53, %s3702_s14 }
 0x12a   : > { %1088 = vrot.lane.b32.xlu0 %v2172_v52, %s3697_s21 }
 0x12c   : > { %1468 = vrot.lane.b32.xlu1 %v1978_v53, %s3698_s29 }
 0x12e   : > { %1853 = vrot.lane.b32.xlu0 %v3948_v14, %s3703_s15 }
 0x130   : > { %2237 = vrot.lane.b32.xlu1 %v2171_v59, %s3701_s13 }
 0x132   : > { %1277 = vrot.lane.b32.xlu0 %v3948_v14, %s3699_s8  ;;  %v2176_v14 = vld [vmem:[#allocation2 + $0x82] sm:$0xff] }
 0x134   : > { %1086 = vrot.lane.b32.xlu1 %v2171_v59, %s3697_s21 }
 0x136   : > { %893 = vrot.lane.b32.xlu0 %v1978_v53, %s3696_s20 }
 0x138   : > { %1474 = vrot.lane.b32.xlu1 %v1403_v61, %s3698_s29 }
 0x13a   : > { %1661 = vrot.lane.b32.xlu0 %v2171_v59, %s3700_s9 }
 0x13c   : > { %2243 = vrot.lane.b32.xlu1 %v2174_v0, %s3701_s13 }
 0x13e   : > { %2050 = vrot.lane.b32.xlu0 %v1403_v61, %s3702_s14 }
 0x140   : > { %1855 = vrot.lane.b32.xlu1 %v3959_v19, %s3703_s15 }
 0x142   : > { %899 = vrot.lane.b32.xlu0 %v1403_v61, %s3696_s20  ;;  %v584_v61 = vpop.f32.mrf.mxu1 }
 0x144   : > { %1279 = vrot.lane.b32.xlu1 %v3959_v19, %s3699_s8 }
 0x146   : > { %1667 = vrot.lane.b32.xlu0 %v2174_v0, %s3700_s9 }
 0x148   : > { %2048 = vrot.lane.b32.xlu1 %v1980_v1, %s3702_s14 }
 0x14a   : > { %1092 = vrot.lane.b32.xlu0 %v2174_v0, %s3697_s21  ;;  %v585_v0 = vadd.f32 %v3904_v34, %v584_v61 }
 0x14c   : > { %1472 = vrot.lane.b32.xlu1 %v1980_v1, %s3698_s29  ;;  %v663_v2 = vmax.f32 %v585_v0, 0.0 }
 0x14e   : > { %1857 = vrot.lane.b32.xlu0 %v3961_v20, %s3703_s15  ;;  %741 = vst.msk [vmem:[#allocation2 + $0x109] sm:$0xff] %vm317_vm1, %v663_v2 }
 0x150   : > { %2241 = vrot.lane.b32.xlu1 %v2173_v8, %s3701_s13 }
 0x152   : > { %1281 = vrot.lane.b32.xlu0 %v3961_v20, %s3699_s8 }
 0x154   : > { %1090 = vrot.lane.b32.xlu1 %v2173_v8, %s3697_s21 }
 0x156   : > { %897 = vrot.lane.b32.xlu0 %v1980_v1, %s3696_s20 }
 0x158   : > { %v1463_v12 = vpop.permute.xlu0 %1462  ;;  %1478 = vrot.lane.b32.xlu1 %v1405_v9, %s3698_s29 }
 0x15a   : > { %v1270_v13 = vpop.permute.xlu1 %1269  ;;  %1665 = vrot.lane.b32.xlu0 %v2173_v8, %s3700_s9  ;;  %v1409_v8 = vld [vmem:[#allocation2 + $0xb1] sm:$0xff] }
 0x15b   : > { %1365 = vst.msk [vmem:[#allocation3 + $0x8] sm:$0xff] %vm1363_vm6, %v1270_v13  ;;  %v4203_v13 = vld [vmem:[#allocation2 + $0x110] sm:$0xff] }
 0x15c   : > { %v888_v15 = vpop.permute.xlu0 %887  ;;  %2247 = vrot.lane.b32.xlu1 %v2176_v14, %s3701_s13  ;;  %1558 = vst.msk [vmem:[#allocation3 + $0x8] sm:$0xff] %vm1556_vm7, %v1463_v12  ;;  %v4201_v12 = vld [vmem:[#allocation2 + $0x108] sm:$0xff] }
 0x15d   : > { %981 = vst.msk [vmem:[#allocation3 + $0x18] sm:$0xff] %vm977_vm4, %v888_v15  ;;  %v2180_v15 = vld [vmem:[#allocation2 + $0xb2] sm:$0xff] }
 0x15e   : > { %2054 = vrot.lane.b32.xlu0 %v1405_v9, %s3702_s14  ;;  %v886_v16 = vpop.permute.xlu1 %885  ;;  %807 = vst.msk [vmem:[#allocation3 + $0xb0] sm:$0xff] %vm317_vm1, %v4201_v12  ;;  %808 = vst.msk [vmem:[#allocation3 + $0xb8] sm:$0xff] %vm317_vm1, %v4203_v13 }
 0x15f   : > { %980 = vst.msk [vmem:[#allocation3 + $0x10] sm:$0xff] %vm977_vm4, %v886_v16 }
 0x160   : > { %v1656_v17 = vpop.permute.xlu0 %1655  ;;  %1859 = vrot.lane.b32.xlu1 %v3970_v22, %s3703_s15 }
 0x161   : > { %1751 = vst.msk [vmem:[#allocation3 + $0x8] sm:$0xff] %vm1749_vm8, %v1656_v17 }
 0x162   : > { %903 = vrot.lane.b32.xlu0 %v1405_v9, %s3696_s20  ;;  %v1654_v18 = vpop.permute.xlu1 %1653 }
 0x164   : > { %v1081_v19 = vpop.permute.xlu0 %1080  ;;  %1283 = vrot.lane.b32.xlu1 %v3970_v22, %s3699_s8  ;;  %v662_v22 = vmax.f32 %v580_v26, 0.0  ;;  %v3460_v26 = vpop.f32.mrf.mxu1 }
 0x165   : > { %1174 = vst.msk [vmem:[#allocation3 + $0x18] sm:$0xff] %vm1170_vm5, %v1081_v19  ;;  %v600_v30 = vadd.f32 %v3460_v26, %v3904_v34 }
 0x166   : > { %1671 = vrot.lane.b32.xlu0 %v2176_v14, %s3700_s9  ;;  %v1079_v20 = vpop.permute.xlu1 %1078  ;;  %740 = vst.msk [vmem:[#allocation2 + $0xf9] sm:$0xff] %vm317_vm1, %v662_v22  ;;  %v594_v31 = vpop.f32.mrf.mxu1 }
 0x167   : > { %1173 = vst.msk [vmem:[#allocation3 + $0x10] sm:$0xff] %vm1170_vm5, %v1079_v20  ;;  %v666_v33 = vmax.f32 %v600_v30, 0.0  ;;  %v2763_v30 = vld [vmem:[%s4960_s5] sm:$0xf] }
 0x168   : > { %v1268_v25 = vpop.permute.xlu0 %1267  ;;  %2052 = vrot.lane.b32.xlu1 %v1982_v21, %s3702_s14  ;;  %3531 = vmatprep.subr.msk.mxu0 %vm414_vm0, %v2763_v30 }
 0x169   : > { %1364 = vst.msk [vmem:[#allocation3] sm:$0xff] %vm1363_vm6, %v1268_v25  ;;  %3532 = vmatpush3.msk.msra.mxu0 %vm414_vm0, %v2763_v30 }
 0x16a   : > { %1096 = vrot.lane.b32.xlu0 %v2176_v14, %s3697_s21  ;;  %v1467_v29 = vpop.permute.xlu1 %1466  ;;  %744 = vst.msk [vmem:[#allocation2 + $0x129] sm:$0xff] %vm317_vm1, %v666_v33 }
 0x16c   : > { %v1461_v32 = vpop.permute.xlu0 %1460  ;;  %1476 = vrot.lane.b32.xlu1 %v1982_v21, %s3698_s29 }
 0x16d   : > { %1557 = vst.msk [vmem:[#allocation3] sm:$0xff] %vm1556_vm7, %v1461_v32  ;;  %v4153_v43 = vld [vmem:[#allocation2 + $0xf8] sm:$0xff] }
 0x16e   : > { %1750 = vst.msk [vmem:[#allocation3] sm:$0xff] %vm1749_vm8, %v1654_v18  ;;  %1861 = vrot.lane.b32.xlu0 %v3972_v23, %s3703_s15  ;;  %v2236_v35 = vpop.permute.xlu1 %2235 }
 0x16f   : > { %806 = vst.msk [vmem:[#allocation3 + $0xa8] sm:$0xff] %vm317_vm1, %v4153_v43 }
 0x170   : > { %v2043_v37 = vpop.permute.xlu0 %2042  ;;  %2245 = vrot.lane.b32.xlu1 %v2175_v36, %s3701_s13 }
 0x172   : > { %1285 = vrot.lane.b32.xlu0 %v3972_v23, %s3699_s8  ;;  %v1848_v38 = vpop.permute.xlu1 %1847 }
 0x173   : > { %1944 = vst.msk [vmem:[#allocation3] sm:$0xff] %vm1943_vm9, %v1848_v38  ;;  %v2179_v38 = vld [vmem:[#allocation2 + $0xaa] sm:$0xff] }
 0x174   : > { %v892_v39 = vpop.permute.xlu0 %891  ;;  %1094 = vrot.lane.b32.xlu1 %v2175_v36, %s3697_s21 }
 0x175   : > { %983 = vst.msk [vmem:[#allocation3 + $0x28] sm:$0xff] %vm977_vm4, %v892_v39 }
 0x176   : > { %901 = vrot.lane.b32.xlu0 %v1982_v21, %s3696_s20  ;;  %v1272_v41 = vpop.permute.xlu1 %1271 }
 0x177   : > { %1366 = vst.msk [vmem:[#allocation3 + $0x10] sm:$0xff] %vm1363_vm6, %v1272_v41 }
 0x178   : > { %v1660_v23 = vpop.permute.xlu0 %1659  ;;  %1482 = vrot.lane.b32.xlu1 %v1407_v40, %s3698_s29 }
 0x17a   : > { %1669 = vrot.lane.b32.xlu0 %v2175_v36, %s3700_s9  ;;  %v2041_v44 = vpop.permute.xlu1 %2040 }
 0x17b   : > { %2137 = vst.msk [vmem:[#allocation3] sm:$0xff] %vm2136_vm10, %v2041_v44 }
 0x17c   : > { %v1085_v46 = vpop.permute.xlu0 %1084  ;;  %2251 = vrot.lane.b32.xlu1 %v2178_v45, %s3701_s13 }
 0x17d   : > { %1176 = vst.msk [vmem:[#allocation3 + $0x28] sm:$0xff] %vm1170_vm5, %v1085_v46 }
 0x17e   : > { %2058 = vrot.lane.b32.xlu0 %v1407_v40, %s3702_s14  ;;  %v1465_v47 = vpop.permute.xlu1 %1464 }
 0x17f   : > { %1559 = vst.msk [vmem:[#allocation3 + $0x10] sm:$0xff] %vm1556_vm7, %v1465_v47 }
 0x180   : > { %v1850_v48 = vpop.permute.xlu0 %1849  ;;  %1863 = vrot.lane.b32.xlu1 %v3982_v27, %s3703_s15 }
 0x181   : > { %1945 = vst.msk [vmem:[#allocation3 + $0x8] sm:$0xff] %vm1943_vm9, %v1850_v48  ;;  %v4268_v48 = vld [vmem:[#allocation2 + $0xca] sm:$0xff] }
 0x182   : > { %2138 = vst.msk [vmem:[#allocation3 + $0x8] sm:$0xff] %vm2136_vm10, %v2043_v37  ;;  %907 = vrot.lane.b32.xlu0 %v1407_v40, %s3696_s20  ;;  %v2234_v49 = vpop.permute.xlu1 %2233 }
 0x183   : > { %2331 = vst.msk [vmem:[#allocation3 + $0x8] sm:$0xff] %vm2329_vm11, %v2236_v35  ;;  %2330 = vst.msk [vmem:[#allocation3] sm:$0xff] %vm2329_vm11, %v2234_v49  ;;  %v595_v35 = vadd.f32 %v3904_v34, %v594_v31 }
 0x184   : > { %v1274_v52 = vpop.permute.xlu0 %1273  ;;  %1287 = vrot.lane.b32.xlu1 %v3982_v27, %s3699_s8 }
 0x185   : > { %1367 = vst.msk [vmem:[#allocation3 + $0x18] sm:$0xff] %vm1363_vm6, %v1274_v52  ;;  %v665_v37 = vmax.f32 %v595_v35, 0.0  ;;  %v3463_v52 = vpop.f32.mrf.mxu1 }
 0x186   : > { %1560 = vst.msk [vmem:[#allocation3 + $0x18] sm:$0xff] %vm1556_vm7, %v1467_v29  ;;  %1675 = vrot.lane.b32.xlu0 %v2178_v45, %s3700_s9  ;;  %v1083_v53 = vpop.permute.xlu1 %1082 }
 0x187   : > { %1753 = vst.msk [vmem:[#allocation3 + $0x18] sm:$0xff] %vm1749_vm8, %v1660_v23  ;;  %v4252_v23 = vld [vmem:[#allocation2 + $0xc9] sm:$0xff]  ;;  %v604_v55 = vpop.f32.mrf.mxu1 }
 0x188   : > { %v890_v56 = vpop.permute.xlu0 %889  ;;  %2056 = vrot.lane.b32.xlu1 %v1984_v54, %s3702_s14  ;;  %743 = vst.msk [vmem:[#allocation2 + $0x121] sm:$0xff] %vm317_vm1, %v665_v37 }
 0x189   : > { %982 = vst.msk [vmem:[#allocation3 + $0x20] sm:$0xff] %vm977_vm4, %v890_v56 }
 0x18a   : > { %1175 = vst.msk [vmem:[#allocation3 + $0x20] sm:$0xff] %vm1170_vm5, %v1083_v53  ;;  %1100 = vrot.lane.b32.xlu0 %v2178_v45, %s3697_s21  ;;  %v1471_v27 = vpop.permute.xlu1 %1470  ;;  %v2362_v58 = vld [vmem:[#allocation3] sm:$0xff]  ;;  %v2363_v59 = vld [vmem:[#allocation3 + $0x8] sm:$0xff] }
 0x18b   : > { %3483 = vmatprep.mubr.msk.f32.mxu1 %vm2406_vm12, %v2362_v58  ;;  %v3466_v58 = vpop.f32.mrf.mxu1 }
 0x18c   : > { %v1658_v1 = vpop.permute.xlu0 %1657  ;;  %1480 = vrot.lane.b32.xlu1 %v1984_v54, %s3698_s29  ;;  %3484 = vmatmul.mubr.msk.f32.vlgmr.msra.gmra.mxu1 %vm2406_vm12, %v2363_v59  ;;  %v620_v61 = vadd.f32 %v3466_v58, %v3904_v34 }
 0x18d   : > { %1752 = vst.msk [vmem:[#allocation3 + $0x10] sm:$0xff] %vm1749_vm8, %v1658_v1  ;;  %v614_v0 = vpop.f32.mrf.mxu1 }
 0x18e   : > { %1865 = vrot.lane.b32.xlu0 %v3986_v28, %s3703_s15  ;;  %v2240_v3 = vpop.permute.xlu1 %2239  ;;  %v670_v2 = vmax.f32 %v620_v61, 0.0 }
 0x18f   : > { %v4256_v45 = vld [vmem:[#allocation2 + $0x120] sm:$0xff]  ;;  %v4258_v46 = vld [vmem:[#allocation2 + $0x128] sm:$0xff] }
 0x190   : > { %v2047_v5 = vpop.permute.xlu0 %2046  ;;  %2249 = vrot.lane.b32.xlu1 %v2177_v4, %s3701_s13  ;;  %809 = vst.msk [vmem:[#allocation3 + $0xc0] sm:$0xff] %vm317_vm1, %v4256_v45  ;;  %810 = vst.msk [vmem:[#allocation3 + $0xc8] sm:$0xff] %vm317_vm1, %v4258_v46 }
 0x191   : > { %748 = vst.msk [vmem:[#allocation2 + $0x159] sm:$0xff] %vm317_vm1, %v670_v2 }
 0x192   : > { %1289 = vrot.lane.b32.xlu0 %v3986_v28, %s3699_s8  ;;  %v1852_v6 = vpop.permute.xlu1 %1851 }
 0x193   : > { %1946 = vst.msk [vmem:[#allocation3 + $0x10] sm:$0xff] %vm1943_vm9, %v1852_v6  ;;  %v3469_v6 = vpop.f32.mrf.mxu1 }
 0x194   : > { %v896_v7 = vpop.permute.xlu0 %895  ;;  %1098 = vrot.lane.b32.xlu1 %v2177_v4, %s3697_s21 }
 0x195   : > { %985 = vst.msk [vmem:[#allocation3 + $0x38] sm:$0xff] %vm977_vm4, %v896_v7  ;;  %v630_v7 = vadd.f32 %v3469_v6, %v3904_v34  ;;  %v1993_v6 = vld [vmem:[#allocation2 + $0xf9] sm:$0xff] }
 0x196   : > { %905 = vrot.lane.b32.xlu0 %v1984_v54, %s3696_s20  ;;  %v1276_v9 = vpop.permute.xlu1 %1275  ;;  %v610_v54 = vadd.f32 %v3463_v52, %v3904_v34 }
 0x197   : > { %1368 = vst.msk [vmem:[#allocation3 + $0x20] sm:$0xff] %vm1363_vm6, %v1276_v9  ;;  %v624_v9 = vpop.f32.mrf.mxu1 }
 0x198   : > { %v1664_v28 = vpop.permute.xlu0 %1663  ;;  %1486 = vrot.lane.b32.xlu1 %v1409_v8, %s3698_s29  ;;  %v668_v57 = vmax.f32 %v610_v54, 0.0 }
 0x19a   : > { %1673 = vrot.lane.b32.xlu0 %v2177_v4, %s3700_s9  ;;  %v2045_v14 = vpop.permute.xlu1 %2044  ;;  %746 = vst.msk [vmem:[#allocation2 + $0x141] sm:$0xff] %vm317_vm1, %v668_v57 }
 0x19b   : > { %2139 = vst.msk [vmem:[#allocation3 + $0x10] sm:$0xff] %vm2136_vm10, %v2045_v14 }
 0x19c   : > { %v1089_v16 = vpop.permute.xlu0 %1088  ;;  %2255 = vrot.lane.b32.xlu1 %v2180_v15, %s3701_s13 }
 0x19d   : > { %1178 = vst.msk [vmem:[#allocation3 + $0x38] sm:$0xff] %vm1170_vm5, %v1089_v16 }
 0x19e   : > { %2062 = vrot.lane.b32.xlu0 %v1409_v8, %s3702_s14  ;;  %v1469_v17 = vpop.permute.xlu1 %1468 }
 0x19f   : > { %1561 = vst.msk [vmem:[#allocation3 + $0x20] sm:$0xff] %vm1556_vm7, %v1469_v17 }
 0x1a0   : > { %v1854_v18 = vpop.permute.xlu0 %1853  ;;  %1867 = vrot.lane.b32.xlu1 %v4044_v50, %s3703_s15 }
 0x1a1   : > { %1947 = vst.msk [vmem:[#allocation3 + $0x18] sm:$0xff] %vm1943_vm9, %v1854_v18  ;;  %v3472_v18 = vpop.f32.mrf.mxu1 }
 0x1a2   : > { %2140 = vst.msk [vmem:[#allocation3 + $0x18] sm:$0xff] %vm2136_vm10, %v2047_v5  ;;  %911 = vrot.lane.b32.xlu0 %v1409_v8, %s3696_s20  ;;  %v2238_v19 = vpop.permute.xlu1 %2237 }
 0x1a3   : > { %2333 = vst.msk [vmem:[#allocation3 + $0x18] sm:$0xff] %vm2329_vm11, %v2240_v3  ;;  %2332 = vst.msk [vmem:[#allocation3 + $0x10] sm:$0xff] %vm2329_vm11, %v2238_v19  ;;  %v615_v3 = vadd.f32 %v3904_v34, %v614_v0 }
 0x1a4   : > { %v1278_v20 = vpop.permute.xlu0 %1277  ;;  %1291 = vrot.lane.b32.xlu1 %v4044_v50, %s3699_s8 }
 0x1a5   : > { %1369 = vst.msk [vmem:[#allocation3 + $0x28] sm:$0xff] %vm1363_vm6, %v1278_v20  ;;  %v669_v5 = vmax.f32 %v615_v3, 0.0  ;;  %v640_v20 = vadd.f32 %v3472_v18, %v3904_v34  ;;  %v1992_v3 = vld [vmem:[#allocation2 + $0xf1] sm:$0xff] }
 0x1a6   : > { %1562 = vst.msk [vmem:[#allocation3 + $0x28] sm:$0xff] %vm1556_vm7, %v1471_v27  ;;  %1679 = vrot.lane.b32.xlu0 %v2180_v15, %s3700_s9  ;;  %v1087_v21 = vpop.permute.xlu1 %1086  ;;  %v605_v27 = vadd.f32 %v3904_v34, %v604_v55  ;;  %v2184_v55 = vld [vmem:[#allocation2 + $0xe2] sm:$0xff] }
 0x1a7   : > { %1755 = vst.msk [vmem:[#allocation3 + $0x28] sm:$0xff] %vm1749_vm8, %v1664_v28  ;;  %v672_v28 = vmax.f32 %v630_v7, 0.0  ;;  %v674_v26 = vmax.f32 %v640_v20, 0.0  ;;  %v2185_v7 = vld [vmem:[#allocation2 + $0xf2] sm:$0xff] }
 0x1a8   : > { %v894_v25 = vpop.permute.xlu0 %893  ;;  %2060 = vrot.lane.b32.xlu1 %v1986_v24, %s3702_s14  ;;  %v667_v60 = vmax.f32 %v605_v27, 0.0  ;;  %747 = vst.msk [vmem:[#allocation2 + $0x151] sm:$0xff] %vm317_vm1, %v669_v5 }
 0x1a9   : > { %984 = vst.msk [vmem:[#allocation3 + $0x30] sm:$0xff] %vm977_vm4, %v894_v25 }
 0x1aa   : > { %1177 = vst.msk [vmem:[#allocation3 + $0x30] sm:$0xff] %vm1170_vm5, %v1087_v21  ;;  %1104 = vrot.lane.b32.xlu0 %v2180_v15, %s3697_s21  ;;  %v4234_v50 = vpop.permute.xlu1 %1474  ;;  %v2364_v29 = vld [vmem:[#allocation3 + $0x10] sm:$0xff]  ;;  %v2365_v22 = vld [vmem:[#allocation3 + $0x18] sm:$0xff] }
 0x1ab   : > { %3486 = vmatprep.mubr.msk.f32.mxu1 %vm2406_vm12, %v2364_v29  ;;  %745 = vst.msk [vmem:[#allocation2 + $0x139] sm:$0xff] %vm317_vm1, %v667_v60  ;;  %750 = vst.msk [vmem:[#allocation2 + $0x171] sm:$0xff] %vm317_vm1, %v672_v28  ;;  %v1603_v21 = vld [vmem:[#allocation2 + $0xc2] sm:$0xff] }
 0x1ac   : > { %v1662_v32 = vpop.permute.xlu0 %1661  ;;  %1484 = vrot.lane.b32.xlu1 %v1986_v24, %s3698_s29  ;;  %3487 = vmatmul.mubr.msk.f32.gmra.mxu1 %vm2406_vm12, %v2365_v22  ;;  %752 = vst.msk [vmem:[#allocation2 + $0x189] sm:$0xff] %vm317_vm1, %v674_v26 }
 0x1ad   : > { %1754 = vst.msk [vmem:[#allocation3 + $0x20] sm:$0xff] %vm1749_vm8, %v1662_v32 }
 0x1ae   : > { %1869 = vrot.lane.b32.xlu0 %v4046_v51, %s3703_s15  ;;  %v2244_v36 = vpop.permute.xlu1 %2243 }
 0x1af   : > { %v4382_v60 = vld [vmem:[#allocation2 + $0x158] sm:$0xff] }
 0x1b0   : > { %v2051_v39 = vpop.permute.xlu0 %2050  ;;  %2253 = vrot.lane.b32.xlu1 %v2179_v38, %s3701_s13  ;;  %814 = vst.msk [vmem:[#allocation3 + $0xe8] sm:$0xff] %vm317_vm1, %v4382_v60 }
 0x1b2   : > { %1293 = vrot.lane.b32.xlu0 %v4046_v51, %s3699_s8  ;;  %v1856_v40 = vpop.permute.xlu1 %1855  ;;  %v4332_v33 = vld [vmem:[#allocation2 + $0x138] sm:$0xff]  ;;  %v4334_v35 = vld [vmem:[#allocation2 + $0x140] sm:$0xff] }
 0x1b3   : > { %1948 = vst.msk [vmem:[#allocation3 + $0x20] sm:$0xff] %vm1943_vm9, %v1856_v40  ;;  %v1990_v40 = vld [vmem:[#allocation2 + $0xd9] sm:$0xff] }
 0x1b4   : > { %v900_v41 = vpop.permute.xlu0 %899  ;;  %1102 = vrot.lane.b32.xlu1 %v2179_v38, %s3697_s21  ;;  %811 = vst.msk [vmem:[#allocation3 + $0xd0] sm:$0xff] %vm317_vm1, %v4332_v33  ;;  %812 = vst.msk [vmem:[#allocation3 + $0xd8] sm:$0xff] %vm317_vm1, %v4334_v35 }
 0x1b5   : > { %987 = vst.msk [vmem:[#allocation3 + $0x48] sm:$0xff] %vm977_vm4, %v900_v41 }
 0x1b6   : > { %909 = vrot.lane.b32.xlu0 %v1986_v24, %s3696_s20  ;;  %v1280_v44 = vpop.permute.xlu1 %1279  ;;  %v634_v24 = vpop.f32.mrf.mxu1 }
 0x1b7   : > { %1370 = vst.msk [vmem:[#allocation3 + $0x30] sm:$0xff] %vm1363_vm6, %v1280_v44  ;;  %v1991_v44 = vld [vmem:[#allocation2 + $0xe1] sm:$0xff] }
 0x1b8   : > { %v1668_v51 = vpop.permute.xlu0 %1667  ;;  %1490 = vrot.lane.b32.xlu1 %v4252_v23, %s3698_s29 }
 0x1ba   : > { %1677 = vrot.lane.b32.xlu0 %v2179_v38, %s3700_s9  ;;  %v2049_v47 = vpop.permute.xlu1 %2048 }
 0x1bb   : > { %2141 = vst.msk [vmem:[#allocation3 + $0x20] sm:$0xff] %vm2136_vm10, %v2049_v47 }
 0x1bc   : > { %v1093_v49 = vpop.permute.xlu0 %1092  ;;  %2259 = vrot.lane.b32.xlu1 %v4268_v48, %s3701_s13 }
 0x1bd   : > { %1180 = vst.msk [vmem:[#allocation3 + $0x48] sm:$0xff] %vm1170_vm5, %v1093_v49 }
 0x1be   : > { %2066 = vrot.lane.b32.xlu0 %v4252_v23, %s3702_s14  ;;  %v1473_v53 = vpop.permute.xlu1 %1472 }
 0x1bf   : > { %1563 = vst.msk [vmem:[#allocation3 + $0x30] sm:$0xff] %vm1556_vm7, %v1473_v53 }
 0x1c0   : > { %v1858_v56 = vpop.permute.xlu0 %1857  ;;  %1871 = vrot.lane.b32.xlu1 %v4076_v62, %s3703_s15 }
 0x1c1   : > { %1949 = vst.msk [vmem:[#allocation3 + $0x28] sm:$0xff] %vm1943_vm9, %v1858_v56 }
 0x1c2   : > { %2142 = vst.msk [vmem:[#allocation3 + $0x28] sm:$0xff] %vm2136_vm10, %v2051_v39  ;;  %1873 = vrot.lane.b32.xlu0 %v4078_v63, %s3703_s15  ;;  %v2242_v59 = vpop.permute.xlu1 %2241 }
 0x1c3   : > { %2335 = vst.msk [vmem:[#allocation3 + $0x28] sm:$0xff] %vm2329_vm11, %v2244_v36  ;;  %2334 = vst.msk [vmem:[#allocation3 + $0x20] sm:$0xff] %vm2329_vm11, %v2242_v59  ;;  %v4380_v59 = vld [vmem:[#allocation2 + $0x150] sm:$0xff] }
 0x1c4   : > { %v1282_v1 = vpop.permute.xlu0 %1281  ;;  %1295 = vrot.lane.b32.xlu1 %v4076_v62, %s3699_s8  ;;  %v1988_v62 = vld [vmem:[#allocation2 + $0xc1] sm:$0xff]  ;;  %813 = vst.msk [vmem:[#allocation3 + $0xe0] sm:$0xff] %vm317_vm1, %v4380_v59 }
 0x1c5   : > { %1371 = vst.msk [vmem:[#allocation3 + $0x38] sm:$0xff] %vm1363_vm6, %v1282_v1 }
 0x1c6   : > { %1564 = vst.msk [vmem:[#allocation3 + $0x38] sm:$0xff] %vm1556_vm7, %v4234_v50  ;;  %1297 = vrot.lane.b32.xlu0 %v4078_v63, %s3699_s8  ;;  %v1091_v4 = vpop.permute.xlu1 %1090  ;;  %v625_v63 = vadd.f32 %v3904_v34, %v624_v9  ;;  %v635_v50 = vadd.f32 %v3904_v34, %v634_v24 }
 0x1c7   : > { %1757 = vst.msk [vmem:[#allocation3 + $0x38] sm:$0xff] %vm1749_vm8, %v1668_v51 }
 0x1c8   : > { %v898_v8 = vpop.permute.xlu0 %897  ;;  %2064 = vrot.lane.b32.xlu1 %v1988_v62, %s3702_s14  ;;  %v671_v17 = vmax.f32 %v625_v63, 0.0  ;;  %v673_v22 = vmax.f32 %v635_v50, 0.0 }
 0x1c9   : > { %986 = vst.msk [vmem:[#allocation3 + $0x40] sm:$0xff] %vm977_vm4, %v898_v8 }
 0x1ca   : > { %1179 = vst.msk [vmem:[#allocation3 + $0x40] sm:$0xff] %vm1170_vm5, %v1091_v4  ;;  %913 = vrot.lane.b32.xlu0 %v1988_v62, %s3696_s20  ;;  %v4306_v14 = vpop.permute.xlu1 %1478  ;;  %v2366_v15 = vld [vmem:[#allocation3 + $0x20] sm:$0xff]  ;;  %v2367_v16 = vld [vmem:[#allocation3 + $0x28] sm:$0xff] }
 0x1cb   : > { %3489 = vmatprep.mubr.msk.f32.mxu1 %vm2406_vm12, %v2366_v15  ;;  %749 = vst.msk [vmem:[#allocation2 + $0x169] sm:$0xff] %vm317_vm1, %v671_v17  ;;  %751 = vst.msk [vmem:[#allocation2 + $0x181] sm:$0xff] %vm317_vm1, %v673_v22  ;;  %v2186_v15 = vld [vmem:[#allocation2 + $0xfa] sm:$0xff] }
 0x1cc   : > { %v1666_v19 = vpop.permute.xlu0 %1665  ;;  %1488 = vrot.lane.b32.xlu1 %v1988_v62, %s3698_s29  ;;  %3490 = vmatmul.mubr.msk.f32.gmra.mxu1 %vm2406_vm12, %v2367_v16 }
 0x1cd   : > { %1756 = vst.msk [vmem:[#allocation3 + $0x30] sm:$0xff] %vm1749_vm8, %v1666_v19 }
 0x1ce   : > { %1681 = vrot.lane.b32.xlu0 %v1603_v21, %s3700_s9  ;;  %v2248_v25 = vpop.permute.xlu1 %2247 }
 0x1d0   : > { %v2055_v29 = vpop.permute.xlu0 %2054  ;;  %2257 = vrot.lane.b32.xlu1 %v1603_v21, %s3701_s13 }
 0x1d2   : > { %915 = vrot.lane.b32.xlu0 %v4252_v23, %s3696_s20  ;;  %v1860_v31 = vpop.permute.xlu1 %1859  ;;  %v4426_v20 = vld [vmem:[#allocation2 + $0x168] sm:$0xff] }
 0x1d3   : > { %1950 = vst.msk [vmem:[#allocation3 + $0x30] sm:$0xff] %vm1943_vm9, %v1860_v31  ;;  %v1995_v31 = vld [vmem:[#allocation2 + $0x111] sm:$0xff] }
 0x1d4   : > { %v904_v34 = vpop.permute.xlu0 %903  ;;  %1106 = vrot.lane.b32.xlu1 %v1603_v21, %s3697_s21  ;;  %v4428_v21 = vld [vmem:[#allocation2 + $0x170] sm:$0xff]  ;;  %815 = vst.msk [vmem:[#allocation3 + $0xf0] sm:$0xff] %vm317_vm1, %v4426_v20 }
 0x1d5   : > { %989 = vst.msk [vmem:[#allocation3 + $0x58] sm:$0xff] %vm977_vm4, %v904_v34 }
 0x1d6   : > { %1683 = vrot.lane.b32.xlu0 %v4268_v48, %s3700_s9  ;;  %v1284_v32 = vpop.permute.xlu1 %1283  ;;  %816 = vst.msk [vmem:[#allocation3 + $0xf8] sm:$0xff] %vm317_vm1, %v4428_v21 }
 0x1d7   : > { %1372 = vst.msk [vmem:[#allocation3 + $0x40] sm:$0xff] %vm1363_vm6, %v1284_v32  ;;  %v2187_v32 = vld [vmem:[#allocation2 + $0x10a] sm:$0xff] }
 0x1d8   : > { %v1672_v36 = vpop.permute.xlu0 %1671  ;;  %1875 = vrot.lane.b32.xlu1 %v4107_v10, %s3703_s15 }
 0x1da   : > { %1108 = vrot.lane.b32.xlu0 %v4268_v48, %s3697_s21  ;;  %v2053_v37 = vpop.permute.xlu1 %2052 }
 0x1db   : > { %2143 = vst.msk [vmem:[#allocation3 + $0x30] sm:$0xff] %vm2136_vm10, %v2053_v37 }
 0x1dc   : > { %v1097_v38 = vpop.permute.xlu0 %1096  ;;  %1299 = vrot.lane.b32.xlu1 %v4107_v10, %s3699_s8 }
 0x1dd   : > { %1182 = vst.msk [vmem:[#allocation3 + $0x58] sm:$0xff] %vm1170_vm5, %v1097_v38 }
 0x1de   : > { %1877 = vrot.lane.b32.xlu0 %v4109_v11, %s3703_s15  ;;  %v1477_v39 = vpop.permute.xlu1 %1476 }
 0x1df   : > { %1565 = vst.msk [vmem:[#allocation3 + $0x40] sm:$0xff] %vm1556_vm7, %v1477_v39 }
 0x1e0   : > { %v1862_v41 = vpop.permute.xlu0 %1861  ;;  %2068 = vrot.lane.b32.xlu1 %v1990_v40, %s3702_s14 }
 0x1e1   : > { %1951 = vst.msk [vmem:[#allocation3 + $0x38] sm:$0xff] %vm1943_vm9, %v1862_v41  ;;  %v2188_v41 = vld [vmem:[#allocation2 + $0x112] sm:$0xff] }
 0x1e2   : > { %2144 = vst.msk [vmem:[#allocation3 + $0x38] sm:$0xff] %vm2136_vm10, %v2055_v29  ;;  %1301 = vrot.lane.b32.xlu0 %v4109_v11, %s3699_s8  ;;  %v2246_v10 = vpop.permute.xlu1 %2245  ;;  %v2183_v11 = vld [vmem:[#allocation2 + $0xda] sm:$0xff]  ;;  %v1994_v29 = vld [vmem:[#allocation2 + $0x109] sm:$0xff] }
 0x1e3   : > { %2337 = vst.msk [vmem:[#allocation3 + $0x38] sm:$0xff] %vm2329_vm11, %v2248_v25  ;;  %2336 = vst.msk [vmem:[#allocation3 + $0x30] sm:$0xff] %vm2329_vm11, %v2246_v10 }
 0x1e4   : > { %v1286_v23 = vpop.permute.xlu0 %1285  ;;  %1492 = vrot.lane.b32.xlu1 %v1990_v40, %s3698_s29 }
 0x1e5   : > { %1373 = vst.msk [vmem:[#allocation3 + $0x48] sm:$0xff] %vm1363_vm6, %v1286_v23 }
 0x1e6   : > { %1566 = vst.msk [vmem:[#allocation3 + $0x48] sm:$0xff] %vm1556_vm7, %v4306_v14  ;;  %2070 = vrot.lane.b32.xlu0 %v1991_v44, %s3702_s14  ;;  %v1095_v51 = vpop.permute.xlu1 %1094 }
 0x1e7   : > { %1759 = vst.msk [vmem:[#allocation3 + $0x48] sm:$0xff] %vm1749_vm8, %v1672_v36 }
 0x1e8   : > { %v902_v47 = vpop.permute.xlu0 %901  ;;  %2261 = vrot.lane.b32.xlu1 %v2183_v11, %s3701_s13 }
 0x1e9   : > { %988 = vst.msk [vmem:[#allocation3 + $0x50] sm:$0xff] %vm977_vm4, %v902_v47 }
 0x1ea   : > { %1181 = vst.msk [vmem:[#allocation3 + $0x50] sm:$0xff] %vm1170_vm5, %v1095_v51  ;;  %917 = vrot.lane.b32.xlu0 %v1990_v40, %s3696_s20  ;;  %v1483_v48 = vpop.permute.xlu1 %1482  ;;  %v2368_v49 = vld [vmem:[#allocation3 + $0x30] sm:$0xff]  ;;  %v2369_v52 = vld [vmem:[#allocation3 + $0x38] sm:$0xff] }
 0x1eb   : > { %3492 = vmatprep.mubr.msk.f32.mxu1 %vm2406_vm12, %v2368_v49 }
 0x1ec   : > { %v1670_v53 = vpop.permute.xlu0 %1669  ;;  %1494 = vrot.lane.b32.xlu1 %v1991_v44, %s3698_s29  ;;  %3493 = vmatmul.mubr.msk.f32.gmra.mxu1 %vm2406_vm12, %v2369_v52  ;;  %v1996_v52 = vld [vmem:[#allocation2 + $0x121] sm:$0xff] }
 0x1ed   : > { %1758 = vst.msk [vmem:[#allocation3 + $0x40] sm:$0xff] %vm1749_vm8, %v1670_v53 }
 0x1ee   : > { %1685 = vrot.lane.b32.xlu0 %v2183_v11, %s3700_s9  ;;  %v2252_v54 = vpop.permute.xlu1 %2251 }
 0x1f0   : > { %v2059_v56 = vpop.permute.xlu0 %2058  ;;  %2263 = vrot.lane.b32.xlu1 %v2184_v55, %s3701_s13 }
 0x1f2   : > { %919 = vrot.lane.b32.xlu0 %v1991_v44, %s3696_s20  ;;  %v1864_v57 = vpop.permute.xlu1 %1863 }
 0x1f3   : > { %1952 = vst.msk [vmem:[#allocation3 + $0x40] sm:$0xff] %vm1943_vm9, %v1864_v57  ;;  %v2189_v57 = vld [vmem:[#allocation2 + $0x122] sm:$0xff] }
 0x1f4   : > { %v908_v27 = vpop.permute.xlu0 %907  ;;  %1110 = vrot.lane.b32.xlu1 %v2183_v11, %s3697_s21 }
 0x1f5   : > { %991 = vst.msk [vmem:[#allocation3 + $0x68] sm:$0xff] %vm977_vm4, %v908_v27 }
 0x1f6   : > { %1687 = vrot.lane.b32.xlu0 %v2184_v55, %s3700_s9  ;;  %v1288_v58 = vpop.permute.xlu1 %1287 }
 0x1f7   : > { %1374 = vst.msk [vmem:[#allocation3 + $0x50] sm:$0xff] %vm1363_vm6, %v1288_v58 }
 0x1f8   : > { %v1676_v61 = vpop.permute.xlu0 %1675  ;;  %1879 = vrot.lane.b32.xlu1 %v4151_v42, %s3703_s15 }
 0x1fa   : > { %1112 = vrot.lane.b32.xlu0 %v2184_v55, %s3697_s21  ;;  %v2057_v0 = vpop.permute.xlu1 %2056  ;;  %v1997_v55 = vld [vmem:[#allocation2 + $0x129] sm:$0xff] }
 0x1fb   : > { %2145 = vst.msk [vmem:[#allocation3 + $0x40] sm:$0xff] %vm2136_vm10, %v2057_v0 }
 0x1fc   : > { %v1101_v1 = vpop.permute.xlu0 %1100  ;;  %1303 = vrot.lane.b32.xlu1 %v4151_v42, %s3699_s8 }
 0x1fd   : > { %1184 = vst.msk [vmem:[#allocation3 + $0x68] sm:$0xff] %vm1170_vm5, %v1101_v1 }
 0x1fe   : > { %1881 = vrot.lane.b32.xlu0 %v4153_v43, %s3703_s15  ;;  %v1481_v2 = vpop.permute.xlu1 %1480 }
 0x1ff   : > { %1567 = vst.msk [vmem:[#allocation3 + $0x50] sm:$0xff] %vm1556_vm7, %v1481_v2 }
 0x200   : > { %v1866_v4 = vpop.permute.xlu0 %1865  ;;  %2072 = vrot.lane.b32.xlu1 %v1992_v3, %s3702_s14 }
 0x201   : > { %1953 = vst.msk [vmem:[#allocation3 + $0x48] sm:$0xff] %vm1943_vm9, %v1866_v4 }
 0x202   : > { %2146 = vst.msk [vmem:[#allocation3 + $0x48] sm:$0xff] %vm2136_vm10, %v2059_v56  ;;  %1305 = vrot.lane.b32.xlu0 %v4153_v43, %s3699_s8  ;;  %v2250_v42 = vpop.permute.xlu1 %2249 }
 0x203   : > { %2339 = vst.msk [vmem:[#allocation3 + $0x48] sm:$0xff] %vm2329_vm11, %v2252_v54  ;;  %2338 = vst.msk [vmem:[#allocation3 + $0x40] sm:$0xff] %vm2329_vm11, %v2250_v42 }
 0x204   : > { %v1290_v5 = vpop.permute.xlu0 %1289  ;;  %1496 = vrot.lane.b32.xlu1 %v1992_v3, %s3698_s29 }
 0x205   : > { %1375 = vst.msk [vmem:[#allocation3 + $0x58] sm:$0xff] %vm1363_vm6, %v1290_v5 }
 0x206   : > { %1568 = vst.msk [vmem:[#allocation3 + $0x58] sm:$0xff] %vm1556_vm7, %v1483_v48  ;;  %2074 = vrot.lane.b32.xlu0 %v1993_v6, %s3702_s14  ;;  %v1099_v62 = vpop.permute.xlu1 %1098 }
 0x207   : > { %1761 = vst.msk [vmem:[#allocation3 + $0x58] sm:$0xff] %vm1749_vm8, %v1676_v61  ;;  %v4504_v61 = vld [vmem:[%s4959_s4] ss:$0 sm:$0xff] }
 0x208   : > { %v906_v43 = vpop.permute.xlu0 %905  ;;  %2265 = vrot.lane.b32.xlu1 %v2185_v7, %s3701_s13 }
 0x209   : > { %990 = vst.msk [vmem:[#allocation3 + $0x60] sm:$0xff] %vm977_vm4, %v906_v43 }
 0x20a   : > { %1183 = vst.msk [vmem:[#allocation3 + $0x60] sm:$0xff] %vm1170_vm5, %v1099_v62  ;;  %921 = vrot.lane.b32.xlu0 %v1992_v3, %s3696_s20  ;;  %v1487_v8 = vpop.permute.xlu1 %1486  ;;  %v2370_v9 = vld [vmem:[#allocation3 + $0x40] sm:$0xff]  ;;  %v2371_v28 = vld [vmem:[#allocation3 + $0x48] sm:$0xff] }
 0x20b   : > { %3495 = vmatprep.mubr.msk.f32.mxu1 %vm2406_vm12, %v2370_v9 }
 0x20c   : > { %v1674_v63 = vpop.permute.xlu0 %1673  ;;  %1498 = vrot.lane.b32.xlu1 %v1993_v6, %s3698_s29  ;;  %3496 = vmatmul.mubr.msk.f32.gmra.mxu1 %vm2406_vm12, %v2371_v28 }
 0x20d   : > { %1760 = vst.msk [vmem:[#allocation3 + $0x50] sm:$0xff] %vm1749_vm8, %v1674_v63 }
 0x20e   : > { %1689 = vrot.lane.b32.xlu0 %v2185_v7, %s3700_s9  ;;  %v2256_v14 = vpop.permute.xlu1 %2255 }
 0x210   : > { %v2063_v16 = vpop.permute.xlu0 %2062  ;;  %2267 = vrot.lane.b32.xlu1 %v2186_v15, %s3701_s13 }
 0x212   : > { %923 = vrot.lane.b32.xlu0 %v1993_v6, %s3696_s20  ;;  %v1868_v17 = vpop.permute.xlu1 %1867  ;;  %v2190_v6 = vld [vmem:[#allocation2 + $0x12a] sm:$0xff] }
 0x213   : > { %1954 = vst.msk [vmem:[#allocation3 + $0x50] sm:$0xff] %vm1943_vm9, %v1868_v17  ;;  %v1998_v17 = vld [vmem:[#allocation2 + $0x139] sm:$0xff] }
 0x214   : > { %v912_v18 = vpop.permute.xlu0 %911  ;;  %1114 = vrot.lane.b32.xlu1 %v2185_v7, %s3697_s21 }
 0x215   : > { %993 = vst.msk [vmem:[#allocation3 + $0x78] sm:$0xff] %vm977_vm4, %v912_v18 }
 0x216   : > { %1691 = vrot.lane.b32.xlu0 %v2186_v15, %s3700_s9  ;;  %v1292_v19 = vpop.permute.xlu1 %1291 }
 0x217   : > { %1376 = vst.msk [vmem:[#allocation3 + $0x60] sm:$0xff] %vm1363_vm6, %v1292_v19 }
 0x218   : > { %v1680_v24 = vpop.permute.xlu0 %1679  ;;  %1883 = vrot.lane.b32.xlu1 %v4201_v12, %s3703_s15 }
 0x21a   : > { %1116 = vrot.lane.b32.xlu0 %v2186_v15, %s3697_s21  ;;  %v2061_v25 = vpop.permute.xlu1 %2060 }
 0x21b   : > { %2147 = vst.msk [vmem:[#allocation3 + $0x50] sm:$0xff] %vm2136_vm10, %v2061_v25  ;;  %v1999_v25 = vld [vmem:[#allocation2 + $0x141] sm:$0xff] }
 0x21c   : > { %v1105_v26 = vpop.permute.xlu0 %1104  ;;  %1307 = vrot.lane.b32.xlu1 %v4201_v12, %s3699_s8 }
 0x21d   : > { %1186 = vst.msk [vmem:[#allocation3 + $0x78] sm:$0xff] %vm1170_vm5, %v1105_v26 }
 0x21e   : > { %1885 = vrot.lane.b32.xlu0 %v4203_v13, %s3703_s15  ;;  %v1485_v50 = vpop.permute.xlu1 %1484 }
 0x21f   : > { %1569 = vst.msk [vmem:[#allocation3 + $0x60] sm:$0xff] %vm1556_vm7, %v1485_v50  ;;  %v2191_v50 = vld [vmem:[#allocation2 + $0x13a] sm:$0xff] }
 0x220   : > { %v1870_v22 = vpop.permute.xlu0 %1869  ;;  %2076 = vrot.lane.b32.xlu1 %v1994_v29, %s3702_s14 }
 0x221   : > { %1955 = vst.msk [vmem:[#allocation3 + $0x58] sm:$0xff] %vm1943_vm9, %v1870_v22 }
 0x222   : > { %2148 = vst.msk [vmem:[#allocation3 + $0x58] sm:$0xff] %vm2136_vm10, %v2063_v16  ;;  %1309 = vrot.lane.b32.xlu0 %v4203_v13, %s3699_s8  ;;  %v2254_v12 = vpop.permute.xlu1 %2253 }
 0x223   : > { %2341 = vst.msk [vmem:[#allocation3 + $0x58] sm:$0xff] %vm2329_vm11, %v2256_v14  ;;  %2340 = vst.msk [vmem:[#allocation3 + $0x50] sm:$0xff] %vm2329_vm11, %v2254_v12 }
 0x224   : > { %v1294_v30 = vpop.permute.xlu0 %1293  ;;  %1500 = vrot.lane.b32.xlu1 %v1994_v29, %s3698_s29 }
 0x225   : > { %1377 = vst.msk [vmem:[#allocation3 + $0x68] sm:$0xff] %vm1363_vm6, %v1294_v30 }
 0x226   : > { %1570 = vst.msk [vmem:[#allocation3 + $0x68] sm:$0xff] %vm1556_vm7, %v1487_v8  ;;  %2078 = vrot.lane.b32.xlu0 %v1995_v31, %s3702_s14  ;;  %v1103_v34 = vpop.permute.xlu1 %1102 }
 0x227   : > { %1763 = vst.msk [vmem:[#allocation3 + $0x68] sm:$0xff] %vm1749_vm8, %v1680_v24 }
 0x228   : > { %v910_v13 = vpop.permute.xlu0 %909  ;;  %2269 = vrot.lane.b32.xlu1 %v2187_v32, %s3701_s13 }
 0x229   : > { %992 = vst.msk [vmem:[#allocation3 + $0x70] sm:$0xff] %vm977_vm4, %v910_v13 }
 0x22a   : > { %1185 = vst.msk [vmem:[#allocation3 + $0x70] sm:$0xff] %vm1170_vm5, %v1103_v34  ;;  %925 = vrot.lane.b32.xlu0 %v1994_v29, %s3696_s20  ;;  %v1491_v36 = vpop.permute.xlu1 %1490  ;;  %v2372_v37 = vld [vmem:[#allocation3 + $0x50] sm:$0xff]  ;;  %v2373_v38 = vld [vmem:[#allocation3 + $0x58] sm:$0xff] }
 0x22b   : > { %3498 = vmatprep.mubr.msk.f32.mxu1 %vm2406_vm12, %v2372_v37 }
 0x22c   : > { %v1678_v39 = vpop.permute.xlu0 %1677  ;;  %1502 = vrot.lane.b32.xlu1 %v1995_v31, %s3698_s29  ;;  %3499 = vmatmul.mubr.msk.f32.gmra.mxu1 %vm2406_vm12, %v2373_v38 }
 0x22d   : > { %1762 = vst.msk [vmem:[#allocation3 + $0x60] sm:$0xff] %vm1749_vm8, %v1678_v39 }
 0x22e   : > { %1693 = vrot.lane.b32.xlu0 %v2187_v32, %s3700_s9  ;;  %v2260_v40 = vpop.permute.xlu1 %2259 }
 0x230   : > { %v2067_v10 = vpop.permute.xlu0 %2066  ;;  %2271 = vrot.lane.b32.xlu1 %v2188_v41, %s3701_s13 }
 0x232   : > { %927 = vrot.lane.b32.xlu0 %v1995_v31, %s3696_s20  ;;  %v1872_v23 = vpop.permute.xlu1 %1871 }
 0x233   : > { %1956 = vst.msk [vmem:[#allocation3 + $0x60] sm:$0xff] %vm1943_vm9, %v1872_v23 }
 0x234   : > { %v1874_v44 = vpop.permute.xlu0 %1873  ;;  %1118 = vrot.lane.b32.xlu1 %v2187_v32, %s3697_s21 }
 0x235   : > { %1957 = vst.msk [vmem:[#allocation3 + $0x68] sm:$0xff] %vm1943_vm9, %v1874_v44 }
 0x236   : > { %2150 = vst.msk [vmem:[#allocation3 + $0x68] sm:$0xff] %vm2136_vm10, %v2067_v10  ;;  %1695 = vrot.lane.b32.xlu0 %v2188_v41, %s3700_s9  ;;  %v1296_v51 = vpop.permute.xlu1 %1295 }
 0x237   : > { %2343 = vst.msk [vmem:[#allocation3 + $0x68] sm:$0xff] %vm2329_vm11, %v2260_v40 }
 0x238   : > { %1378 = vst.msk [vmem:[#allocation3 + $0x70] sm:$0xff] %vm1363_vm6, %v1296_v51  ;;  %v1298_v11 = vpop.permute.xlu0 %1297  ;;  %1887 = vrot.lane.b32.xlu1 %v4256_v45, %s3703_s15 }
 0x239   : > { %1379 = vst.msk [vmem:[#allocation3 + $0x78] sm:$0xff] %vm1363_vm6, %v1298_v11 }
 0x23a   : > { %1572 = vst.msk [vmem:[#allocation3 + $0x78] sm:$0xff] %vm1556_vm7, %v1491_v36  ;;  %1120 = vrot.lane.b32.xlu0 %v2188_v41, %s3697_s21  ;;  %v2065_v47 = vpop.permute.xlu1 %2064  ;;  %v2192_v36 = vld [vmem:[#allocation2 + $0x142] sm:$0xff] }
 0x23b   : > { %2149 = vst.msk [vmem:[#allocation3 + $0x60] sm:$0xff] %vm2136_vm10, %v2065_v47  ;;  %v2000_v47 = vld [vmem:[#allocation2 + $0x151] sm:$0xff] }
 0x23c   : > { %v914_v48 = vpop.permute.xlu0 %913  ;;  %1311 = vrot.lane.b32.xlu1 %v4256_v45, %s3699_s8 }
 0x23d   : > { %994 = vst.msk [vmem:[#allocation3 + $0x80] sm:$0xff] %vm977_vm4, %v914_v48 }
 0x23e   : > { %1889 = vrot.lane.b32.xlu0 %v4258_v46, %s3703_s15  ;;  %v1489_v49 = vpop.permute.xlu1 %1488  ;;  %v2375_v0 = vld [vmem:[#allocation3 + $0x68] sm:$0xff] }
 0x23f   : > { %1571 = vst.msk [vmem:[#allocation3 + $0x70] sm:$0xff] %vm1556_vm7, %v1489_v49 }
 0x240   : > { %v1682_v53 = vpop.permute.xlu0 %1681  ;;  %2080 = vrot.lane.b32.xlu1 %v1996_v52, %s3702_s14 }
 0x241   : > { %1764 = vst.msk [vmem:[#allocation3 + $0x70] sm:$0xff] %vm1749_vm8, %v1682_v53  ;;  %v2001_v53 = vld [vmem:[#allocation2 + $0x159] sm:$0xff] }
 0x242   : > { %1313 = vrot.lane.b32.xlu0 %v4258_v46, %s3699_s8  ;;  %v2258_v54 = vpop.permute.xlu1 %2257 }
 0x243   : > { %2342 = vst.msk [vmem:[#allocation3 + $0x60] sm:$0xff] %vm2329_vm11, %v2258_v54 }
 0x244   : > { %v916_v45 = vpop.permute.xlu0 %915  ;;  %1504 = vrot.lane.b32.xlu1 %v1996_v52, %s3698_s29 }
 0x245   : > { %995 = vst.msk [vmem:[#allocation3 + $0x88] sm:$0xff] %vm977_vm4, %v916_v45  ;;  %v2193_v45 = vld [vmem:[#allocation2 + $0x152] sm:$0xff] }
 0x246   : > { %2082 = vrot.lane.b32.xlu0 %v1997_v55, %s3702_s14  ;;  %v1107_v56 = vpop.permute.xlu1 %1106 }
 0x247   : > { %1187 = vst.msk [vmem:[#allocation3 + $0x80] sm:$0xff] %vm1170_vm5, %v1107_v56 }
 0x248   : > { %v1684_v27 = vpop.permute.xlu0 %1683  ;;  %2273 = vrot.lane.b32.xlu1 %v2189_v57, %s3701_s13 }
 0x249   : > { %1765 = vst.msk [vmem:[#allocation3 + $0x78] sm:$0xff] %vm1749_vm8, %v1684_v27 }
 0x24a   : > { %929 = vrot.lane.b32.xlu0 %v1996_v52, %s3696_s20  ;;  %v1876_v46 = vpop.permute.xlu1 %1875  ;;  %v2374_v58 = vld [vmem:[#allocation3 + $0x60] sm:$0xff] }
 0x24b   : > { %1958 = vst.msk [vmem:[#allocation3 + $0x70] sm:$0xff] %vm1943_vm9, %v1876_v46  ;;  %3501 = vmatprep.mubr.msk.f32.mxu1 %vm2406_vm12, %v2374_v58 }
 0x24c   : > { %v1109_v1 = vpop.permute.xlu0 %1108  ;;  %v3485_v2 = vpop.f32.mrf.mxu1  ;;  %1506 = vrot.lane.b32.xlu1 %v1997_v55, %s3698_s29  ;;  %3502 = vmatmul.mubr.msk.f32.gmra.mxu1 %vm2406_vm12, %v2375_v0 }
 0x24d   : > { %1188 = vst.msk [vmem:[#allocation3 + $0x88] sm:$0xff] %vm1170_vm5, %v1109_v1  ;;  %v2578_v3 = vadd.f32 %v3485_v2, %v4504_v61  ;;  %v2194_v2 = vld [vmem:[#allocation2 + $0x15a] sm:$0xff] }
 0x24e   : > { %1697 = vrot.lane.b32.xlu0 %v2189_v57, %s3700_s9  ;;  %v2572_v4 = vpop.f32.mrf.mxu1  ;;  %v1300_v42 = vpop.permute.xlu1 %1299 }
 0x24f   : > { %v2573_v5 = vadd.f32 %v4504_v61, %v2572_v4  ;;  %1380 = vst.msk [vmem:[#allocation3 + $0x80] sm:$0xff] %vm1363_vm6, %v1300_v42  ;;  %v2732_v43 = vmax.f32 %v2578_v3, 0.0 }
 0x250   : > { %v1878_v62 = vpop.permute.xlu0 %1877  ;;  %2275 = vrot.lane.b32.xlu1 %v2190_v6, %s3701_s13 }
 0x251   : > { %v2731_v7 = vmax.f32 %v2573_v5, 0.0  ;;  %1959 = vst.msk [vmem:[#allocation3 + $0x78] sm:$0xff] %vm1943_vm9, %v1878_v62 }
 0x252   : > { %931 = vrot.lane.b32.xlu0 %v1997_v55, %s3696_s20  ;;  %v2069_v8 = vpop.permute.xlu1 %2068 }
 0x253   : > { %2151 = vst.msk [vmem:[#allocation3 + $0x70] sm:$0xff] %vm2136_vm10, %v2069_v8  ;;  %3533 = vmatprep.mubr.msk.f32.mxu0 %vm317_vm1, %v2731_v7 }
 0x254   : > { %v1302_v9 = vpop.permute.xlu0 %1301  ;;  %3534 = vmatmul.mubr.msk.f32.vlgmr.msra.gmra.mxu0 %vm317_vm1, %v2732_v43  ;;  %1122 = vrot.lane.b32.xlu1 %v2189_v57, %s3697_s21 }
 0x255   : > { %1381 = vst.msk [vmem:[#allocation3 + $0x88] sm:$0xff] %vm1363_vm6, %v1302_v9 }
 0x256   : > { %1699 = vrot.lane.b32.xlu0 %v2190_v6, %s3700_s9  ;;  %v1493_v28 = vpop.permute.xlu1 %1492 }
 0x257   : > { %1573 = vst.msk [vmem:[#allocation3 + $0x80] sm:$0xff] %vm1556_vm7, %v1493_v28  ;;  %v2002_v28 = vld [vmem:[#allocation2 + $0x169] sm:$0xff] }
 0x258   : > { %v2071_v63 = vpop.permute.xlu0 %2070  ;;  %1891 = vrot.lane.b32.xlu1 %v4332_v33, %s3703_s15 }
 0x259   : > { %2152 = vst.msk [vmem:[#allocation3 + $0x78] sm:$0xff] %vm2136_vm10, %v2071_v63 }
 0x25a   : > { %1124 = vrot.lane.b32.xlu0 %v2190_v6, %s3697_s21  ;;  %v2262_v14 = vpop.permute.xlu1 %2261 }
 0x25b   : > { %2344 = vst.msk [vmem:[#allocation3 + $0x70] sm:$0xff] %vm2329_vm11, %v2262_v14 }
 0x25c   : > { %v918_v15 = vpop.permute.xlu0 %917  ;;  %1315 = vrot.lane.b32.xlu1 %v4332_v33, %s3699_s8 }
 0x25d   : > { %996 = vst.msk [vmem:[#allocation3 + $0x90] sm:$0xff] %vm977_vm4, %v918_v15 }
 0x25e   : > { %1893 = vrot.lane.b32.xlu0 %v4334_v35, %s3703_s15  ;;  %v1495_v16 = vpop.permute.xlu1 %1494 }
 0x25f   : > { %1574 = vst.msk [vmem:[#allocation3 + $0x88] sm:$0xff] %vm1556_vm7, %v1495_v16  ;;  %v2003_v16 = vld [vmem:[#allocation2 + $0x171] sm:$0xff] }
 0x260   : > { %v1686_v18 = vpop.permute.xlu0 %1685  ;;  %2084 = vrot.lane.b32.xlu1 %v1998_v17, %s3702_s14 }
 0x261   : > { %1766 = vst.msk [vmem:[#allocation3 + $0x80] sm:$0xff] %vm1749_vm8, %v1686_v18  ;;  %v2195_v18 = vld [vmem:[#allocation2 + $0x16a] sm:$0xff] }
 0x262   : > { %1317 = vrot.lane.b32.xlu0 %v4334_v35, %s3699_s8  ;;  %v2264_v19 = vpop.permute.xlu1 %2263  ;;  %v2376_v24 = vld [vmem:[#allocation3 + $0x70] sm:$0xff] }
 0x263   : > { %2345 = vst.msk [vmem:[#allocation3 + $0x78] sm:$0xff] %vm2329_vm11, %v2264_v19  ;;  %3504 = vmatprep.mubr.msk.f32.mxu1 %vm2406_vm12, %v2376_v24 }
 0x264   : > { %v920_v33 = vpop.permute.xlu0 %919  ;;  %1508 = vrot.lane.b32.xlu1 %v1998_v17, %s3698_s29 }
 0x265   : > { %997 = vst.msk [vmem:[#allocation3 + $0x98] sm:$0xff] %vm977_vm4, %v920_v33 }
 0x266   : > { %2086 = vrot.lane.b32.xlu0 %v1999_v25, %s3702_s14  ;;  %v1111_v26 = vpop.permute.xlu1 %1110 }
 0x267   : > { %1189 = vst.msk [vmem:[#allocation3 + $0x90] sm:$0xff] %vm1170_vm5, %v1111_v26 }
 0x268   : > { %v1688_v29 = vpop.permute.xlu0 %1687  ;;  %2277 = vrot.lane.b32.xlu1 %v2191_v50, %s3701_s13 }
 0x269   : > { %1767 = vst.msk [vmem:[#allocation3 + $0x88] sm:$0xff] %vm1749_vm8, %v1688_v29 }
 0x26a   : > { %933 = vrot.lane.b32.xlu0 %v1998_v17, %s3696_s20  ;;  %v1880_v35 = vpop.permute.xlu1 %1879  ;;  %v2377_v22 = vld [vmem:[#allocation3 + $0x78] sm:$0xff] }
 0x26b   : > { %1960 = vst.msk [vmem:[#allocation3 + $0x80] sm:$0xff] %vm1943_vm9, %v1880_v35  ;;  %3505 = vmatmul.mubr.msk.f32.gmra.mxu1 %vm2406_vm12, %v2377_v22  ;;  %v2196_v22 = vld [vmem:[#allocation2 + $0x172] sm:$0xff] }
 0x26c   : > { %v1113_v12 = vpop.permute.xlu0 %1112  ;;  %1510 = vrot.lane.b32.xlu1 %v1999_v25, %s3698_s29  ;;  %v3488_v30 = vpop.f32.mrf.mxu1 }
 0x26d   : > { %1190 = vst.msk [vmem:[#allocation3 + $0x98] sm:$0xff] %vm1170_vm5, %v1113_v12  ;;  %v2588_v31 = vadd.f32 %v3488_v30, %v4504_v61 }
 0x26e   : > { %1701 = vrot.lane.b32.xlu0 %v2191_v50, %s3700_s9  ;;  %v1304_v34 = vpop.permute.xlu1 %1303  ;;  %v2582_v32 = vpop.f32.mrf.mxu1 }
 0x26f   : > { %1382 = vst.msk [vmem:[#allocation3 + $0x90] sm:$0xff] %vm1363_vm6, %v1304_v34  ;;  %v2583_v13 = vadd.f32 %v4504_v61, %v2582_v32  ;;  %v2734_v39 = vmax.f32 %v2588_v31, 0.0 }
 0x270   : > { %v1882_v37 = vpop.permute.xlu0 %1881  ;;  %2279 = vrot.lane.b32.xlu1 %v2192_v36, %s3701_s13 }
 0x271   : > { %v2733_v38 = vmax.f32 %v2583_v13, 0.0  ;;  %1961 = vst.msk [vmem:[#allocation3 + $0x88] sm:$0xff] %vm1943_vm9, %v1882_v37 }
 0x272   : > { %935 = vrot.lane.b32.xlu0 %v1999_v25, %s3696_s20  ;;  %v2073_v40 = vpop.permute.xlu1 %2072 }
 0x273   : > { %2153 = vst.msk [vmem:[#allocation3 + $0x80] sm:$0xff] %vm2136_vm10, %v2073_v40  ;;  %3536 = vmatprep.mubr.msk.f32.mxu0 %vm317_vm1, %v2733_v38  ;;  %v1812_v40 = vld [vmem:[#allocation2 + $0x188] sm:$0xff] }
 0x274   : > { %v1306_v41 = vpop.permute.xlu0 %1305  ;;  %1126 = vrot.lane.b32.xlu1 %v2191_v50, %s3697_s21  ;;  %3537 = vmatmul.mubr.msk.f32.gmra.mxu0 %vm317_vm1, %v2734_v39 }
 0x275   : > { %1383 = vst.msk [vmem:[#allocation3 + $0x98] sm:$0xff] %vm1363_vm6, %v1306_v41 }
 0x276   : > { %1703 = vrot.lane.b32.xlu0 %v2192_v36, %s3700_s9  ;;  %v1497_v10 = vpop.permute.xlu1 %1496 }
 0x277   : > { %1575 = vst.msk [vmem:[#allocation3 + $0x90] sm:$0xff] %vm1556_vm7, %v1497_v10  ;;  %v2004_v10 = vld [vmem:[#allocation2 + $0x181] sm:$0xff] }
 0x278   : > { %v2075_v23 = vpop.permute.xlu0 %2074  ;;  %1895 = vrot.lane.b32.xlu1 %v4380_v59, %s3703_s15 }
 0x279   : > { %2154 = vst.msk [vmem:[#allocation3 + $0x88] sm:$0xff] %vm2136_vm10, %v2075_v23 }
 0x27a   : > { %1128 = vrot.lane.b32.xlu0 %v2192_v36, %s3697_s21  ;;  %v2266_v44 = vpop.permute.xlu1 %2265  ;;  %v1811_v36 = vld [vmem:[#allocation2 + $0x180] sm:$0xff] }
 0x27b   : > { %2346 = vst.msk [vmem:[#allocation3 + $0x80] sm:$0xff] %vm2329_vm11, %v2266_v44 }
 0x27c   : > { %v922_v51 = vpop.permute.xlu0 %921  ;;  %1319 = vrot.lane.b32.xlu1 %v4380_v59, %s3699_s8 }
 0x27d   : > { %998 = vst.msk [vmem:[#allocation3 + $0xa0] sm:$0xff] %vm977_vm4, %v922_v51 }
 0x27e   : > { %1897 = vrot.lane.b32.xlu0 %v4382_v60, %s3703_s15  ;;  %v1499_v11 = vpop.permute.xlu1 %1498 }
 0x27f   : > { %1576 = vst.msk [vmem:[#allocation3 + $0x98] sm:$0xff] %vm1556_vm7, %v1499_v11 }
 0x280   : > { %v1690_v48 = vpop.permute.xlu0 %1689  ;;  %2088 = vrot.lane.b32.xlu1 %v2000_v47, %s3702_s14 }
 0x281   : > { %1768 = vst.msk [vmem:[#allocation3 + $0x90] sm:$0xff] %vm1749_vm8, %v1690_v48 }
 0x282   : > { %1321 = vrot.lane.b32.xlu0 %v4382_v60, %s3699_s8  ;;  %v2268_v49 = vpop.permute.xlu1 %2267  ;;  %v2378_v52 = vld [vmem:[#allocation3 + $0x80] sm:$0xff] }
 0x283   : > { %2347 = vst.msk [vmem:[#allocation3 + $0x88] sm:$0xff] %vm2329_vm11, %v2268_v49  ;;  %3507 = vmatprep.mubr.msk.f32.mxu1 %vm2406_vm12, %v2378_v52  ;;  %v2197_v49 = vld [vmem:[#allocation2 + $0x182] sm:$0xff] }
 0x284   : > { %v924_v59 = vpop.permute.xlu0 %923  ;;  %1512 = vrot.lane.b32.xlu1 %v2000_v47, %s3698_s29 }
 0x285   : > { %999 = vst.msk [vmem:[#allocation3 + $0xa8] sm:$0xff] %vm977_vm4, %v924_v59 }
 0x286   : > { %2090 = vrot.lane.b32.xlu0 %v2001_v53, %s3702_s14  ;;  %v1115_v54 = vpop.permute.xlu1 %1114 }
 0x287   : > { %1191 = vst.msk [vmem:[#allocation3 + $0xa0] sm:$0xff] %vm1170_vm5, %v1115_v54 }
 0x288   : > { %v1692_v55 = vpop.permute.xlu0 %1691  ;;  %2281 = vrot.lane.b32.xlu1 %v2193_v45, %s3701_s13 }
 0x289   : > { %1769 = vst.msk [vmem:[#allocation3 + $0x98] sm:$0xff] %vm1749_vm8, %v1692_v55  ;;  %v2198_v55 = vld [vmem:[#allocation2 + $0x18a] sm:$0xff] }
 0x28a   : > { %937 = vrot.lane.b32.xlu0 %v2000_v47, %s3696_s20  ;;  %v1884_v60 = vpop.permute.xlu1 %1883  ;;  %v2379_v56 = vld [vmem:[#allocation3 + $0x88] sm:$0xff]  ;;  %v2005_v47 = vld [vmem:[#allocation2 + $0x189] sm:$0xff] }
 0x28b   : > { %1962 = vst.msk [vmem:[#allocation3 + $0x90] sm:$0xff] %vm1943_vm9, %v1884_v60  ;;  %3508 = vmatmul.mubr.msk.f32.gmra.mxu1 %vm2406_vm12, %v2379_v56 }
 0x28c   : > { %v1117_v57 = vpop.permute.xlu0 %1116  ;;  %1514 = vrot.lane.b32.xlu1 %v2001_v53, %s3698_s29  ;;  %v3491_v27 = vpop.f32.mrf.mxu1 }
 0x28d   : > { %1192 = vst.msk [vmem:[#allocation3 + $0xa8] sm:$0xff] %vm1170_vm5, %v1117_v57  ;;  %v2598_v46 = vadd.f32 %v3491_v27, %v4504_v61 }
 0x28e   : > { %1705 = vrot.lane.b32.xlu0 %v2193_v45, %s3700_s9  ;;  %v1308_v58 = vpop.permute.xlu1 %1307  ;;  %v2592_v0 = vpop.f32.mrf.mxu1 }
 0x28f   : > { %1384 = vst.msk [vmem:[#allocation3 + $0xa0] sm:$0xff] %vm1363_vm6, %v1308_v58  ;;  %v2593_v1 = vadd.f32 %v4504_v61, %v2592_v0  ;;  %v2736_v42 = vmax.f32 %v2598_v46, 0.0  ;;  %v1813_v46 = vld [vmem:[#allocation2 + $0x198] sm:$0xff] }
 0x290   : > { %v1886_v3 = vpop.permute.xlu0 %1885  ;;  %2283 = vrot.lane.b32.xlu1 %v2194_v2, %s3701_s13 }
 0x291   : > { %v2735_v4 = vmax.f32 %v2593_v1, 0.0  ;;  %1963 = vst.msk [vmem:[#allocation3 + $0x98] sm:$0xff] %vm1943_vm9, %v1886_v3  ;;  %v1814_v1 = vld [vmem:[#allocation2 + $0x1a0] sm:$0xff] }
 0x292   : > { %939 = vrot.lane.b32.xlu0 %v2001_v53, %s3696_s20  ;;  %v2077_v5 = vpop.permute.xlu1 %2076 }
 0x293   : > { %2155 = vst.msk [vmem:[#allocation3 + $0x90] sm:$0xff] %vm2136_vm10, %v2077_v5  ;;  %3539 = vmatprep.mubr.msk.f32.mxu0 %vm317_vm1, %v2735_v4  ;;  %v2006_v4 = vld [vmem:[#allocation2 + $0x199] sm:$0xff]  ;;  %v2007_v5 = vld [vmem:[#allocation2 + $0x1a1] sm:$0xff] }
 0x294   : > { %v1310_v6 = vpop.permute.xlu0 %1309  ;;  %1130 = vrot.lane.b32.xlu1 %v2193_v45, %s3697_s21  ;;  %3540 = vmatmul.mubr.msk.f32.gmra.mxu0 %vm317_vm1, %v2736_v42 }
 0x295   : > { %1385 = vst.msk [vmem:[#allocation3 + $0xa8] sm:$0xff] %vm1363_vm6, %v1310_v6 }
 0x296   : > { %1707 = vrot.lane.b32.xlu0 %v2194_v2, %s3700_s9  ;;  %v1501_v62 = vpop.permute.xlu1 %1500 }
 0x297   : > { %1577 = vst.msk [vmem:[#allocation3 + $0xa0] sm:$0xff] %vm1556_vm7, %v1501_v62  ;;  %v2199_v62 = vld [vmem:[#allocation2 + $0x19a] sm:$0xff] }
 0x298   : > { %v2079_v7 = vpop.permute.xlu0 %2078  ;;  %1899 = vrot.lane.b32.xlu1 %v4426_v20, %s3703_s15 }
 0x299   : > { %2156 = vst.msk [vmem:[#allocation3 + $0x98] sm:$0xff] %vm2136_vm10, %v2079_v7 }
 0x29a   : > { %1132 = vrot.lane.b32.xlu0 %v2194_v2, %s3697_s21  ;;  %v2270_v43 = vpop.permute.xlu1 %2269 }
 0x29b   : > { %2348 = vst.msk [vmem:[#allocation3 + $0x90] sm:$0xff] %vm2329_vm11, %v2270_v43  ;;  %v2200_v43 = vld [vmem:[#allocation2 + $0x1a2] sm:$0xff] }
 0x29c   : > { %v926_v8 = vpop.permute.xlu0 %925  ;;  %1323 = vrot.lane.b32.xlu1 %v4426_v20, %s3699_s8 }
 0x29d   : > { %1000 = vst.msk [vmem:[#allocation3 + $0xb0] sm:$0xff] %vm977_vm4, %v926_v8 }
 0x29e   : > { %1901 = vrot.lane.b32.xlu0 %v4428_v21, %s3703_s15  ;;  %v1503_v9 = vpop.permute.xlu1 %1502 }
 0x29f   : > { %1578 = vst.msk [vmem:[#allocation3 + $0xa8] sm:$0xff] %vm1556_vm7, %v1503_v9 }
 0x2a0   : > { %v1694_v63 = vpop.permute.xlu0 %1693  ;;  %2092 = vrot.lane.b32.xlu1 %v2002_v28, %s3702_s14 }
 0x2a1   : > { %1770 = vst.msk [vmem:[#allocation3 + $0xa0] sm:$0xff] %vm1749_vm8, %v1694_v63 }
 0x2a2   : > { %1325 = vrot.lane.b32.xlu0 %v4428_v21, %s3699_s8  ;;  %v2272_v14 = vpop.permute.xlu1 %2271  ;;  %v2380_v15 = vld [vmem:[#allocation3 + $0x90] sm:$0xff] }
 0x2a3   : > { %2349 = vst.msk [vmem:[#allocation3 + $0x98] sm:$0xff] %vm2329_vm11, %v2272_v14  ;;  %3510 = vmatprep.mubr.msk.f32.mxu1 %vm2406_vm12, %v2380_v15 }
 0x2a4   : > { %v928_v20 = vpop.permute.xlu0 %927  ;;  %1516 = vrot.lane.b32.xlu1 %v2002_v28, %s3698_s29 }
 0x2a5   : > { %1001 = vst.msk [vmem:[#allocation3 + $0xb8] sm:$0xff] %vm977_vm4, %v928_v20 }
 0x2a6   : > { %2094 = vrot.lane.b32.xlu0 %v2003_v16, %s3702_s14  ;;  %v1119_v17 = vpop.permute.xlu1 %1118 }
 0x2a7   : > { %1193 = vst.msk [vmem:[#allocation3 + $0xb0] sm:$0xff] %vm1170_vm5, %v1119_v17 }
 0x2a8   : > { %v1696_v19 = vpop.permute.xlu0 %1695  ;;  %2285 = vrot.lane.b32.xlu1 %v2195_v18, %s3701_s13 }
 0x2a9   : > { %1771 = vst.msk [vmem:[#allocation3 + $0xa8] sm:$0xff] %vm1749_vm8, %v1696_v19 }
 0x2aa   : > { %941 = vrot.lane.b32.xlu0 %v2002_v28, %s3696_s20  ;;  %v1888_v21 = vpop.permute.xlu1 %1887  ;;  %v2381_v24 = vld [vmem:[#allocation3 + $0x98] sm:$0xff] }
 0x2ab   : > { %1964 = vst.msk [vmem:[#allocation3 + $0xa0] sm:$0xff] %vm1943_vm9, %v1888_v21  ;;  %3511 = vmatmul.mubr.msk.f32.gmra.mxu1 %vm2406_vm12, %v2381_v24 }
 0x2ac   : > { %v1121_v33 = vpop.permute.xlu0 %1120  ;;  %1518 = vrot.lane.b32.xlu1 %v2003_v16, %s3698_s29  ;;  %v3494_v25 = vpop.f32.mrf.mxu1 }
 0x2ad   : > { %1194 = vst.msk [vmem:[#allocation3 + $0xb8] sm:$0xff] %vm1170_vm5, %v1121_v33  ;;  %v2608_v26 = vadd.f32 %v3494_v25, %v4504_v61 }
 0x2ae   : > { %1709 = vrot.lane.b32.xlu0 %v2195_v18, %s3700_s9  ;;  %v1312_v50 = vpop.permute.xlu1 %1311  ;;  %v2602_v29 = vpop.f32.mrf.mxu1 }
 0x2af   : > { %1386 = vst.msk [vmem:[#allocation3 + $0xb0] sm:$0xff] %vm1363_vm6, %v1312_v50  ;;  %v2603_v35 = vadd.f32 %v4504_v61, %v2602_v29  ;;  %v2738_v31 = vmax.f32 %v2608_v26, 0.0 }
 0x2b0   : > { %v1890_v12 = vpop.permute.xlu0 %1889  ;;  %2287 = vrot.lane.b32.xlu1 %v2196_v22, %s3701_s13 }
 0x2b1   : > { %v2737_v30 = vmax.f32 %v2603_v35, 0.0  ;;  %1965 = vst.msk [vmem:[#allocation3 + $0xa8] sm:$0xff] %vm1943_vm9, %v1890_v12 }
 0x2b2   : > { %943 = vrot.lane.b32.xlu0 %v2003_v16, %s3696_s20  ;;  %v2081_v34 = vpop.permute.xlu1 %2080  ;;  %s269_s20 = sand.u32 1, %s3685_s25  }
 0x2b3   : > { %2157 = vst.msk [vmem:[#allocation3 + $0xa0] sm:$0xff] %vm2136_vm10, %v2081_v34  ;;  %3542 = vmatprep.mubr.msk.f32.mxu0 %vm317_vm1, %v2737_v30  ;;  %s4914_s28 = scalar_lea.sflag [#allocation5], %s269_s20 }
 0x2b4   : > { %v1314_v32 = vpop.permute.xlu0 %1313  ;;  %1134 = vrot.lane.b32.xlu1 %v2195_v18, %s3697_s21  ;;  %3543 = vmatmul.mubr.msk.f32.gmra.mxu0 %vm317_vm1, %v2738_v31 }
 0x2b5   : > { %1387 = vst.msk [vmem:[#allocation3 + $0xb8] sm:$0xff] %vm1363_vm6, %v1314_v32 }
 0x2b6   : > { %1711 = vrot.lane.b32.xlu0 %v2196_v22, %s3700_s9  ;;  %v1505_v13 = vpop.permute.xlu1 %1504 }
 0x2b7   : > { %1579 = vst.msk [vmem:[#allocation3 + $0xb0] sm:$0xff] %vm1556_vm7, %v1505_v13 }
 0x2b8   : > { %v2083_v37 = vpop.permute.xlu0 %2082  ;;  %1903 = vrot.lane.b32.xlu1 %v1811_v36, %s3703_s15 }
 0x2b9   : > { %2158 = vst.msk [vmem:[#allocation3 + $0xa8] sm:$0xff] %vm2136_vm10, %v2083_v37 }
 0x2ba   : > { %1136 = vrot.lane.b32.xlu0 %v2196_v22, %s3697_s21  ;;  %v2274_v38 = vpop.permute.xlu1 %2273 }
 0x2bb   : > { %2350 = vst.msk [vmem:[#allocation3 + $0xa0] sm:$0xff] %vm2329_vm11, %v2274_v38 }
 0x2bc   : > { %v930_v39 = vpop.permute.xlu0 %929  ;;  %1327 = vrot.lane.b32.xlu1 %v1811_v36, %s3699_s8 }
 0x2bd   : > { %1002 = vst.msk [vmem:[#allocation3 + $0xc0] sm:$0xff] %vm977_vm4, %v930_v39 }
 0x2be   : > { %1905 = vrot.lane.b32.xlu0 %v1812_v40, %s3703_s15  ;;  %v1507_v41 = vpop.permute.xlu1 %1506 }
 0x2bf   : > { %1580 = vst.msk [vmem:[#allocation3 + $0xb8] sm:$0xff] %vm1556_vm7, %v1507_v41 }
 0x2c0   : > { %v1698_v23 = vpop.permute.xlu0 %1697  ;;  %2096 = vrot.lane.b32.xlu1 %v2004_v10, %s3702_s14 }
 0x2c1   : > { %1772 = vst.msk [vmem:[#allocation3 + $0xb0] sm:$0xff] %vm1749_vm8, %v1698_v23 }
 0x2c2   : > { %1329 = vrot.lane.b32.xlu0 %v1812_v40, %s3699_s8  ;;  %v2276_v44 = vpop.permute.xlu1 %2275  ;;  %v2382_v51 = vld [vmem:[#allocation3 + $0xa0] sm:$0xff] }
 0x2c3   : > { %2351 = vst.msk [vmem:[#allocation3 + $0xa8] sm:$0xff] %vm2329_vm11, %v2276_v44  ;;  %3513 = vmatprep.mubr.msk.f32.mxu1 %vm2406_vm12, %v2382_v51 }
 0x2c4   : > { %v932_v11 = vpop.permute.xlu0 %931  ;;  %1520 = vrot.lane.b32.xlu1 %v2004_v10, %s3698_s29 }
 0x2c5   : > { %1003 = vst.msk [vmem:[#allocation3 + $0xc8] sm:$0xff] %vm977_vm4, %v932_v11 }
 0x2c6   : > { %2098 = vrot.lane.b32.xlu0 %v2005_v47, %s3702_s14  ;;  %v1123_v48 = vpop.permute.xlu1 %1122 }
 0x2c7   : > { %1195 = vst.msk [vmem:[#allocation3 + $0xc0] sm:$0xff] %vm1170_vm5, %v1123_v48 }
 0x2c8   : > { %v1700_v52 = vpop.permute.xlu0 %1699  ;;  %2289 = vrot.lane.b32.xlu1 %v2197_v49, %s3701_s13 }
 0x2c9   : > { %1773 = vst.msk [vmem:[#allocation3 + $0xb8] sm:$0xff] %vm1749_vm8, %v1700_v52 }
 0x2ca   : > { %1522 = vrot.lane.b32.xlu0 %v2005_v47, %s3698_s29  ;;  %v1892_v59 = vpop.permute.xlu1 %1891  ;;  %v2383_v53 = vld [vmem:[#allocation3 + $0xa8] sm:$0xff]  ;;  %s3208_s29 = sshll.u32 %s269_s20, 8 }
 0x2cb   : > { %1966 = vst.msk [vmem:[#allocation3 + $0xb0] sm:$0xff] %vm1943_vm9, %v1892_v59  ;;  %3514 = vmatmul.mubr.msk.f32.gmra.mxu1 %vm2406_vm12, %v2383_v53 }
 0x2cc   : > { %v1125_v54 = vpop.permute.xlu0 %1124  ;;  %1713 = vrot.lane.b32.xlu1 %v2197_v49, %s3700_s9  ;;  %v3497_v45 = vpop.f32.mrf.mxu1 }
 0x2cd   : > { %1196 = vst.msk [vmem:[#allocation3 + $0xc8] sm:$0xff] %vm1170_vm5, %v1125_v54  ;;  %v2618_v60 = vadd.f32 %v3497_v45, %v4504_v61 }
 0x2ce   : > { %2291 = vrot.lane.b32.xlu0 %v2198_v55, %s3701_s13  ;;  %v1316_v56 = vpop.permute.xlu1 %1315  ;;  %v2612_v57 = vpop.f32.mrf.mxu1 }
 0x2cf   : > { %1388 = vst.msk [vmem:[#allocation3 + $0xc0] sm:$0xff] %vm1363_vm6, %v1316_v56  ;;  %v2613_v27 = vadd.f32 %v4504_v61, %v2612_v57  ;;  %v2740_v2 = vmax.f32 %v2618_v60, 0.0 }
 0x2d0   : > { %v1894_v58 = vpop.permute.xlu0 %1893  ;;  %1715 = vrot.lane.b32.xlu1 %v2198_v55, %s3700_s9  ;;  %v4735_v55 = vld [vmem:[%s4961_s6] ss:$0 sm:$0xff] }
 0x2d1   : > { %v2739_v0 = vmax.f32 %v2613_v27, 0.0  ;;  %1967 = vst.msk [vmem:[#allocation3 + $0xb8] sm:$0xff] %vm1943_vm9, %v1894_v58 }
 0x2d2   : > { %v2085_v3 = vpop.permute.xlu1 %2084  ;;  %1907 = vrot.lane.b32.xlu0 %v1813_v46, %s3703_s15 }
 0x2d3   : > { %2159 = vst.msk [vmem:[#allocation3 + $0xb0] sm:$0xff] %vm2136_vm10, %v2085_v3  ;;  %3545 = vmatprep.mubr.msk.f32.mxu0 %vm317_vm1, %v2739_v0 }
 0x2d4   : > { %v1318_v42 = vpop.permute.xlu0 %1317  ;;  %1909 = vrot.lane.b32.xlu1 %v1814_v1, %s3703_s15  ;;  %3546 = vmatmul.mubr.msk.f32.gmra.mxu0 %vm317_vm1, %v2740_v2 }
 0x2d5   : > { %1389 = vst.msk [vmem:[#allocation3 + $0xc8] sm:$0xff] %vm1363_vm6, %v1318_v42 }
 0x2d6   : > { %v1509_v6 = vpop.permute.xlu1 %1508  ;;  %2100 = vrot.lane.b32.xlu0 %v2006_v4, %s3702_s14 }
 0x2d7   : > { %1581 = vst.msk [vmem:[#allocation3 + $0xc0] sm:$0xff] %vm1556_vm7, %v1509_v6 }
 0x2d8   : > { %v2087_v7 = vpop.permute.xlu0 %2086  ;;  %2102 = vrot.lane.b32.xlu1 %v2007_v5, %s3702_s14 }
 0x2d9   : > { %2160 = vst.msk [vmem:[#allocation3 + $0xb8] sm:$0xff] %vm2136_vm10, %v2087_v7 }
 0x2da   : > { %v2278_v8 = vpop.permute.xlu1 %2277  ;;  %2293 = vrot.lane.b32.xlu0 %v2199_v62, %s3701_s13 }
 0x2db   : > { %2352 = vst.msk [vmem:[#allocation3 + $0xb0] sm:$0xff] %vm2329_vm11, %v2278_v8 }
 0x2dc   : > { %v934_v9 = vpop.permute.xlu0 %933  ;;  %2295 = vrot.lane.b32.xlu1 %v2200_v43, %s3701_s13  ;;  %s4742_s13 = scalar_lea.vmem [#allocation4], %s3208_s29  ;;  %s3704_s29 = smov [#allocation4]  }
 0x2dd   : > { %1004 = vst.msk [vmem:[#allocation3 + $0xd0] sm:$0xff] %vm977_vm4, %v934_v9  ;;  %s3142_s23 = sshll.u32 %s4742_s13, 4  ;;  %s3637_s8 = sshll.u32 %s3704_s29, 4  ;;  %s4908_s23 = int_to_ptr.vmem [resolvable:$true] %s3142_s23  ;;  %s3638_s8 = int_to_ptr.vmem [resolvable:$false] %s3637_s8 }
 0x2de   : > { %v1511_v28 = vpop.permute.xlu1 %1510  ;;  %s3633_s18 = scalar_lea.vmem %s4908_s23, 4096  ;;  %s3639_s9 = scalar_lea.vmem %s3638_s8, 8192 }
 0x2df   : > { %1582 = vst.msk [vmem:[#allocation3 + $0xc8] sm:$0xff] %vm1556_vm7, %v1511_v28  ;;  %p3634_p11 = scmp.ne.s32.totalorder %s4908_s23, %s3633_s18  ;;  %p3640_p0 = scmp.lt.s32.totalorder %s4908_s23, %s3638_s8 }
 0x2e0   : > { %v1702_v63 = vpop.permute.xlu0 %1701  ;;  %p3641_p1 = scmp.lt.s32.totalorder %s3639_s9, %s3633_s18 }
 0x2e1   : > { %1774 = vst.msk [vmem:[#allocation3 + $0xc0] sm:$0xff] %vm1749_vm8, %v1702_v63  ;;  %p3635_p12 = pnand %p3634_p11, %p3784_p5 }
 0x2e2   : > { %v2280_v14 = vpop.permute.xlu1 %2279  ;;  %v2384_v15 = vld [vmem:[#allocation3 + $0xb0] sm:$0xff]  ;;  %p3642_p2 = por %p3641_p1, %p3640_p0 }
 0x2e3   : > { %2353 = vst.msk [vmem:[#allocation3 + $0xb8] sm:$0xff] %vm2329_vm11, %v2280_v14  ;;  %3516 = vmatprep.mubr.msk.f32.mxu1 %vm2406_vm12, %v2384_v15  ;;  %p3636_p13 = pneg %p3635_p12 }
 0x2e4   : > { %v936_v20 = vpop.permute.xlu0 %935 }
 0x2e5   : > { %1005 = vst.msk [vmem:[#allocation3 + $0xd8] sm:$0xff] %vm977_vm4, %v936_v20  ;;  %p3643_p3 = pnand %p3642_p2, %p3636_p13 }
 0x2e6   : > { %v1127_v16 = vpop.permute.xlu1 %1126 }
 0x2e7   : > { %1197 = vst.msk [vmem:[#allocation3 + $0xd0] sm:$0xff] %vm1170_vm5, %v1127_v16 }
 0x2e8   : > { %v1704_v17 = vpop.permute.xlu0 %1703 }
 0x2e9   : > { %1775 = vst.msk [vmem:[#allocation3 + $0xc8] sm:$0xff] %vm1749_vm8, %v1704_v17 }
 0x2ea   : > { %v1896_v18 = vpop.permute.xlu1 %1895  ;;  %v2385_v19 = vld [vmem:[#allocation3 + $0xb8] sm:$0xff] }
 0x2eb   : > { %1968 = vst.msk [vmem:[#allocation3 + $0xc0] sm:$0xff] %vm1943_vm9, %v1896_v18  ;;  %3517 = vmatmul.mubr.msk.f32.gmra.mxu1 %vm2406_vm12, %v2385_v19 }
 0x2ec   : > { %v1129_v21 = vpop.permute.xlu0 %1128  ;;  %v3500_v24 = vpop.f32.mrf.mxu1 }
 0x2ed   : > { %1198 = vst.msk [vmem:[#allocation3 + $0xd8] sm:$0xff] %vm1170_vm5, %v1129_v21  ;;  %v2628_v33 = vadd.f32 %v3500_v24, %v4504_v61 }
 0x2ee   : > { %v1320_v25 = vpop.permute.xlu1 %1319  ;;  %v2622_v26 = vpop.f32.mrf.mxu1 }
 0x2ef   : > { %1390 = vst.msk [vmem:[#allocation3 + $0xd0] sm:$0xff] %vm1363_vm6, %v1320_v25  ;;  %v2623_v50 = vadd.f32 %v4504_v61, %v2622_v26  ;;  %v2742_v22 = vmax.f32 %v2628_v33, 0.0 }
 0x2f0   : > { %v1898_v29 = vpop.permute.xlu0 %1897 }
 0x2f1   : > { %v2741_v35 = vmax.f32 %v2623_v50, 0.0  ;;  %1969 = vst.msk [vmem:[#allocation3 + $0xc8] sm:$0xff] %vm1943_vm9, %v1898_v29 }
 0x2f2   : > { %v2089_v12 = vpop.permute.xlu1 %2088 }
 0x2f3   : > { %2161 = vst.msk [vmem:[#allocation3 + $0xc0] sm:$0xff] %vm2136_vm10, %v2089_v12  ;;  %3548 = vmatprep.mubr.msk.f32.mxu0 %vm317_vm1, %v2741_v35 }
 0x2f4   : > { %v1322_v30 = vpop.permute.xlu0 %1321  ;;  %3549 = vmatmul.mubr.msk.f32.gmra.mxu0 %vm317_vm1, %v2742_v22 }
 0x2f5   : > { %1391 = vst.msk [vmem:[#allocation3 + $0xd8] sm:$0xff] %vm1363_vm6, %v1322_v30 }
 0x2f6   : > { %v1513_v31 = vpop.permute.xlu1 %1512 }
 0x2f7   : > { %1583 = vst.msk [vmem:[#allocation3 + $0xd0] sm:$0xff] %vm1556_vm7, %v1513_v31 }
 0x2f8   : > { %v2091_v34 = vpop.permute.xlu0 %2090 }
 0x2f9   : > { %2162 = vst.msk [vmem:[#allocation3 + $0xc8] sm:$0xff] %vm2136_vm10, %v2091_v34 }
 0x2fa   : > { %v2282_v32 = vpop.permute.xlu1 %2281 }
 0x2fb   : > { %2354 = vst.msk [vmem:[#allocation3 + $0xc0] sm:$0xff] %vm2329_vm11, %v2282_v32 }
 0x2fc   : > { %v938_v13 = vpop.permute.xlu0 %937 }
 0x2fd   : > { %1006 = vst.msk [vmem:[#allocation3 + $0xe0] sm:$0xff] %vm977_vm4, %v938_v13 }
 0x2fe   : > { %v1515_v36 = vpop.permute.xlu1 %1514 }
 0x2ff   : > { %1584 = vst.msk [vmem:[#allocation3 + $0xd8] sm:$0xff] %vm1556_vm7, %v1515_v36 }
 0x300   : > { %v1706_v37 = vpop.permute.xlu0 %1705 }
 0x301   : > { %1776 = vst.msk [vmem:[#allocation3 + $0xd0] sm:$0xff] %vm1749_vm8, %v1706_v37 }
 0x302   : > { %v2284_v38 = vpop.permute.xlu1 %2283  ;;  %v2386_v39 = vld [vmem:[#allocation3 + $0xc0] sm:$0xff] }
 0x303   : > { %2355 = vst.msk [vmem:[#allocation3 + $0xc8] sm:$0xff] %vm2329_vm11, %v2284_v38  ;;  %3519 = vmatprep.mubr.msk.f32.mxu1 %vm2406_vm12, %v2386_v39 }
 0x304   : > { %v940_v40 = vpop.permute.xlu0 %939 }
 0x305   : > { %1007 = vst.msk [vmem:[#allocation3 + $0xe8] sm:$0xff] %vm977_vm4, %v940_v40 }
 0x306   : > { %v1131_v41 = vpop.permute.xlu1 %1130 }
 0x307   : > { %1199 = vst.msk [vmem:[#allocation3 + $0xe0] sm:$0xff] %vm1170_vm5, %v1131_v41 }
 0x308   : > { %v1708_v10 = vpop.permute.xlu0 %1707 }
 0x309   : > { %1777 = vst.msk [vmem:[#allocation3 + $0xd8] sm:$0xff] %vm1749_vm8, %v1708_v10 }
 0x30a   : > { %v1900_v23 = vpop.permute.xlu1 %1899  ;;  %v2387_v44 = vld [vmem:[#allocation3 + $0xc8] sm:$0xff] }
 0x30b   : > { %1970 = vst.msk [vmem:[#allocation3 + $0xd0] sm:$0xff] %vm1943_vm9, %v1900_v23  ;;  %3520 = vmatmul.mubr.msk.f32.gmra.mxu1 %vm2406_vm12, %v2387_v44 }
 0x30c   : > { %v1133_v51 = vpop.permute.xlu0 %1132  ;;  %v3503_v11 = vpop.f32.mrf.mxu1 }
 0x30d   : > { %1200 = vst.msk [vmem:[#allocation3 + $0xe8] sm:$0xff] %vm1170_vm5, %v1133_v51  ;;  %v2638_v47 = vadd.f32 %v3503_v11, %v4504_v61 }
 0x30e   : > { %v1324_v48 = vpop.permute.xlu1 %1323  ;;  %v2632_v49 = vpop.f32.mrf.mxu1 }
 0x30f   : > { %1392 = vst.msk [vmem:[#allocation3 + $0xe0] sm:$0xff] %vm1363_vm6, %v1324_v48  ;;  %v2633_v52 = vadd.f32 %v4504_v61, %v2632_v49  ;;  %v2744_v54 = vmax.f32 %v2638_v47, 0.0 }
 0x310   : > { %v1902_v59 = vpop.permute.xlu0 %1901 }
 0x311   : > { %v2743_v53 = vmax.f32 %v2633_v52, 0.0  ;;  %1971 = vst.msk [vmem:[#allocation3 + $0xd8] sm:$0xff] %vm1943_vm9, %v1902_v59 }
 0x312   : > { %v2093_v45 = vpop.permute.xlu1 %2092 }
 0x313   : > { %2163 = vst.msk [vmem:[#allocation3 + $0xd0] sm:$0xff] %vm2136_vm10, %v2093_v45  ;;  %3551 = vmatprep.mubr.msk.f32.mxu0 %vm317_vm1, %v2743_v53 }
 0x314   : > { %v1326_v60 = vpop.permute.xlu0 %1325  ;;  %v3535_v56 = vpop.f32.mrf.mxu0  ;;  %3552 = vmatmul.mubr.msk.f32.gmra.mxu0 %vm317_vm1, %v2744_v54 }
 0x315   : > { %1393 = vst.msk [vmem:[#allocation3 + $0xe8] sm:$0xff] %vm1363_vm6, %v1326_v60  ;;  %v2942_v57 = vadd.f32 %v3535_v56, %v4735_v55 }
 0x316   : > { %v2936_v27 = vpop.f32.mrf.mxu0  ;;  %v1517_v46 = vpop.permute.xlu1 %1516 }
 0x317   : > { %3097 = vst.msk [vmem:[%s4742_s13 + $0x8] sm:$0xff] %vm3095_vm13, %v2942_v57  ;;  %v2937_v58 = vadd.f32 %v4735_v55, %v2936_v27 }
 0x318   : > { %1585 = vst.msk [vmem:[#allocation3 + $0xe0] sm:$0xff] %vm1556_vm7, %v1517_v46  ;;  %v2095_v0 = vpop.permute.xlu0 %2094 }
 0x319   : > { %3096 = vst.msk [vmem:[%s4742_s13] sm:$0xff] %vm3095_vm13, %v2937_v58 }
 0x31a   : > { %2164 = vst.msk [vmem:[#allocation3 + $0xd8] sm:$0xff] %vm2136_vm10, %v2095_v0  ;;  %v2286_v1 = vpop.permute.xlu1 %2285 }
 0x31b   : > { %2356 = vst.msk [vmem:[#allocation3 + $0xd0] sm:$0xff] %vm2329_vm11, %v2286_v1 }
 0x31c   : > { %v942_v2 = vpop.permute.xlu0 %941 }
 0x31d   : > { %1008 = vst.msk [vmem:[#allocation3 + $0xf0] sm:$0xff] %vm977_vm4, %v942_v2 }
 0x31e   : > { %v1519_v3 = vpop.permute.xlu1 %1518 }
 0x31f   : > { %1586 = vst.msk [vmem:[#allocation3 + $0xe8] sm:$0xff] %vm1556_vm7, %v1519_v3 }
 0x320   : > { %v1710_v4 = vpop.permute.xlu0 %1709 }
 0x321   : > { %1778 = vst.msk [vmem:[#allocation3 + $0xe0] sm:$0xff] %vm1749_vm8, %v1710_v4 }
 0x322   : > { %v2288_v42 = vpop.permute.xlu1 %2287  ;;  %v2388_v5 = vld [vmem:[#allocation3 + $0xd0] sm:$0xff] }
 0x323   : > { %2357 = vst.msk [vmem:[#allocation3 + $0xd8] sm:$0xff] %vm2329_vm11, %v2288_v42  ;;  %3522 = vmatprep.mubr.msk.f32.mxu1 %vm2406_vm12, %v2388_v5 }
 0x324   : > { %v944_v6 = vpop.permute.xlu0 %943 }
 0x325   : > { %1009 = vst.msk [vmem:[#allocation3 + $0xf8] sm:$0xff] %vm977_vm4, %v944_v6 }
 0x326   : > { %v1135_v62 = vpop.permute.xlu1 %1134 }
 0x327   : > { %1201 = vst.msk [vmem:[#allocation3 + $0xf0] sm:$0xff] %vm1170_vm5, %v1135_v62 }
 0x328   : > { %v1712_v7 = vpop.permute.xlu0 %1711 }
 0x329   : > { %1779 = vst.msk [vmem:[#allocation3 + $0xe8] sm:$0xff] %vm1749_vm8, %v1712_v7 }
 0x32a   : > { %v1904_v43 = vpop.permute.xlu1 %1903  ;;  %v2389_v8 = vld [vmem:[#allocation3 + $0xd8] sm:$0xff] }
 0x32b   : > { %1972 = vst.msk [vmem:[#allocation3 + $0xe0] sm:$0xff] %vm1943_vm9, %v1904_v43  ;;  %v3506_v9 = vpop.f32.mrf.mxu1  ;;  %3523 = vmatmul.mubr.msk.f32.gmra.mxu1 %vm2406_vm12, %v2389_v8 }
 0x32c   : > { %v1137_v28 = vpop.permute.xlu0 %1136  ;;  %v2648_v63 = vadd.f32 %v3506_v9, %v4504_v61 }
 0x32d   : > { %1202 = vst.msk [vmem:[#allocation3 + $0xf8] sm:$0xff] %vm1170_vm5, %v1137_v28  ;;  %v2642_v14 = vpop.f32.mrf.mxu1 }
 0x32e   : > { %v2643_v15 = vadd.f32 %v4504_v61, %v2642_v14  ;;  %v1328_v20 = vpop.permute.xlu1 %1327  ;;  %v2746_v18 = vmax.f32 %v2648_v63, 0.0 }
 0x32f   : > { %1394 = vst.msk [vmem:[#allocation3 + $0xf0] sm:$0xff] %vm1363_vm6, %v1328_v20 }
 0x330   : > { %v2745_v16 = vmax.f32 %v2643_v15, 0.0  ;;  %v1906_v17 = vpop.permute.xlu0 %1905 }
 0x331   : > { %1973 = vst.msk [vmem:[#allocation3 + $0xe8] sm:$0xff] %vm1943_vm9, %v1906_v17 }
 0x332   : > { %v2097_v19 = vpop.permute.xlu1 %2096  ;;  %3554 = vmatprep.mubr.msk.f32.mxu0 %vm317_vm1, %v2745_v16 }
 0x333   : > { %2165 = vst.msk [vmem:[#allocation3 + $0xe0] sm:$0xff] %vm2136_vm10, %v2097_v19  ;;  %3555 = vmatmul.mubr.msk.f32.gmra.mxu0 %vm317_vm1, %v2746_v18 }
 0x334   : > { %v1330_v21 = vpop.permute.xlu0 %1329  ;;  %v3538_v24 = vpop.f32.mrf.mxu0 }
 0x335   : > { %1395 = vst.msk [vmem:[#allocation3 + $0xf8] sm:$0xff] %vm1363_vm6, %v1330_v21  ;;  %v2952_v33 = vadd.f32 %v3538_v24, %v4735_v55 }
 0x336   : > { %v1521_v25 = vpop.permute.xlu1 %1520  ;;  %v2946_v26 = vpop.f32.mrf.mxu0 }
 0x337   : > { %3099 = vst.msk [vmem:[%s4742_s13 + $0x18] sm:$0xff] %vm3095_vm13, %v2952_v33  ;;  %v2947_v50 = vadd.f32 %v4735_v55, %v2946_v26 }
 0x338   : > { %1587 = vst.msk [vmem:[#allocation3 + $0xf0] sm:$0xff] %vm1556_vm7, %v1521_v25  ;;  %v2099_v29 = vpop.permute.xlu0 %2098 }
 0x339   : > { %3098 = vst.msk [vmem:[%s4742_s13 + $0x10] sm:$0xff] %vm3095_vm13, %v2947_v50 }
 0x33a   : > { %2166 = vst.msk [vmem:[#allocation3 + $0xe8] sm:$0xff] %vm2136_vm10, %v2099_v29  ;;  %v2290_v35 = vpop.permute.xlu1 %2289 }
 0x33b   : > { %2358 = vst.msk [vmem:[#allocation3 + $0xe0] sm:$0xff] %vm2329_vm11, %v2290_v35 }
 0x33c   : > { %v1523_v22 = vpop.permute.xlu0 %1522 }
 0x33d   : > { %1588 = vst.msk [vmem:[#allocation3 + $0xf8] sm:$0xff] %vm1556_vm7, %v1523_v22 }
 0x33e   : > { %v1714_v12 = vpop.permute.xlu1 %1713 }
 0x33f   : > { %1780 = vst.msk [vmem:[#allocation3 + $0xf0] sm:$0xff] %vm1749_vm8, %v1714_v12 }
 0x340   : > { %v2292_v30 = vpop.permute.xlu0 %2291 }
 0x341   : > { %2359 = vst.msk [vmem:[#allocation3 + $0xe8] sm:$0xff] %vm2329_vm11, %v2292_v30 }
 0x342   : > { %v1716_v31 = vpop.permute.xlu1 %1715  ;;  %v2390_v34 = vld [vmem:[#allocation3 + $0xe0] sm:$0xff] }
 0x343   : > { %1781 = vst.msk [vmem:[#allocation3 + $0xf8] sm:$0xff] %vm1749_vm8, %v1716_v31  ;;  %3525 = vmatprep.mubr.msk.f32.mxu1 %vm2406_vm12, %v2390_v34 }
 0x344   : > { %v1908_v32 = vpop.permute.xlu0 %1907 }
 0x345   : > { %1974 = vst.msk [vmem:[#allocation3 + $0xf0] sm:$0xff] %vm1943_vm9, %v1908_v32 }
 0x346   : > { %v1910_v13 = vpop.permute.xlu1 %1909 }
 0x347   : > { %1975 = vst.msk [vmem:[#allocation3 + $0xf8] sm:$0xff] %vm1943_vm9, %v1910_v13 }
 0x348   : > { %v2101_v36 = vpop.permute.xlu0 %2100  ;;  %v2391_v37 = vld [vmem:[#allocation3 + $0xe8] sm:$0xff] }
 0x349   : > { %2167 = vst.msk [vmem:[#allocation3 + $0xf0] sm:$0xff] %vm2136_vm10, %v2101_v36  ;;  %3526 = vmatmul.mubr.msk.f32.gmra.mxu1 %vm2406_vm12, %v2391_v37 }
 0x34a   : > { %v2103_v38 = vpop.permute.xlu1 %2102 }
 0x34b   : > { %2168 = vst.msk [vmem:[#allocation3 + $0xf8] sm:$0xff] %vm2136_vm10, %v2103_v38  ;;  %v3509_v39 = vpop.f32.mrf.mxu1 }
 0x34c   : > { %v2294_v40 = vpop.permute.xlu0 %2293  ;;  %v2658_v41 = vadd.f32 %v3509_v39, %v4504_v61 }
 0x34d   : > { %2360 = vst.msk [vmem:[#allocation3 + $0xf0] sm:$0xff] %vm2329_vm11, %v2294_v40  ;;  %v2652_v10 = vpop.f32.mrf.mxu1 }
 0x34e   : > { %v2653_v23 = vadd.f32 %v4504_v61, %v2652_v10  ;;  %v2296_v44 = vpop.permute.xlu1 %2295  ;;  %v2748_v11 = vmax.f32 %v2658_v41, 0.0 }
 0x34f   : > { %2361 = vst.msk [vmem:[#allocation3 + $0xf8] sm:$0xff] %vm2329_vm11, %v2296_v44 }
 0x350   : > { %v2747_v51 = vmax.f32 %v2653_v23, 0.0 }
 0x352   : > { %3557 = vmatprep.mubr.msk.f32.mxu0 %vm317_vm1, %v2747_v51 }
 0x353   : > { %3558 = vmatmul.mubr.msk.f32.gmra.mxu0 %vm317_vm1, %v2748_v11 }
 0x354   : > { %v3541_v47 = vpop.f32.mrf.mxu0  ;;  %v2392_v48 = vld [vmem:[#allocation3 + $0xf0] sm:$0xff] }
 0x355   : > { %v2962_v49 = vadd.f32 %v3541_v47, %v4735_v55  ;;  %3528 = vmatprep.mubr.msk.f32.mxu1 %vm2406_vm12, %v2392_v48 }
 0x356   : > { %v2956_v52 = vpop.f32.mrf.mxu0  ;;  %v2393_v59 = vld [vmem:[#allocation3 + $0xf8] sm:$0xff] }
 0x357   : > { %3101 = vst.msk [vmem:[%s4742_s13 + $0x28] sm:$0xff] %vm3095_vm13, %v2962_v49  ;;  %v2957_v53 = vadd.f32 %v4735_v55, %v2956_v52  ;;  %3529 = vmatmul.mubr.msk.f32.gmra.mxu1 %vm2406_vm12, %v2393_v59 }
 0x359   : > { %3100 = vst.msk [vmem:[%s4742_s13 + $0x20] sm:$0xff] %vm3095_vm13, %v2957_v53 }
 0x36b   : > { %v3512_v54 = vpop.f32.mrf.mxu1 }
 0x36c   : > { %v2668_v45 = vadd.f32 %v3512_v54, %v4504_v61 }
 0x36d   : > { %v2662_v60 = vpop.f32.mrf.mxu1 }
 0x36e   : > { %v2663_v56 = vadd.f32 %v4504_v61, %v2662_v60  ;;  %v2750_v27 = vmax.f32 %v2668_v45, 0.0 }
 0x370   : > { %v2749_v57 = vmax.f32 %v2663_v56, 0.0 }
 0x372   : > { %3560 = vmatprep.mubr.msk.f32.mxu0 %vm317_vm1, %v2749_v57 }
 0x373   : > { %3561 = vmatmul.mubr.msk.f32.gmra.mxu0 %vm317_vm1, %v2750_v27 }
 0x374   : > { %v3544_v46 = vpop.f32.mrf.mxu0 }
 0x375   : > { %v2972_v58 = vadd.f32 %v3544_v46, %v4735_v55 }
 0x376   : > { %v2966_v0 = vpop.f32.mrf.mxu0 }
 0x377   : > { %3103 = vst.msk [vmem:[%s4742_s13 + $0x38] sm:$0xff] %vm3095_vm13, %v2972_v58  ;;  %v2967_v1 = vadd.f32 %v4735_v55, %v2966_v0 }
 0x379   : > { %3102 = vst.msk [vmem:[%s4742_s13 + $0x30] sm:$0xff] %vm3095_vm13, %v2967_v1 }
 0x38b   : > { %v3515_v2 = vpop.f32.mrf.mxu1 }
 0x38c   : > { %v2678_v3 = vadd.f32 %v3515_v2, %v4504_v61 }
 0x38d   : > { %v2672_v4 = vpop.f32.mrf.mxu1 }
 0x38e   : > { %v2673_v42 = vadd.f32 %v4504_v61, %v2672_v4  ;;  %v2752_v6 = vmax.f32 %v2678_v3, 0.0  ;;  %v3632_v61 = vld [vmem:[%s4959_s4] ss:$0 sm:$0xff] }
 0x390   : > { %v2751_v5 = vmax.f32 %v2673_v42, 0.0 }
 0x392   : > { %3563 = vmatprep.mubr.msk.f32.mxu0 %vm317_vm1, %v2751_v5 }
 0x393   : > { %3564 = vmatmul.mubr.msk.f32.gmra.mxu0 %vm317_vm1, %v2752_v6 }
 0x394   : > { %v3547_v62 = vpop.f32.mrf.mxu0 }
 0x395   : > { %v2982_v7 = vadd.f32 %v3547_v62, %v4735_v55 }
 0x396   : > { %v2976_v43 = vpop.f32.mrf.mxu0 }
 0x397   : > { %3105 = vst.msk [vmem:[%s4742_s13 + $0x48] sm:$0xff] %vm3095_vm13, %v2982_v7  ;;  %v2977_v8 = vadd.f32 %v4735_v55, %v2976_v43 }
 0x399   : > { %3104 = vst.msk [vmem:[%s4742_s13 + $0x40] sm:$0xff] %vm3095_vm13, %v2977_v8 }
 0x3ab   : > { %v3518_v9 = vpop.f32.mrf.mxu1 }
 0x3ac   : > { %v2688_v28 = vadd.f32 %v3632_v61, %v3518_v9 }
 0x3ad   : > { %v2682_v63 = vpop.f32.mrf.mxu1 }
 0x3ae   : > { %v2683_v14 = vadd.f32 %v3632_v61, %v2682_v63  ;;  %v2754_v20 = vmax.f32 %v2688_v28, 0.0 }
 0x3b0   : > { %v2753_v15 = vmax.f32 %v2683_v14, 0.0 }
 0x3b2   : > { %3566 = vmatprep.mubr.msk.f32.mxu0 %vm317_vm1, %v2753_v15 }
 0x3b3   : > { %3567 = vmatmul.mubr.msk.f32.gmra.mxu0 %vm317_vm1, %v2754_v20 }
 0x3b4   : > { %v3550_v16 = vpop.f32.mrf.mxu0 }
 0x3b5   : > { %v2992_v17 = vadd.f32 %v3550_v16, %v4735_v55 }
 0x3b6   : > { %v2986_v18 = vpop.f32.mrf.mxu0 }
 0x3b7   : > { %3107 = vst.msk [vmem:[%s4742_s13 + $0x58] sm:$0xff] %vm3095_vm13, %v2992_v17  ;;  %v2987_v19 = vadd.f32 %v4735_v55, %v2986_v18 }
 0x3b9   : > { %3106 = vst.msk [vmem:[%s4742_s13 + $0x50] sm:$0xff] %vm3095_vm13, %v2987_v19 }
 0x3cb   : > { %v3521_v21 = vpop.f32.mrf.mxu1 }
 0x3cc   : > { %v2698_v24 = vadd.f32 %v3632_v61, %v3521_v21 }
 0x3cd   : > { %v2692_v33 = vpop.f32.mrf.mxu1 }
 0x3ce   : > { %v2693_v25 = vadd.f32 %v3632_v61, %v2692_v33  ;;  %v2756_v50 = vmax.f32 %v2698_v24, 0.0 }
 0x3d0   : > { %v2755_v26 = vmax.f32 %v2693_v25, 0.0 }
 0x3d2   : > { %3569 = vmatprep.mubr.msk.f32.mxu0 %vm317_vm1, %v2755_v26 }
 0x3d3   : > { %3570 = vmatmul.mubr.msk.f32.gmra.mxu0 %vm317_vm1, %v2756_v50 }
 0x3d4   : > { %v3553_v29 = vpop.f32.mrf.mxu0 }
 0x3d5   : > { %v3002_v35 = vadd.f32 %v3553_v29, %v4735_v55 }
 0x3d6   : > { %v2996_v22 = vpop.f32.mrf.mxu0 }
 0x3d7   : > { %3109 = vst.msk [vmem:[%s4742_s13 + $0x68] sm:$0xff] %vm3095_vm13, %v3002_v35  ;;  %v2997_v12 = vadd.f32 %v4735_v55, %v2996_v22 }
 0x3d9   : > { %3108 = vst.msk [vmem:[%s4742_s13 + $0x60] sm:$0xff] %vm3095_vm13, %v2997_v12 }
 0x3eb   : > { %v3524_v30 = vpop.f32.mrf.mxu1 }
 0x3ec   : > { %v2708_v31 = vadd.f32 %v3632_v61, %v3524_v30 }
 0x3ed   : > { %v2702_v34 = vpop.f32.mrf.mxu1 }
 0x3ee   : > { %v2703_v32 = vadd.f32 %v3632_v61, %v2702_v34  ;;  %v2758_v36 = vmax.f32 %v2708_v31, 0.0 }
 0x3f0   : > { %v2757_v13 = vmax.f32 %v2703_v32, 0.0 }
 0x3f2   : > { %3572 = vmatprep.mubr.msk.f32.mxu0 %vm317_vm1, %v2757_v13 }
 0x3f3   : > { %v3556_v37 = vpop.f32.mrf.mxu0  ;;  %3573 = vmatmul.mubr.msk.f32.gmra.mxu0 %vm317_vm1, %v2758_v36 }
 0x3f4   : > { %v3012_v38 = vadd.f32 %v3556_v37, %v4735_v55 }
 0x3f5   : > { %v3006_v39 = vpop.f32.mrf.mxu0 }
 0x3f6   : > { %3111 = vst.msk [vmem:[%s4742_s13 + $0x78] sm:$0xff] %vm3095_vm13, %v3012_v38  ;;  %v3007_v40 = vadd.f32 %v4735_v55, %v3006_v39 }
 0x3f8   : > { %3110 = vst.msk [vmem:[%s4742_s13 + $0x70] sm:$0xff] %vm3095_vm13, %v3007_v40 }
 0x409   : > { %v3527_v41 = vpop.f32.mrf.mxu1 }
 0x40a   : > { %v2718_v10 = vadd.f32 %v3632_v61, %v3527_v41 }
 0x40b   : > { %v2712_v23 = vpop.f32.mrf.mxu1 }
 0x40c   : > { %v2713_v44 = vadd.f32 %v3632_v61, %v2712_v23  ;;  %v2760_v11 = vmax.f32 %v2718_v10, 0.0 }
 0x40e   : > { %v2759_v51 = vmax.f32 %v2713_v44, 0.0 }
 0x410   : > { %3575 = vmatprep.mubr.msk.f32.mxu0 %vm317_vm1, %v2759_v51 }
 0x411   : > { %3576 = vmatmul.mubr.msk.f32.gmra.mxu0 %vm317_vm1, %v2760_v11 }
 0x413   : > { %v3559_v47 = vpop.f32.mrf.mxu0 }
 0x414   : > { %v3022_v48 = vadd.f32 %v3559_v47, %v4735_v55 }
 0x415   : > { %v3016_v49 = vpop.f32.mrf.mxu0 }
 0x416   : > { %3113 = vst.msk [vmem:[%s4742_s13 + $0x88] sm:$0xff] %vm3095_vm13, %v3022_v48  ;;  %v3017_v52 = vadd.f32 %v4735_v55, %v3016_v49 }
 0x417   : > { %v3530_v59 = vpop.f32.mrf.mxu1 }
 0x418   : > { %3112 = vst.msk [vmem:[%s4742_s13 + $0x80] sm:$0xff] %vm3095_vm13, %v3017_v52  ;;  %v2728_v53 = vadd.f32 %v3632_v61, %v3530_v59 }
 0x419   : > { %v2722_v54 = vpop.f32.mrf.mxu1 }
 0x41a   : > { %v2723_v45 = vadd.f32 %v3632_v61, %v2722_v54  ;;  %v2762_v56 = vmax.f32 %v2728_v53, 0.0 }
 0x41c   : > { %v2761_v60 = vmax.f32 %v2723_v45, 0.0 }
 0x41e   : > { %3578 = vmatprep.mubr.msk.f32.mxu0 %vm317_vm1, %v2761_v60 }
 0x41f   : > { %3579 = vmatmul.mubr.msk.f32.gmra.mxu0 %vm317_vm1, %v2762_v56 }
 0x433   : > { %v3562_v57 = vpop.f32.mrf.mxu0 }
 0x434   : > { %v3032_v27 = vadd.f32 %v3562_v57, %v4735_v55 }
 0x435   : > { %v3026_v46 = vpop.f32.mrf.mxu0 }
 0x436   : > { %3115 = vst.msk [vmem:[%s4742_s13 + $0x98] sm:$0xff] %vm3095_vm13, %v3032_v27  ;;  %v3027_v58 = vadd.f32 %v4735_v55, %v3026_v46 }
 0x438   : > { %3114 = vst.msk [vmem:[%s4742_s13 + $0x90] sm:$0xff] %vm3095_vm13, %v3027_v58 }
 0x453   : > { %v3565_v0 = vpop.f32.mrf.mxu0 }
 0x454   : > { %v3042_v1 = vadd.f32 %v3565_v0, %v4735_v55 }
 0x455   : > { %v3036_v2 = vpop.f32.mrf.mxu0 }
 0x456   : > { %3117 = vst.msk [vmem:[%s4742_s13 + $0xa8] sm:$0xff] %vm3095_vm13, %v3042_v1  ;;  %v3037_v3 = vadd.f32 %v4735_v55, %v3036_v2 }
 0x458   : > { %3116 = vst.msk [vmem:[%s4742_s13 + $0xa0] sm:$0xff] %vm3095_vm13, %v3037_v3 }
 0x473   : > { %v3568_v4 = vpop.f32.mrf.mxu0 }
 0x474   : > { %v3052_v42 = vadd.f32 %v3568_v4, %v4735_v55 }
 0x475   : > { %v3046_v5 = vpop.f32.mrf.mxu0 }
 0x476   : > { %3119 = vst.msk [vmem:[%s4742_s13 + $0xb8] sm:$0xff] %vm3095_vm13, %v3052_v42  ;;  %v3047_v6 = vadd.f32 %v4735_v55, %v3046_v5 }
 0x478   : > { %3118 = vst.msk [vmem:[%s4742_s13 + $0xb0] sm:$0xff] %vm3095_vm13, %v3047_v6 }
 0x493   : > { %v3571_v62 = vpop.f32.mrf.mxu0 }
 0x494   : > { %v3062_v7 = vadd.f32 %v3571_v62, %v4735_v55 }
 0x495   : > { %v3056_v43 = vpop.f32.mrf.mxu0 }
 0x496   : > { %3121 = vst.msk [vmem:[%s4742_s13 + $0xc8] sm:$0xff] %vm3095_vm13, %v3062_v7  ;;  %v3057_v8 = vadd.f32 %v4735_v55, %v3056_v43 }
 0x498   : > { %3120 = vst.msk [vmem:[%s4742_s13 + $0xc0] sm:$0xff] %vm3095_vm13, %v3057_v8 }
 0x4b3   : > { %v3574_v9 = vpop.f32.mrf.mxu0 }
 0x4b4   : > { %v3072_v61 = vadd.f32 %v3574_v9, %v4735_v55 }
 0x4b5   : > { %v3066_v28 = vpop.f32.mrf.mxu0 }
 0x4b6   : > { %3123 = vst.msk [vmem:[%s4742_s13 + $0xd8] sm:$0xff] %vm3095_vm13, %v3072_v61  ;;  %v3067_v63 = vadd.f32 %v4735_v55, %v3066_v28 }
 0x4b8   : > { %3122 = vst.msk [vmem:[%s4742_s13 + $0xd0] sm:$0xff] %vm3095_vm13, %v3067_v63 }
 0x4d1   : > { %v3577_v14 = vpop.f32.mrf.mxu0 }
 0x4d2   : > { %v3082_v15 = vadd.f32 %v3577_v14, %v4735_v55 }
 0x4d3   : > { %v3076_v20 = vpop.f32.mrf.mxu0 }
 0x4d4   : > { %3125 = vst.msk [vmem:[%s4742_s13 + $0xe8] sm:$0xff] %vm3095_vm13, %v3082_v15  ;;  %v3077_v16 = vadd.f32 %v4735_v55, %v3076_v20 }
 0x4d6   : > { %3124 = vst.msk [vmem:[%s4742_s13 + $0xe0] sm:$0xff] %vm3095_vm13, %v3077_v16 }
 0x4df   : > { %v3580_v17 = vpop.f32.mrf.mxu0 }
 0x4e0   : > { %v3092_v18 = vadd.f32 %v3580_v17, %v4735_v55 }
 0x4e1   : > { %v3086_v19 = vpop.f32.mrf.mxu0 }
 0x4e2   : > { %3127 = vst.msk [vmem:[%s4742_s13 + $0xf8] sm:$0xff] %vm3095_vm13, %v3092_v18  ;;  %v3087_v21 = vadd.f32 %v4735_v55, %v3086_v19 }
 0x4e4   : > { %3126 = vst.msk [vmem:[%s4742_s13 + $0xf0] sm:$0xff] %vm3095_vm13, %v3087_v21 }
 0x4e5   : > { %3646 = shalt.err (!%p3643_p3)
}
 0x4e6   : > { %s3647_s20 = scalar_lea.hbm %s4903_s17, 4096  ;;  %s3651_s15 = scalar_lea.hbm %s4962_s7, 8192 }
 0x4e7   : > { %p3648_p4 = scmp.ne.s32.totalorder %s4903_s17, %s3647_s20  ;;  %p3652_p9 = scmp.lt.s32.totalorder %s4903_s17, %s4962_s7 }
 0x4e8   : > { %p3653_p10 = scmp.lt.s32.totalorder %s3651_s15, %s3647_s20 }
 0x4e9   : > { %p3649_p7 = pnand %p3648_p4, %p3784_p5 }
 0x4ea   : > { %p3654_p11 = por %p3653_p10, %p3652_p9 }
 0x4eb   : > { %p3650_p8 = pneg %p3649_p7 }
 0x4ed   : > { %p3655_p12 = pnand %p3654_p11, %p3650_p8 }
 0x4ef   : > { %3658 = shalt.err (!%p3655_p12)
}
 0x4f0   : > { %s3705_s16 = smov 128  }
 0x4f1   : > { %3583 = dma.vmem_to_hbm [thread:$0]  (%p3784_p5), %s4908_s23, 4096, %s4903_s17, %s4914_s28, %s3705_s16, %s3705_s16, %s3697_s21  }
 0x4f2 PF: > { %p3589_p13 = scmp.ge.s32.totalorder %s3693_s27, 2  ;;  %s3157_s18 = sand.u32 1, %s3681_s24  }
 0x4f3   : > { %s3158_s29 = scalar_lea.sflag [#allocation5], %s3157_s18 }
 0x4f4   : > { %p3586_p0 = pnand %p3589_p13, %p3788_p6 }
 0x4f6   : > { %p3587_p1 = pneg %p3586_p0 }
 0x4f8   : > { %3676 = dma.done.wait (%p3587_p1), %s3158_s29, 4096  }
 0x4f9   : > { %3678 = vsyncadd (%p3587_p1), %s3158_s29, 4294963200  ;;  %p17_p2 = scmp.ge.s32.totalorder %s3771_s30, 4   ;;  %s4965_s24 = smov %s3685_s25 }
 0x4fa   : > { %s4966_s25 = smov %s3689_s26  ;;  %s4967_s26 = smov %s3782_s10 }
 0x4fb   : > { %s4968_s27 = smov %s3771_s30  ;;  %19 = sbr.rel (!%p17_p2) target bundleno = 3 (0x3), region = 86 }
 0x500   :  { %3163 = vsyncpa [#allocation5], 1 }
 0x501   :  { %3165 = vsyncpa [#allocation5 + $0x1], 1 }

</bundles_post_ra>
